<compile_context>
chip_gen: v5e
topology: v5e:2x2
jax: 0.10.0
libtpu: 0.0.40
codegen_flags: <defaults>
</compile_context>

<pallas_src>
import functools

import jax
import jax.numpy as jnp
import numpy as np
from jax.experimental import pallas as pl
from jax.experimental.pallas import tpu as pltpu

VMEM_LIMIT = 16 * 1024 * 1024   # small actual need; leaves headroom on v7x's 64 MiB VMEM


# ---------------------------------------------------------------------------
# Pallas kernels
# ---------------------------------------------------------------------------
def _conv1_shortcut_kernel(x_ref, w1_ref, ws_ref, c1_ref, cs_ref, st_ref, *scratch, stride):
    """Fused 3x3 stride-s conv + 1x1 stride-s shortcut conv + packed BN batch-stat partials.

    x_ref : (1, H, W, Cin)  unpadded input (padding ring built in VMEM)
    w1_ref: (Cout, 9*Cin)   im2col-packed 3x3 weights
    ws_ref: (Cout, Cin)     1x1 shortcut weights
    c1_ref, cs_ref: (1, Cout, Ho*Wo)   lane-dense conv outputs
    st_ref: (1, 4*Cout, 1)  [sum(c1); sum(c1^2); sum(cs); sum(cs^2)]
    """
    if stride == 1:
        pad_ref, col_ref = scratch
        planes_ref = None
    else:
        pad_ref, col_ref, planes_ref = scratch
    Hp, Wp, Cin = pad_ref.shape
    H, W = Hp - 2, Wp - 2
    Ho = (H - 1) // stride + 1
    Wo = (W - 1) // stride + 1
    S = Ho * Wo

    # in-kernel zero padding ring (input never padded in HBM)
    pad_ref[...] = jnp.zeros_like(pad_ref)
    pad_ref[pl.ds(1, H), pl.ds(1, W), :] = x_ref[0]

    if stride == 2:
        # 4 parity-decimated planes: every subsequent tap read is a contiguous slice
        Hq, Wq = planes_ref.shape[1], planes_ref.shape[2]
        for pa in range(2):
            for pb in range(2):
                planes_ref[pa * 2 + pb] = pad_ref[pl.ds(pa, Hq, stride=2),
                                                  pl.ds(pb, Wq, stride=2), :]

    center = None
    for kh in range(3):
        for kw in range(3):
            t = kh * 3 + kw
            if stride == 1:
                patch = pad_ref[pl.ds(kh, Ho), pl.ds(kw, Wo), :]
            else:
                patch = planes_ref[(kh % 2) * 2 + (kw % 2),
                                   pl.ds(kh // 2, Ho), pl.ds(kw // 2, Wo), :]
            patch2 = patch.reshape(S, Cin)            # minor (channel) dim preserved
            if t == 4:
                # center tap of a 3x3/pad=1 conv == exact input of the 1x1 stride-s conv
                center = patch2
            col_ref[:, pl.ds(t * Cin, Cin)] = patch2

    # one im2col matmul: (Cout, 9Cin) x (S, 9Cin)^T -> (Cout, S); N-dim = S on lanes
    acc1 = jax.lax.dot_general(w1_ref[...], col_ref[...], (((1,), (1,)), ((), ())),
                               preferred_element_type=jnp.float32)
    accs = jax.lax.dot_general(ws_ref[...], center, (((1,), (1,)), ((), ())),
                               preferred_element_type=jnp.float32)

    c1_ref[0] = acc1.astype(c1_ref.dtype)
    cs_ref[0] = accs.astype(cs_ref.dtype)
    # packed BN batch-stat partials (fused epilogue -> no extra HBM pass over c1 / cs)
    stk = jnp.concatenate([acc1, acc1 * acc1, accs, accs * accs], axis=0)   # (4*Cout, S)
    st_ref[0] = jnp.sum(stk, axis=1, keepdims=True)


def _bnrelu_conv2_kernel(c1_ref, sc_ref, sh_ref, w2_ref, c2_ref, st_ref, pad_ref, *, Wo):
    """BN1+ReLU fused into conv2's prologue (in-kernel padding), plus packed BN2 stats.

    c1_ref: (1, C1, S)  raw (pre-BN) conv1 output, lane-dense
    sc_ref, sh_ref: (C1, 1)  folded BN1 scale / shift
    w2_ref: (C2, 9*C1)  im2col-packed weights
    c2_ref: (1, C2, S)  st_ref: (1, 2*C2, 1)
    pad_ref: VMEM (C1, (Ho+2)*Wo + 2) flattened zero-padded relu(bn1(c1)) image
    """
    S = c1_ref.shape[2]

    # BN1 + ReLU on the lane-dense (C1, S) block
    r = jnp.maximum(c1_ref[0] * sc_ref[...] + sh_ref[...], 0.0)

    # flattened zero-padded image: [1 zero][zero row][Ho image rows][zero row][1 zero]
    pad_ref[...] = jnp.zeros_like(pad_ref)
    pad_ref[:, pl.ds(Wo + 1, S)] = r

    lane = jax.lax.broadcasted_iota(jnp.int32, (1, S), 1) % Wo
    not_left = lane != 0
    not_right = lane != (Wo - 1)

    patches = []
    for kh in range(3):
        for kw in range(3):
            p = pad_ref[:, pl.ds(kh * Wo + kw, S)]
            if kw == 0:        # lanes that wrapped must read the (zero) left pad
                p = jnp.where(not_left, p, 0.0)
            elif kw == 2:      # ... and the (zero) right pad
                p = jnp.where(not_right, p, 0.0)
            patches.append(p)
    col = jnp.concatenate(patches, axis=0)                               # (9*C1, S)

    acc = jax.lax.dot_general(w2_ref[...], col, (((1,), (0,)), ((), ())),
                              preferred_element_type=jnp.float32)        # (C2, S)
    c2_ref[0] = acc.astype(c2_ref.dtype)
    stk = jnp.concatenate([acc, acc * acc], axis=0)                      # (2*C2, S)
    st_ref[0] = jnp.sum(stk, axis=1, keepdims=True)


def _dual_bn_add_relu_kernel(a_ref, b_ref, sa_ref, ba_ref, sb_ref, bb_ref, o_ref):
    # o = relu(BN(a) + BN(b)) on lane-dense (1, C, S) blocks; (C, 1) per-channel vectors.
    y = (a_ref[0] * sa_ref[...] + ba_ref[...]
         + b_ref[0] * sb_ref[...] + bb_ref[...])
    o_ref[0] = jnp.maximum(y, 0.0)


# ---------------------------------------------------------------------------
# Pallas wrappers
# ---------------------------------------------------------------------------
def conv1_shortcut(x_nhwc, w1m, wsm, stride, Ho, Wo):
    N, H, W, Cin = x_nhwc.shape
    Cout = w1m.shape[0]
    S = Ho * Wo
    Hp, Wp = H + 2, W + 2
    scratch = [pltpu.VMEM((Hp, Wp, Cin), jnp.float32),
               pltpu.VMEM((S, 9 * Cin), jnp.float32)]
    if stride == 2:
        scratch.append(pltpu.VMEM((4, Hp // 2, Wp // 2, Cin), jnp.float32))
    kern = functools.partial(_conv1_shortcut_kernel, stride=stride)
    act = jax.ShapeDtypeStruct((N, Cout, S), jnp.float32)
    stat = jax.ShapeDtypeStruct((N, 4 * Cout, 1), jnp.float32)
    act_spec = pl.BlockSpec((1, Cout, S), lambda n: (n, 0, 0))
    stat_spec = pl.BlockSpec((1, 4 * Cout, 1), lambda n: (n, 0, 0))
    return pl.pallas_call(
        kern,
        out_shape=(act, act, stat),
        grid=(N,),
        in_specs=[pl.BlockSpec((1, H, W, Cin), lambda n: (n, 0, 0, 0)),
                  pl.BlockSpec((Cout, 9 * Cin), lambda n: (0, 0)),
                  pl.BlockSpec((Cout, Cin), lambda n: (0, 0))],
        out_specs=(act_spec, act_spec, stat_spec),
        scratch_shapes=scratch,
        compiler_params=pltpu.CompilerParams(
            dimension_semantics=("parallel",),
            vmem_limit_bytes=VMEM_LIMIT),
    )(x_nhwc, w1m, wsm)


def bnrelu_conv2(c1, scale1, shift1, w2m, Ho, Wo):
    N, C1, S = c1.shape
    C2 = w2m.shape[0]
    L = (Ho + 2) * Wo + 2
    kern = functools.partial(_bnrelu_conv2_kernel, Wo=Wo)
    act = jax.ShapeDtypeStruct((N, C2, S), jnp.float32)
    stat = jax.ShapeDtypeStruct((N, 2 * C2, 1), jnp.float32)
    return pl.pallas_call(
        kern,
        out_shape=(act, stat),
        grid=(N,),
        in_specs=[pl.BlockSpec((1, C1, S), lambda n: (n, 0, 0)),
                  pl.BlockSpec((C1, 1), lambda n: (0, 0)),
                  pl.BlockSpec((C1, 1), lambda n: (0, 0)),
                  pl.BlockSpec((C2, 9 * C1), lambda n: (0, 0))],
        out_specs=(pl.BlockSpec((1, C2, S), lambda n: (n, 0, 0)),
                   pl.BlockSpec((1, 2 * C2, 1), lambda n: (n, 0, 0))),
        scratch_shapes=[pltpu.VMEM((C1, L), jnp.float32)],
        compiler_params=pltpu.CompilerParams(
            dimension_semantics=("parallel",),
            vmem_limit_bytes=VMEM_LIMIT),
    )(c1, scale1, shift1, w2m)


def dual_bn_add_relu(a, b, sa, ba, sb, bb):
    N, C, S = a.shape
    act_spec = pl.BlockSpec((1, C, S), lambda n: (n, 0, 0))
    vec_spec = pl.BlockSpec((C, 1), lambda n: (0, 0))
    return pl.pallas_call(
        _dual_bn_add_relu_kernel,
        out_shape=jax.ShapeDtypeStruct((N, C, S), jnp.float32),
        grid=(N,),
        in_specs=[act_spec, act_spec, vec_spec, vec_spec, vec_spec, vec_spec],
        out_specs=act_spec,
        compiler_params=pltpu.CompilerParams(
            dimension_semantics=("parallel",),
            vmem_limit_bytes=VMEM_LIMIT),
    )(a, b, sa, ba, sb, bb)


# ---------------------------------------------------------------------------
# Parameter prep (one-time weight packing) and BN folding glue
# ---------------------------------------------------------------------------
def prepare_params(params):
    """PyTorch OIHW weights -> im2col layouts, done once (no per-call transpose)."""
    w1, w2, ws = params["w1"], params["w2"], params["ws"]
    # center-tap shortcut reuse in kernel A is only valid for this exact geometry
    assert w1.shape[2:] == (3, 3) and w2.shape[2:] == (3, 3) and ws.shape[2:] == (1, 1)
    cout, cin = w1.shape[0], w1.shape[1]
    return {
        "w1m": jnp.transpose(w1, (0, 2, 3, 1)).reshape(cout, 9 * cin),      # (Cout, 9*Cin)
        "w2m": jnp.transpose(w2, (0, 2, 3, 1)).reshape(w2.shape[0], 9 * w2.shape[1]),
        "wsm": ws[:, :, 0, 0],                                              # (Cout, Cin)
        "g1": params["g1"], "b1": params["b1"],
        "g2": params["g2"], "b2": params["b2"],
        "gs": params["gs"], "bs": params["bs"],
    }


def _bn_fold(psum, psumsq, count, gamma, beta, eps=1e-5):
    # training-mode batch statistics (biased variance), f32 one-pass; clamp guards NaN
    mean = psum / count
    var = jnp.maximum(psumsq / count - mean * mean, 0.0)
    scale = gamma * jax.lax.rsqrt(var + eps)
    shift = beta - mean * scale
    return scale, shift


# ---------------------------------------------------------------------------
# ResBlockP forward
# ---------------------------------------------------------------------------
@functools.partial(jax.jit, static_argnames=("stride",))
def resblock_p_forward(x_nchw, prep, stride):
    assert stride in (1, 2)
    N, Cin, H, W = x_nchw.shape
    if stride == 2:
        assert H % 2 == 0 and W % 2 == 0
    Cout = prep["w1m"].shape[0]
    # 3x3/pad=1 and 1x1/pad=0 convs have identical output geometry for any stride
    Ho = (H - 1) // stride + 1
    Wo = (W - 1) // stride + 1
    S = Ho * Wo

    x_nhwc = jnp.transpose(x_nchw, (0, 2, 3, 1))     # only wrapper-side layout op; no pads

    # conv1 + shortcut conv + packed BN stat partials in one pass over x
    c1, cs, stA = conv1_shortcut(x_nhwc, prep["w1m"], prep["wsm"], stride, Ho, Wo)

    cnt = N * S
    sA = jnp.sum(stA, axis=0)[:, 0]                   # (4*Cout,)
    scale1, shift1 = _bn_fold(sA[:Cout], sA[Cout:2 * Cout], cnt, prep["g1"], prep["b1"])
    scale_s, shift_s = _bn_fold(sA[2 * Cout:3 * Cout], sA[3 * Cout:], cnt,
                                prep["gs"], prep["bs"])

    # conv2 with BN1+ReLU fused into its prologue (padding built in-kernel) + BN2 stats
    c2, stB = bnrelu_conv2(c1, scale1[:, None], shift1[:, None], prep["w2m"], Ho, Wo)
    sB = jnp.sum(stB, axis=0)[:, 0]
    scale2, shift2 = _bn_fold(sB[:Cout], sB[Cout:], cnt, prep["g2"], prep["b2"])

    # final fused BN(c2) + BN(cs) + add + ReLU on lane-dense (N, C, S) blocks
    out = dual_bn_add_relu(c2, cs, scale2[:, None], shift2[:, None],
                           scale_s[:, None], shift_s[:, None])
    return out.reshape(N, Cout, Ho, Wo)               # (N, C, S) -> NCHW, contiguous


# ---------------------------------------------------------------------------
# Pure-JAX reference (mirrors the PyTorch module exactly, NCHW)
# ---------------------------------------------------------------------------
def _ref_conv(x, w, stride, pad):
    return jax.lax.conv_general_dilated(
        x, w, (stride, stride), [(pad, pad), (pad, pad)],
        dimension_numbers=("NCHW", "OIHW", "NCHW"))


def _ref_bn(x, g, b, eps=1e-5):
    m = jnp.mean(x, axis=(0, 2, 3), keepdims=True)
    v = jnp.mean(jnp.square(x - m), axis=(0, 2, 3), keepdims=True)
    return (x - m) / jnp.sqrt(v + eps) * g.reshape(1, -1, 1, 1) + b.reshape(1, -1, 1, 1)


def resblock_p_reference(x, params, stride):
    r = _ref_conv(x, params["w1"], stride, 1)
    r = jnp.maximum(_ref_bn(r, params["g1"], params["b1"]), 0.0)
    r = _ref_conv(r, params["w2"], 1, 1)
    r = _ref_bn(r, params["g2"], params["b2"])
    s = _ref_conv(x, params["ws"], stride, 0)
    s = _ref_bn(s, params["gs"], params["bs"])
    return jnp.maximum(r + s, 0.0)


# ---------------------------------------------------------------------------
def make_params(key, cin, cout):
    k1, k2, k3 = jax.random.split(key, 3)
    return {
        "w1": 0.1 * jax.random.normal(k1, (cout, cin, 3, 3), jnp.float32),
        "g1": jnp.ones((cout,), jnp.float32),
        "b1": jnp.zeros((cout,), jnp.float32),
        "w2": 0.1 * jax.random.normal(k2, (cout, cout, 3, 3), jnp.float32),
        "g2": jnp.ones((cout,), jnp.float32),
        "b2": jnp.zeros((cout,), jnp.float32),
        "ws": 0.1 * jax.random.normal(k3, (cout, cin, 1, 1), jnp.float32),
        "gs": jnp.ones((cout,), jnp.float32),
        "bs": jnp.zeros((cout,), jnp.float32),
    }


if __name__ == "__main__":
    key = jax.random.PRNGKey(0)
    kx, kp = jax.random.split(key)

    N, Cin, Cout, H, W = 2, 4, 8, 16, 16
    x = jax.random.normal(kx, (N, Cin, H, W), jnp.float32)
    params = make_params(kp, Cin, Cout)
    prep = prepare_params(params)   # one-time weight packing

    for stride in (1, 2):
        out = jax.block_until_ready(resblock_p_forward(x, prep, stride))
        ref = jax.block_until_ready(resblock_p_reference(x, params, stride))
        assert out.shape == ref.shape, (out.shape, ref.shape)
        np.testing.assert_allclose(np.asarray(out), np.asarray(ref), rtol=5e-4, atol=5e-4)

    print("KERNEL_OK")
</pallas_src>

<mosaic_0001>
module attributes {stable_mosaic.version = 11 : i64} {
  func.func @_conv1_shortcut_kernel(%arg0: i32, %arg1: memref<1x16x16x4xf32, #tpu.memory_space<vmem>>, %arg2: memref<8x36xf32, #tpu.memory_space<vmem>>, %arg3: memref<8x4xf32, #tpu.memory_space<vmem>>, %arg4: memref<1x8x256xf32, #tpu.memory_space<vmem>>, %arg5: memref<1x8x256xf32, #tpu.memory_space<vmem>>, %arg6: memref<1x32x1xf32, #tpu.memory_space<vmem>>, %arg7: memref<18x18x4xf32, #tpu.memory_space<vmem>>, %arg8: memref<256x36xf32, #tpu.memory_space<vmem>>) attributes {dimension_semantics = [#tpu.dimension_semantics<parallel>], iteration_bounds = array<i64: 2>, scalar_prefetch = 0 : i64, scratch_operands = 2 : i64, tpu.core_type = #tpu.core_type<tc>, window_params = [{transform_indices = @transform_0, window_bounds = array<i64: 1, 16, 16, 4>}, {pipeline_mode = #tpu.pipeline_mode<synchronous>, transform_indices = @transform_1, window_bounds = array<i64: 8, 36>}, {pipeline_mode = #tpu.pipeline_mode<synchronous>, transform_indices = @transform_2, window_bounds = array<i64: 8, 4>}, {transform_indices = @transform_3, window_bounds = array<i64: 1, 8, 256>}, {transform_indices = @transform_4, window_bounds = array<i64: 1, 8, 256>}, {transform_indices = @transform_5, window_bounds = array<i64: 1, 32, 1>}]} {
    %cst = arith.constant 0.000000e+00 : f32
    %0 = vector.broadcast %cst : f32 to vector<18x18x4xf32>
    %c0 = arith.constant 0 : index
    %c0_0 = arith.constant 0 : index
    %c0_1 = arith.constant 0 : index
    %1 = vector.load %arg7[%c0, %c0_0, %c0_1] : memref<18x18x4xf32, #tpu.memory_space<vmem>>, vector<18x18x4xf32>
    tpu.vector_store %arg7[%c0, %c0_0, %c0_1], %0 {strides = array<i32>} : memref<18x18x4xf32, #tpu.memory_space<vmem>>, vector<18x18x4xf32>,
    %c0_2 = arith.constant 0 : index
    %c0_3 = arith.constant 0 : index
    %c0_4 = arith.constant 0 : index
    %c0_5 = arith.constant 0 : index
    %2 = vector.load %arg1[%c0_2, %c0_3, %c0_4, %c0_5] : memref<1x16x16x4xf32, #tpu.memory_space<vmem>>, vector<1x16x16x4xf32>
    %3 = vector.shape_cast %2 : vector<1x16x16x4xf32> to vector<16x16x4xf32>
    %c1 = arith.constant 1 : index
    %c1_6 = arith.constant 1 : index
    %c0_7 = arith.constant 0 : index
    %4 = vector.load %arg7[%c1, %c1_6, %c0_7] : memref<18x18x4xf32, #tpu.memory_space<vmem>>, vector<16x16x4xf32>
    tpu.vector_store %arg7[%c1, %c1_6, %c0_7], %3 {strides = array<i32>} : memref<18x18x4xf32, #tpu.memory_space<vmem>>, vector<16x16x4xf32>,
    %c0_8 = arith.constant 0 : index
    %c0_9 = arith.constant 0 : index
    %c0_10 = arith.constant 0 : index
    %5 = vector.load %arg7[%c0_8, %c0_9, %c0_10] : memref<18x18x4xf32, #tpu.memory_space<vmem>>, vector<16x16x4xf32>
    %6 = vector.shape_cast %5 : vector<16x16x4xf32> to vector<256x4xf32>
    %c0_11 = arith.constant 0 : index
    %c0_12 = arith.constant 0 : index
    %7 = vector.load %arg8[%c0_11, %c0_12] : memref<256x36xf32, #tpu.memory_space<vmem>>, vector<256x4xf32>
    tpu.vector_store %arg8[%c0_11, %c0_12], %6 {strides = array<i32>} : memref<256x36xf32, #tpu.memory_space<vmem>>, vector<256x4xf32>,
    %c0_13 = arith.constant 0 : index
    %c1_14 = arith.constant 1 : index
    %c0_15 = arith.constant 0 : index
    %8 = vector.load %arg7[%c0_13, %c1_14, %c0_15] : memref<18x18x4xf32, #tpu.memory_space<vmem>>, vector<16x16x4xf32>
    %9 = vector.shape_cast %8 : vector<16x16x4xf32> to vector<256x4xf32>
    %c0_16 = arith.constant 0 : index
    %c4 = arith.constant 4 : index
    %10 = vector.load %arg8[%c0_16, %c4] : memref<256x36xf32, #tpu.memory_space<vmem>>, vector<256x4xf32>
    tpu.vector_store %arg8[%c0_16, %c4], %9 {strides = array<i32>} : memref<256x36xf32, #tpu.memory_space<vmem>>, vector<256x4xf32>,
    %c0_17 = arith.constant 0 : index
    %c2 = arith.constant 2 : index
    %c0_18 = arith.constant 0 : index
    %11 = vector.load %arg7[%c0_17, %c2, %c0_18] : memref<18x18x4xf32, #tpu.memory_space<vmem>>, vector<16x16x4xf32>
    %12 = vector.shape_cast %11 : vector<16x16x4xf32> to vector<256x4xf32>
    %c0_19 = arith.constant 0 : index
    %c8 = arith.constant 8 : index
    %13 = vector.load %arg8[%c0_19, %c8] : memref<256x36xf32, #tpu.memory_space<vmem>>, vector<256x4xf32>
    tpu.vector_store %arg8[%c0_19, %c8], %12 {strides = array<i32>} : memref<256x36xf32, #tpu.memory_space<vmem>>, vector<256x4xf32>,
    %c1_20 = arith.constant 1 : index
    %c0_21 = arith.constant 0 : index
    %c0_22 = arith.constant 0 : index
    %14 = vector.load %arg7[%c1_20, %c0_21, %c0_22] : memref<18x18x4xf32, #tpu.memory_space<vmem>>, vector<16x16x4xf32>
    %15 = vector.shape_cast %14 : vector<16x16x4xf32> to vector<256x4xf32>
    %c0_23 = arith.constant 0 : index
    %c12 = arith.constant 12 : index
    %16 = vector.load %arg8[%c0_23, %c12] : memref<256x36xf32, #tpu.memory_space<vmem>>, vector<256x4xf32>
    tpu.vector_store %arg8[%c0_23, %c12], %15 {strides = array<i32>} : memref<256x36xf32, #tpu.memory_space<vmem>>, vector<256x4xf32>,
    %c1_24 = arith.constant 1 : index
    %c1_25 = arith.constant 1 : index
    %c0_26 = arith.constant 0 : index
    %17 = vector.load %arg7[%c1_24, %c1_25, %c0_26] : memref<18x18x4xf32, #tpu.memory_space<vmem>>, vector<16x16x4xf32>
    %18 = vector.shape_cast %17 : vector<16x16x4xf32> to vector<256x4xf32>
    %c0_27 = arith.constant 0 : index
    %c16 = arith.constant 16 : index
    %19 = vector.load %arg8[%c0_27, %c16] : memref<256x36xf32, #tpu.memory_space<vmem>>, vector<256x4xf32>
    tpu.vector_store %arg8[%c0_27, %c16], %18 {strides = array<i32>} : memref<256x36xf32, #tpu.memory_space<vmem>>, vector<256x4xf32>,
    %c1_28 = arith.constant 1 : index
    %c2_29 = arith.constant 2 : index
    %c0_30 = arith.constant 0 : index
    %20 = vector.load %arg7[%c1_28, %c2_29, %c0_30] : memref<18x18x4xf32, #tpu.memory_space<vmem>>, vector<16x16x4xf32>
    %21 = vector.shape_cast %20 : vector<16x16x4xf32> to vector<256x4xf32>
    %c0_31 = arith.constant 0 : index
    %c20 = arith.constant 20 : index
    %22 = vector.load %arg8[%c0_31, %c20] : memref<256x36xf32, #tpu.memory_space<vmem>>, vector<256x4xf32>
    tpu.vector_store %arg8[%c0_31, %c20], %21 {strides = array<i32>} : memref<256x36xf32, #tpu.memory_space<vmem>>, vector<256x4xf32>,
    %c2_32 = arith.constant 2 : index
    %c0_33 = arith.constant 0 : index
    %c0_34 = arith.constant 0 : index
    %23 = vector.load %arg7[%c2_32, %c0_33, %c0_34] : memref<18x18x4xf32, #tpu.memory_space<vmem>>, vector<16x16x4xf32>
    %24 = vector.shape_cast %23 : vector<16x16x4xf32> to vector<256x4xf32>
    %c0_35 = arith.constant 0 : index
    %c24 = arith.constant 24 : index
    %25 = vector.load %arg8[%c0_35, %c24] : memref<256x36xf32, #tpu.memory_space<vmem>>, vector<256x4xf32>
    tpu.vector_store %arg8[%c0_35, %c24], %24 {strides = array<i32>} : memref<256x36xf32, #tpu.memory_space<vmem>>, vector<256x4xf32>,
    %c2_36 = arith.constant 2 : index
    %c1_37 = arith.constant 1 : index
    %c0_38 = arith.constant 0 : index
    %26 = vector.load %arg7[%c2_36, %c1_37, %c0_38] : memref<18x18x4xf32, #tpu.memory_space<vmem>>, vector<16x16x4xf32>
    %27 = vector.shape_cast %26 : vector<16x16x4xf32> to vector<256x4xf32>
    %c0_39 = arith.constant 0 : index
    %c28 = arith.constant 28 : index
    %28 = vector.load %arg8[%c0_39, %c28] : memref<256x36xf32, #tpu.memory_space<vmem>>, vector<256x4xf32>
    tpu.vector_store %arg8[%c0_39, %c28], %27 {strides = array<i32>} : memref<256x36xf32, #tpu.memory_space<vmem>>, vector<256x4xf32>,
    %c2_40 = arith.constant 2 : index
    %c2_41 = arith.constant 2 : index
    %c0_42 = arith.constant 0 : index
    %29 = vector.load %arg7[%c2_40, %c2_41, %c0_42] : memref<18x18x4xf32, #tpu.memory_space<vmem>>, vector<16x16x4xf32>
    %30 = vector.shape_cast %29 : vector<16x16x4xf32> to vector<256x4xf32>
    %c0_43 = arith.constant 0 : index
    %c32 = arith.constant 32 : index
    %31 = vector.load %arg8[%c0_43, %c32] : memref<256x36xf32, #tpu.memory_space<vmem>>, vector<256x4xf32>
    tpu.vector_store %arg8[%c0_43, %c32], %30 {strides = array<i32>} : memref<256x36xf32, #tpu.memory_space<vmem>>, vector<256x4xf32>,
    %c0_44 = arith.constant 0 : index
    %c0_45 = arith.constant 0 : index
    %32 = vector.load %arg2[%c0_44, %c0_45] : memref<8x36xf32, #tpu.memory_space<vmem>>, vector<8x36xf32>
    %c0_46 = arith.constant 0 : index
    %c0_47 = arith.constant 0 : index
    %33 = vector.load %arg8[%c0_46, %c0_47] : memref<256x36xf32, #tpu.memory_space<vmem>>, vector<256x36xf32>
    %cst_48 = arith.constant dense<0.000000e+00> : vector<8x256xf32>
    %34 = tpu.matmul %32, %33, %cst_48 {dimension_numbers = #tpu.dot_dimension_numbers<[1], [1], [0], [0], [0, 0, 1, 0], [], []>} : vector<8x36xf32>, vector<256x36xf32>, vector<8x256xf32> -> vector<8x256xf32>
    %c0_49 = arith.constant 0 : index
    %c0_50 = arith.constant 0 : index
    %35 = vector.load %arg3[%c0_49, %c0_50] : memref<8x4xf32, #tpu.memory_space<vmem>>, vector<8x4xf32>
    %cst_51 = arith.constant dense<0.000000e+00> : vector<8x256xf32>
    %36 = tpu.matmul %35, %18, %cst_51 {dimension_numbers = #tpu.dot_dimension_numbers<[1], [1], [0], [0], [0, 0, 1, 0], [], []>} : vector<8x4xf32>, vector<256x4xf32>, vector<8x256xf32> -> vector<8x256xf32>
    %c0_52 = arith.constant 0 : index
    %c0_53 = arith.constant 0 : index
    %c0_54 = arith.constant 0 : index
    %37 = vector.load %arg4[%c0_52, %c0_53, %c0_54] : memref<1x8x256xf32, #tpu.memory_space<vmem>>, vector<1x8x256xf32>
    %38 = vector.shape_cast %37 : vector<1x8x256xf32> to vector<8x256xf32>
    %39 = vector.shape_cast %34 : vector<8x256xf32> to vector<1x8x256xf32>
    tpu.vector_store %arg4[%c0_52, %c0_53, %c0_54], %39 {strides = array<i32>} : memref<1x8x256xf32, #tpu.memory_space<vmem>>, vector<1x8x256xf32>,
    %c0_55 = arith.constant 0 : index
    %c0_56 = arith.constant 0 : index
    %c0_57 = arith.constant 0 : index
    %40 = vector.load %arg5[%c0_55, %c0_56, %c0_57] : memref<1x8x256xf32, #tpu.memory_space<vmem>>, vector<1x8x256xf32>
    %41 = vector.shape_cast %40 : vector<1x8x256xf32> to vector<8x256xf32>
    %42 = vector.shape_cast %36 : vector<8x256xf32> to vector<1x8x256xf32>
    tpu.vector_store %arg5[%c0_55, %c0_56, %c0_57], %42 {strides = array<i32>} : memref<1x8x256xf32, #tpu.memory_space<vmem>>, vector<1x8x256xf32>,
    %43 = arith.mulf %34, %34 : vector<8x256xf32>
    %44 = arith.mulf %36, %36 : vector<8x256xf32>
    %45 = tpu.concatenate %34, %43, %36, %44 in 0 : vector<8x256xf32>, vector<8x256xf32>, vector<8x256xf32>, vector<8x256xf32> -> vector<32x256xf32>
    %cst_58 = arith.constant dense<0.000000e+00> : vector<32xf32>
    %46 = vector.multi_reduction <add>, %45, %cst_58 [1] : vector<32x256xf32> to vector<32xf32>
    %47 = vector.shape_cast %46 : vector<32xf32> to vector<32x1xf32>
    %c0_59 = arith.constant 0 : index
    %c0_60 = arith.constant 0 : index
    %c0_61 = arith.constant 0 : index
    %48 = vector.load %arg6[%c0_59, %c0_60, %c0_61] : memref<1x32x1xf32, #tpu.memory_space<vmem>>, vector<1x32x1xf32>
    %49 = vector.shape_cast %48 : vector<1x32x1xf32> to vector<32x1xf32>
    %50 = vector.shape_cast %47 : vector<32x1xf32> to vector<1x32x1xf32>
    tpu.vector_store %arg6[%c0_59, %c0_60, %c0_61], %50 {strides = array<i32>} : memref<1x32x1xf32, #tpu.memory_space<vmem>>, vector<1x32x1xf32>,
    return
  }
  func.func @transform_0(%arg0: i32) -> (i32, i32, i32, i32) {
    %c0_i32 = arith.constant 0 : i32
    %c0_i32_0 = arith.constant 0 : i32
    %c0_i32_1 = arith.constant 0 : i32
    %c0_i32_2 = arith.constant 0 : i32
    return %arg0, %c0_i32, %c0_i32_0, %c0_i32_1 : i32, i32, i32, i32
  }
  func.func @transform_1(%arg0: i32) -> (i32, i32) {
    %c0_i32 = arith.constant 0 : i32
    %c0_i32_0 = arith.constant 0 : i32
    %c0_i32_1 = arith.constant 0 : i32
    return %c0_i32, %c0_i32_0 : i32, i32
  }
  func.func @transform_2(%arg0: i32) -> (i32, i32) {
    %c0_i32 = arith.constant 0 : i32
    %c0_i32_0 = arith.constant 0 : i32
    %c0_i32_1 = arith.constant 0 : i32
    return %c0_i32, %c0_i32_0 : i32, i32
  }
  func.func @transform_3(%arg0: i32) -> (i32, i32, i32) {
    %c0_i32 = arith.constant 0 : i32
    %c0_i32_0 = arith.constant 0 : i32
    %c0_i32_1 = arith.constant 0 : i32
    return %arg0, %c0_i32, %c0_i32_0 : i32, i32, i32
  }
  func.func @transform_4(%arg0: i32) -> (i32, i32, i32) {
    %c0_i32 = arith.constant 0 : i32
    %c0_i32_0 = arith.constant 0 : i32
    %c0_i32_1 = arith.constant 0 : i32
    return %arg0, %c0_i32, %c0_i32_0 : i32, i32, i32
  }
  func.func @transform_5(%arg0: i32) -> (i32, i32, i32) {
    %c0_i32 = arith.constant 0 : i32
    %c0_i32_0 = arith.constant 0 : i32
    %c0_i32_1 = arith.constant 0 : i32
    return %arg0, %c0_i32, %c0_i32_0 : i32, i32, i32
  }
}

module attributes {stable_mosaic.version = 11 : i64} {
  func.func @_bnrelu_conv2_kernel(%arg0: i32, %arg1: memref<1x8x256xf32, #tpu.memory_space<vmem>>, %arg2: memref<8x1xf32, #tpu.memory_space<vmem>>, %arg3: memref<8x1xf32, #tpu.memory_space<vmem>>, %arg4: memref<8x72xf32, #tpu.memory_space<vmem>>, %arg5: memref<1x8x256xf32, #tpu.memory_space<vmem>>, %arg6: memref<1x16x1xf32, #tpu.memory_space<vmem>>, %arg7: memref<8x290xf32, #tpu.memory_space<vmem>>) attributes {dimension_semantics = [#tpu.dimension_semantics<parallel>], iteration_bounds = array<i64: 2>, scalar_prefetch = 0 : i64, scratch_operands = 1 : i64, tpu.core_type = #tpu.core_type<tc>, window_params = [{transform_indices = @transform_0, window_bounds = array<i64: 1, 8, 256>}, {pipeline_mode = #tpu.pipeline_mode<synchronous>, transform_indices = @transform_1, window_bounds = array<i64: 8, 1>}, {pipeline_mode = #tpu.pipeline_mode<synchronous>, transform_indices = @transform_2, window_bounds = array<i64: 8, 1>}, {pipeline_mode = #tpu.pipeline_mode<synchronous>, transform_indices = @transform_3, window_bounds = array<i64: 8, 72>}, {transform_indices = @transform_4, window_bounds = array<i64: 1, 8, 256>}, {transform_indices = @transform_5, window_bounds = array<i64: 1, 16, 1>}]} {
    %c0 = arith.constant 0 : index
    %c0_0 = arith.constant 0 : index
    %c0_1 = arith.constant 0 : index
    %0 = vector.load %arg1[%c0, %c0_0, %c0_1] : memref<1x8x256xf32, #tpu.memory_space<vmem>>, vector<1x8x256xf32>
    %1 = vector.shape_cast %0 : vector<1x8x256xf32> to vector<8x256xf32>
    %c0_2 = arith.constant 0 : index
    %c0_3 = arith.constant 0 : index
    %2 = vector.load %arg2[%c0_2, %c0_3] : memref<8x1xf32, #tpu.memory_space<vmem>>, vector<8x1xf32>
    %3 = vector.broadcast %2 : vector<8x1xf32> to vector<8x256xf32>
    %4 = arith.mulf %1, %3 : vector<8x256xf32>
    %c0_4 = arith.constant 0 : index
    %c0_5 = arith.constant 0 : index
    %5 = vector.load %arg3[%c0_4, %c0_5] : memref<8x1xf32, #tpu.memory_space<vmem>>, vector<8x1xf32>
    %6 = vector.broadcast %5 : vector<8x1xf32> to vector<8x256xf32>
    %7 = arith.addf %4, %6 : vector<8x256xf32>
    %cst = arith.constant 0.000000e+00 : f32
    %8 = vector.broadcast %cst : f32 to vector<8x256xf32>
    %9 = arith.maximumf %7, %8 : vector<8x256xf32>
    %cst_6 = arith.constant 0.000000e+00 : f32
    %10 = vector.broadcast %cst_6 : f32 to vector<8x290xf32>
    %c0_7 = arith.constant 0 : index
    %c0_8 = arith.constant 0 : index
    %11 = vector.load %arg7[%c0_7, %c0_8] : memref<8x290xf32, #tpu.memory_space<vmem>>, vector<8x290xf32>
    tpu.vector_store %arg7[%c0_7, %c0_8], %10 {strides = array<i32>} : memref<8x290xf32, #tpu.memory_space<vmem>>, vector<8x290xf32>,
    %c0_9 = arith.constant 0 : index
    %c17 = arith.constant 17 : index
    %12 = vector.load %arg7[%c0_9, %c17] : memref<8x290xf32, #tpu.memory_space<vmem>>, vector<8x256xf32>
    tpu.vector_store %arg7[%c0_9, %c17], %9 {strides = array<i32>} : memref<8x290xf32, #tpu.memory_space<vmem>>, vector<8x256xf32>,
    %13 = tpu.iota {dimensions = array<i32: 1>} : vector<1x256xi32>
    %c16_i32 = arith.constant 16 : i32
    %c0_i32 = arith.constant 0 : i32
    %14 = arith.cmpi eq, %c16_i32, %c0_i32 : i32
    %c1_i32 = arith.constant 1 : i32
    %15 = arith.select %14, %c1_i32, %c16_i32 : i32
    %16 = vector.broadcast %15 : i32 to vector<1x256xi32>
    %17 = arith.remsi %13, %16 : vector<1x256xi32>
    %c0_i32_10 = arith.constant 0 : i32
    %18 = vector.broadcast %c0_i32_10 : i32 to vector<1x256xi32>
    %19 = arith.cmpi ne, %17, %18 : vector<1x256xi32>
    %c0_i32_11 = arith.constant 0 : i32
    %20 = vector.broadcast %c0_i32_11 : i32 to vector<1x256xi32>
    %21 = arith.cmpi slt, %17, %20 : vector<1x256xi32>
    %c0_i32_12 = arith.constant 0 : i32
    %22 = arith.cmpi slt, %15, %c0_i32_12 : i32
    %23 = vector.broadcast %22 : i1 to vector<1x256xi1>
    %24 = vector.broadcast %23 : vector<1x256xi1> to vector<1x256xi1>
    %25 = arith.xori %21, %24 : vector<1x256xi1>
    %26 = arith.andi %25, %19 : vector<1x256xi1>
    %27 = vector.broadcast %15 : i32 to vector<1x256xi32>
    %28 = arith.addi %17, %27 : vector<1x256xi32>
    %29 = arith.select %26, %28, %17 : vector<1x256xi1>, vector<1x256xi32>
    %c0_i32_13 = arith.constant 0 : i32
    %30 = vector.broadcast %c0_i32_13 : i32 to vector<1x256xi32>
    %31 = arith.cmpi ne, %29, %30 : vector<1x256xi32>
    %c15_i32 = arith.constant 15 : i32
    %32 = vector.broadcast %c15_i32 : i32 to vector<1x256xi32>
    %33 = arith.cmpi ne, %29, %32 : vector<1x256xi32>
    %c0_14 = arith.constant 0 : index
    %c0_15 = arith.constant 0 : index
    %34 = vector.load %arg7[%c0_14, %c0_15] : memref<8x290xf32, #tpu.memory_space<vmem>>, vector<8x256xf32>
    %cst_16 = arith.constant 0.000000e+00 : f32
    %35 = vector.shape_cast %31 : vector<1x256xi1> to vector<1x256xi1>
    %36 = vector.broadcast %35 : vector<1x256xi1> to vector<8x256xi1>
    %37 = vector.broadcast %cst_16 : f32 to vector<8x256xf32>
    %38 = arith.select %36, %34, %37 : vector<8x256xi1>, vector<8x256xf32>
    %c0_17 = arith.constant 0 : index
    %c1 = arith.constant 1 : index
    %39 = vector.load %arg7[%c0_17, %c1] : memref<8x290xf32, #tpu.memory_space<vmem>>, vector<8x256xf32>
    %c0_18 = arith.constant 0 : index
    %c2 = arith.constant 2 : index
    %40 = vector.load %arg7[%c0_18, %c2] : memref<8x290xf32, #tpu.memory_space<vmem>>, vector<8x256xf32>
    %cst_19 = arith.constant 0.000000e+00 : f32
    %41 = vector.shape_cast %33 : vector<1x256xi1> to vector<1x256xi1>
    %42 = vector.broadcast %41 : vector<1x256xi1> to vector<8x256xi1>
    %43 = vector.broadcast %cst_19 : f32 to vector<8x256xf32>
    %44 = arith.select %42, %40, %43 : vector<8x256xi1>, vector<8x256xf32>
    %c0_20 = arith.constant 0 : index
    %c16 = arith.constant 16 : index
    %45 = vector.load %arg7[%c0_20, %c16] : memref<8x290xf32, #tpu.memory_space<vmem>>, vector<8x256xf32>
    %cst_21 = arith.constant 0.000000e+00 : f32
    %46 = vector.shape_cast %31 : vector<1x256xi1> to vector<1x256xi1>
    %47 = vector.broadcast %46 : vector<1x256xi1> to vector<8x256xi1>
    %48 = vector.broadcast %cst_21 : f32 to vector<8x256xf32>
    %49 = arith.select %47, %45, %48 : vector<8x256xi1>, vector<8x256xf32>
    %c0_22 = arith.constant 0 : index
    %c17_23 = arith.constant 17 : index
    %50 = vector.load %arg7[%c0_22, %c17_23] : memref<8x290xf32, #tpu.memory_space<vmem>>, vector<8x256xf32>
    %c0_24 = arith.constant 0 : index
    %c18 = arith.constant 18 : index
    %51 = vector.load %arg7[%c0_24, %c18] : memref<8x290xf32, #tpu.memory_space<vmem>>, vector<8x256xf32>
    %cst_25 = arith.constant 0.000000e+00 : f32
    %52 = vector.shape_cast %33 : vector<1x256xi1> to vector<1x256xi1>
    %53 = vector.broadcast %52 : vector<1x256xi1> to vector<8x256xi1>
    %54 = vector.broadcast %cst_25 : f32 to vector<8x256xf32>
    %55 = arith.select %53, %51, %54 : vector<8x256xi1>, vector<8x256xf32>
    %c0_26 = arith.constant 0 : index
    %c32 = arith.constant 32 : index
    %56 = vector.load %arg7[%c0_26, %c32] : memref<8x290xf32, #tpu.memory_space<vmem>>, vector<8x256xf32>
    %cst_27 = arith.constant 0.000000e+00 : f32
    %57 = vector.shape_cast %31 : vector<1x256xi1> to vector<1x256xi1>
    %58 = vector.broadcast %57 : vector<1x256xi1> to vector<8x256xi1>
    %59 = vector.broadcast %cst_27 : f32 to vector<8x256xf32>
    %60 = arith.select %58, %56, %59 : vector<8x256xi1>, vector<8x256xf32>
    %c0_28 = arith.constant 0 : index
    %c33 = arith.constant 33 : index
    %61 = vector.load %arg7[%c0_28, %c33] : memref<8x290xf32, #tpu.memory_space<vmem>>, vector<8x256xf32>
    %c0_29 = arith.constant 0 : index
    %c34 = arith.constant 34 : index
    %62 = vector.load %arg7[%c0_29, %c34] : memref<8x290xf32, #tpu.memory_space<vmem>>, vector<8x256xf32>
    %cst_30 = arith.constant 0.000000e+00 : f32
    %63 = vector.shape_cast %33 : vector<1x256xi1> to vector<1x256xi1>
    %64 = vector.broadcast %63 : vector<1x256xi1> to vector<8x256xi1>
    %65 = vector.broadcast %cst_30 : f32 to vector<8x256xf32>
    %66 = arith.select %64, %62, %65 : vector<8x256xi1>, vector<8x256xf32>
    %67 = tpu.concatenate %38, %39, %44, %49, %50, %55, %60, %61, %66 in 0 : vector<8x256xf32>, vector<8x256xf32>, vector<8x256xf32>, vector<8x256xf32>, vector<8x256xf32>, vector<8x256xf32>, vector<8x256xf32>, vector<8x256xf32>, vector<8x256xf32> -> vector<72x256xf32>
    %c0_31 = arith.constant 0 : index
    %c0_32 = arith.constant 0 : index
    %68 = vector.load %arg4[%c0_31, %c0_32] : memref<8x72xf32, #tpu.memory_space<vmem>>, vector<8x72xf32>
    %cst_33 = arith.constant dense<0.000000e+00> : vector<8x256xf32>
    %69 = tpu.matmul %68, %67, %cst_33 {dimension_numbers = #tpu.dot_dimension_numbers<[1], [0], [0], [1], [0, 0, 1, 1], [], []>} : vector<8x72xf32>, vector<72x256xf32>, vector<8x256xf32> -> vector<8x256xf32>
    %c0_34 = arith.constant 0 : index
    %c0_35 = arith.constant 0 : index
    %c0_36 = arith.constant 0 : index
    %70 = vector.load %arg5[%c0_34, %c0_35, %c0_36] : memref<1x8x256xf32, #tpu.memory_space<vmem>>, vector<1x8x256xf32>
    %71 = vector.shape_cast %70 : vector<1x8x256xf32> to vector<8x256xf32>
    %72 = vector.shape_cast %69 : vector<8x256xf32> to vector<1x8x256xf32>
    tpu.vector_store %arg5[%c0_34, %c0_35, %c0_36], %72 {strides = array<i32>} : memref<1x8x256xf32, #tpu.memory_space<vmem>>, vector<1x8x256xf32>,
    %73 = arith.mulf %69, %69 : vector<8x256xf32>
    %74 = tpu.concatenate %69, %73 in 0 : vector<8x256xf32>, vector<8x256xf32> -> vector<16x256xf32>
    %cst_37 = arith.constant dense<0.000000e+00> : vector<16xf32>
    %75 = vector.multi_reduction <add>, %74, %cst_37 [1] : vector<16x256xf32> to vector<16xf32>
    %76 = vector.shape_cast %75 : vector<16xf32> to vector<16x1xf32>
    %c0_38 = arith.constant 0 : index
    %c0_39 = arith.constant 0 : index
    %c0_40 = arith.constant 0 : index
    %77 = vector.load %arg6[%c0_38, %c0_39, %c0_40] : memref<1x16x1xf32, #tpu.memory_space<vmem>>, vector<1x16x1xf32>
    %78 = vector.shape_cast %77 : vector<1x16x1xf32> to vector<16x1xf32>
    %79 = vector.shape_cast %76 : vector<16x1xf32> to vector<1x16x1xf32>
    tpu.vector_store %arg6[%c0_38, %c0_39, %c0_40], %79 {strides = array<i32>} : memref<1x16x1xf32, #tpu.memory_space<vmem>>, vector<1x16x1xf32>,
    return
  }
  func.func @transform_0(%arg0: i32) -> (i32, i32, i32) {
    %c0_i32 = arith.constant 0 : i32
    %c0_i32_0 = arith.constant 0 : i32
    %c0_i32_1 = arith.constant 0 : i32
    return %arg0, %c0_i32, %c0_i32_0 : i32, i32, i32
  }
  func.func @transform_1(%arg0: i32) -> (i32, i32) {
    %c0_i32 = arith.constant 0 : i32
    %c0_i32_0 = arith.constant 0 : i32
    %c0_i32_1 = arith.constant 0 : i32
    return %c0_i32, %c0_i32_0 : i32, i32
  }
  func.func @transform_2(%arg0: i32) -> (i32, i32) {
    %c0_i32 = arith.constant 0 : i32
    %c0_i32_0 = arith.constant 0 : i32
    %c0_i32_1 = arith.constant 0 : i32
    return %c0_i32, %c0_i32_0 : i32, i32
  }
  func.func @transform_3(%arg0: i32) -> (i32, i32) {
    %c0_i32 = arith.constant 0 : i32
    %c0_i32_0 = arith.constant 0 : i32
    %c0_i32_1 = arith.constant 0 : i32
    return %c0_i32, %c0_i32_0 : i32, i32
  }
  func.func @transform_4(%arg0: i32) -> (i32, i32, i32) {
    %c0_i32 = arith.constant 0 : i32
    %c0_i32_0 = arith.constant 0 : i32
    %c0_i32_1 = arith.constant 0 : i32
    return %arg0, %c0_i32, %c0_i32_0 : i32, i32, i32
  }
  func.func @transform_5(%arg0: i32) -> (i32, i32, i32) {
    %c0_i32 = arith.constant 0 : i32
    %c0_i32_0 = arith.constant 0 : i32
    %c0_i32_1 = arith.constant 0 : i32
    return %arg0, %c0_i32, %c0_i32_0 : i32, i32, i32
  }
}

module attributes {stable_mosaic.version = 11 : i64} {
  func.func @_dual_bn_add_relu_kernel(%arg0: i32, %arg1: memref<1x8x256xf32, #tpu.memory_space<vmem>>, %arg2: memref<1x8x256xf32, #tpu.memory_space<vmem>>, %arg3: memref<8x1xf32, #tpu.memory_space<vmem>>, %arg4: memref<8x1xf32, #tpu.memory_space<vmem>>, %arg5: memref<8x1xf32, #tpu.memory_space<vmem>>, %arg6: memref<8x1xf32, #tpu.memory_space<vmem>>, %arg7: memref<1x8x256xf32, #tpu.memory_space<vmem>>) attributes {dimension_semantics = [#tpu.dimension_semantics<parallel>], iteration_bounds = array<i64: 2>, scalar_prefetch = 0 : i64, scratch_operands = 0 : i64, tpu.core_type = #tpu.core_type<tc>, window_params = [{transform_indices = @transform_0, window_bounds = array<i64: 1, 8, 256>}, {transform_indices = @transform_1, window_bounds = array<i64: 1, 8, 256>}, {pipeline_mode = #tpu.pipeline_mode<synchronous>, transform_indices = @transform_2, window_bounds = array<i64: 8, 1>}, {pipeline_mode = #tpu.pipeline_mode<synchronous>, transform_indices = @transform_3, window_bounds = array<i64: 8, 1>}, {pipeline_mode = #tpu.pipeline_mode<synchronous>, transform_indices = @transform_4, window_bounds = array<i64: 8, 1>}, {pipeline_mode = #tpu.pipeline_mode<synchronous>, transform_indices = @transform_5, window_bounds = array<i64: 8, 1>}, {transform_indices = @transform_6, window_bounds = array<i64: 1, 8, 256>}]} {
    %c0 = arith.constant 0 : index
    %c0_0 = arith.constant 0 : index
    %c0_1 = arith.constant 0 : index
    %0 = vector.load %arg1[%c0, %c0_0, %c0_1] : memref<1x8x256xf32, #tpu.memory_space<vmem>>, vector<1x8x256xf32>
    %1 = vector.shape_cast %0 : vector<1x8x256xf32> to vector<8x256xf32>
    %c0_2 = arith.constant 0 : index
    %c0_3 = arith.constant 0 : index
    %2 = vector.load %arg3[%c0_2, %c0_3] : memref<8x1xf32, #tpu.memory_space<vmem>>, vector<8x1xf32>
    %3 = vector.broadcast %2 : vector<8x1xf32> to vector<8x256xf32>
    %4 = arith.mulf %1, %3 : vector<8x256xf32>
    %c0_4 = arith.constant 0 : index
    %c0_5 = arith.constant 0 : index
    %5 = vector.load %arg4[%c0_4, %c0_5] : memref<8x1xf32, #tpu.memory_space<vmem>>, vector<8x1xf32>
    %6 = vector.broadcast %5 : vector<8x1xf32> to vector<8x256xf32>
    %7 = arith.addf %4, %6 : vector<8x256xf32>
    %c0_6 = arith.constant 0 : index
    %c0_7 = arith.constant 0 : index
    %c0_8 = arith.constant 0 : index
    %8 = vector.load %arg2[%c0_6, %c0_7, %c0_8] : memref<1x8x256xf32, #tpu.memory_space<vmem>>, vector<1x8x256xf32>
    %9 = vector.shape_cast %8 : vector<1x8x256xf32> to vector<8x256xf32>
    %c0_9 = arith.constant 0 : index
    %c0_10 = arith.constant 0 : index
    %10 = vector.load %arg5[%c0_9, %c0_10] : memref<8x1xf32, #tpu.memory_space<vmem>>, vector<8x1xf32>
    %11 = vector.broadcast %10 : vector<8x1xf32> to vector<8x256xf32>
    %12 = arith.mulf %9, %11 : vector<8x256xf32>
    %13 = arith.addf %7, %12 : vector<8x256xf32>
    %c0_11 = arith.constant 0 : index
    %c0_12 = arith.constant 0 : index
    %14 = vector.load %arg6[%c0_11, %c0_12] : memref<8x1xf32, #tpu.memory_space<vmem>>, vector<8x1xf32>
    %15 = vector.broadcast %14 : vector<8x1xf32> to vector<8x256xf32>
    %16 = arith.addf %13, %15 : vector<8x256xf32>
    %cst = arith.constant 0.000000e+00 : f32
    %17 = vector.broadcast %cst : f32 to vector<8x256xf32>
    %18 = arith.maximumf %16, %17 : vector<8x256xf32>
    %c0_13 = arith.constant 0 : index
    %c0_14 = arith.constant 0 : index
    %c0_15 = arith.constant 0 : index
    %19 = vector.load %arg7[%c0_13, %c0_14, %c0_15] : memref<1x8x256xf32, #tpu.memory_space<vmem>>, vector<1x8x256xf32>
    %20 = vector.shape_cast %19 : vector<1x8x256xf32> to vector<8x256xf32>
    %21 = vector.shape_cast %18 : vector<8x256xf32> to vector<1x8x256xf32>
    tpu.vector_store %arg7[%c0_13, %c0_14, %c0_15], %21 {strides = array<i32>} : memref<1x8x256xf32, #tpu.memory_space<vmem>>, vector<1x8x256xf32>,
    return
  }
  func.func @transform_0(%arg0: i32) -> (i32, i32, i32) {
    %c0_i32 = arith.constant 0 : i32
    %c0_i32_0 = arith.constant 0 : i32
    %c0_i32_1 = arith.constant 0 : i32
    return %arg0, %c0_i32, %c0_i32_0 : i32, i32, i32
  }
  func.func @transform_1(%arg0: i32) -> (i32, i32, i32) {
    %c0_i32 = arith.constant 0 : i32
    %c0_i32_0 = arith.constant 0 : i32
    %c0_i32_1 = arith.constant 0 : i32
    return %arg0, %c0_i32, %c0_i32_0 : i32, i32, i32
  }
  func.func @transform_2(%arg0: i32) -> (i32, i32) {
    %c0_i32 = arith.constant 0 : i32
    %c0_i32_0 = arith.constant 0 : i32
    %c0_i32_1 = arith.constant 0 : i32
    return %c0_i32, %c0_i32_0 : i32, i32
  }
  func.func @transform_3(%arg0: i32) -> (i32, i32) {
    %c0_i32 = arith.constant 0 : i32
    %c0_i32_0 = arith.constant 0 : i32
    %c0_i32_1 = arith.constant 0 : i32
    return %c0_i32, %c0_i32_0 : i32, i32
  }
  func.func @transform_4(%arg0: i32) -> (i32, i32) {
    %c0_i32 = arith.constant 0 : i32
    %c0_i32_0 = arith.constant 0 : i32
    %c0_i32_1 = arith.constant 0 : i32
    return %c0_i32, %c0_i32_0 : i32, i32
  }
  func.func @transform_5(%arg0: i32) -> (i32, i32) {
    %c0_i32 = arith.constant 0 : i32
    %c0_i32_0 = arith.constant 0 : i32
    %c0_i32_1 = arith.constant 0 : i32
    return %c0_i32, %c0_i32_0 : i32, i32
  }
  func.func @transform_6(%arg0: i32) -> (i32, i32, i32) {
    %c0_i32 = arith.constant 0 : i32
    %c0_i32_0 = arith.constant 0 : i32
    %c0_i32_1 = arith.constant 0 : i32
    return %arg0, %c0_i32, %c0_i32_0 : i32, i32, i32
  }
}

</mosaic_0001>

<bundles_post_ra>
// kernel: resblock_p_forward.4
= control target key start
LH: loop header
LB: loop body
LE: loop exit
PB: predicated region body
PF: predicated region fallthrough
CT: control target
= control target key end

     0   :  { %s682_s18 = smov 0   ;;  %s774_s0 = inlined_call_operand.vmem [shape: f32[2,8,256], index: 0, kind: input, shape index: {}]   ;;  %s775_s1 = inlined_call_operand.vmem [shape: f32[8,1], index: 1, kind: input, shape index: {}]   ;;  %s776_s2 = inlined_call_operand.vmem [shape: f32[8,1], index: 2, kind: input, shape index: {}]   ;;  %s777_s3 = inlined_call_operand.vmem [shape: f32[8,72], index: 3, kind: input, shape index: {}]   ;;  %s778_s4 = inlined_call_operand.vmem [shape: f32[2,8,256], index: 4, kind: output, shape index: {0}]   ;;  %s779_s5 = inlined_call_operand.vmem [shape: f32[2,16,1], index: 5, kind: output, shape index: {1}]  }
   0x1 LB: > { %s568_s19 = sadd.s32 4294967295, %s639_s18   ;;  %p572_p0 = scmp.ge.s32.totalorder %s639_s18, 1  ;;  %s639_s18 = sphi %s682_s18, %s16_s18  }
   0x2   : > { %p190_p1 = scmp.lt.s32.totalorder %s639_s18, 3 }
   0x4   : > { %p191_p2 = pnand %p572_p0, %p190_p1 }
   0x5   : > { %p223_p3 = scmp.lt.s32.totalorder (!%p191_p2), %s568_s19, 1  ;;  %s643_s28 = smov (!%p191_p2), 17  }
   0x6   : > { %194 = sbr.rel (%p191_p2) target bundleno = 686 (0x2ae), region = 36  ;;  %s644_s29 = smov (!%p191_p2), 94  }
   0x7   : > { %s645_s30 = smov (!%p191_p2), 111   ;;  %s646_s6 = smov (!%p191_p2), 95  }
   0x8   : > { %s647_s7 = smov (!%p191_p2), 112   ;;  %s648_s8 = smov (!%p191_p2), 96  }
   0x9   : > { %s649_s9 = smov (!%p191_p2), 110   ;;  %s650_s10 = smov (!%p191_p2), 126  }
   0xa   : > { %s651_s11 = smov (!%p191_p2), 127  }
   0xb   : > { %v240_v0 = vld [vmem:[%s775_s1] sm:$0xff]  ;;  %v641_v1 = vmov 0   ;;  %v642_v3 = vmov 0.0   ;;  %s789_s19 = smov (!%p223_p3, %s568_s19), 1  ;;  %vm260_vm0 = vcmask 277504   ;;  %vm273_vm1 = vcmask 1047688  }
   0xc   : > { %617 = vset.pattern.permute.xlu0 %v641_v1  ;;  %v248_v2 = vld [vmem:[%s776_s2] sm:$0xff]  ;;  %258 = vst [vmem:[#allocation2] sm:$0xff] %v642_v3  ;;  %s696_s24 = sshll.u32 %s789_s19, 4  ;;  %vm268_vm2 = vcmask 138240   ;;  %v277_v23 = vlaneseq  ;;  %vm382_vm3 = vcmask 769024   ;;  %vm417_vm6 = vcmask 777216  }
   0xd   : > { %243 = vperm.xlu0 %617, %v240_v0   ;;  %s227_s27 = scalar_lea.vmem %s774_s0, %s696_s24  ;;  %261 = vst.msk [vmem:[#allocation2 + $0x10] sm:$0xff] %vm260_vm0, %v642_v3  ;;  %vm369_vm7 = vcmask 785408   ;;  %vm356_vm10 = vcmask 900096   ;;  %vm406_vm11 = vcmask 908288   ;;  %vm343_vm12 = vcmask 916480   ;;  %s232_s16 = scalar_lea.vmem %s778_s4, %s696_s24 }
   0xe   : > { %v238_v5 = vld [vmem:[%s227_s27] sm:$0xff]  ;;  %v239_v9 = vld [vmem:[%s227_s27 + $0x8] sm:$0xff]  ;;  %v278_v25 = vand.u32 127, %v277_v23  ;;  %vm330_vm13 = vcmask 1031168   ;;  %vm395_vm14 = vcmask 1039360   ;;  %vm423_vm15 = vcmask 588800   ;;  %s237_s20 = scalar_lea.vmem %s779_s5, %s696_s24 }
   0xf   : > { %vm477_vm0 = vcmask 7168  }
  0x10   : > { %v279_v26 = vadd.s32 128, %v278_v25  ;;  %v284_v30 = vand.u32 15, %v278_v25 }
  0x12   : > { %v291_v31 = vand.u32 15, %v279_v26  ;;  %vm718_vm4 = vcmp.ne.s32.totalorder %v284_v30, 15  ;;  %vm730_vm8 = vcmp.ne.s32.totalorder %v284_v30, 0 }
  0x14   : > { %vm722_vm5 = vcmp.ne.s32.totalorder %v291_v31, 15  ;;  %vm734_vm9 = vcmp.ne.s32.totalorder %v291_v31, 0 }
  0x15   : > { %251 = vperm.xlu0 %617, %v248_v2  }
  0x7f   : > { %v244_v4 = vpop.permute.xlu0 %243 }
  0x80   : > { %v246_v6 = vmul.f32 %v244_v4, %v238_v5  ;;  %v247_v11 = vmul.f32 %v244_v4, %v239_v9 }
  0x87   : > { %v252_v7 = vpop.permute.xlu0 %251 }
  0x88   : > { %v254_v8 = vadd.f32 %v252_v7, %v246_v6  ;;  %v255_v12 = vadd.f32 %v252_v7, %v247_v11  ;;  %v422_v6 = vld [vmem:[%s777_s3] sm:$0xff] }
  0x8a   : > { %v256_v10 = vmax.f32 %v254_v8, 0.0  ;;  %v257_v13 = vmax.f32 %v255_v12, 0.0 }
  0x8c   : > { %264 = vrot.lane.b32.xlu1 %v256_v10, %s643_s28 }
  0x94   : > { %266 = vrot.lane.b32.xlu1 %v257_v13, %s643_s28 }
  0xfe   : > { %v265_v14 = vpop.permute.xlu1 %264 }
  0xff   : > { %274 = vst.msk [vmem:[#allocation2] sm:$0xff] %vm273_vm1, %v265_v14 }
 0x106   : > { %v267_v15 = vpop.permute.xlu1 %266  ;;  %v702_v16 = vld [vmem:[#allocation2] sm:$0xff] }
 0x107   : > { %v704_v17 = vsel %vm268_vm2, %v265_v14, %v267_v15  ;;  %276 = vst.msk [vmem:[#allocation2 + $0x10] sm:$0xff] %vm268_vm2, %v267_v15  ;;  %376 = vrot.lane.b32.xlu2 %v702_v16, %s644_s29 }
 0x108   : > { %v618_v19 = vpack.i.bf16 %v704_v17, %v702_v16 }
 0x10e   : > { %v316_v18 = vld [vmem:[#allocation2 + $0x10] sm:$0xff] }
 0x10f   : > { %404 = vrot.lane.b32.xlu1 %v316_v18, %s645_s30  ;;  %415 = vrot.lane.b32.xlu2 %v316_v18, %s646_s6 }
 0x110   : > { %380 = vrot.lane.b32.xlu0 %v316_v18, %s644_s29 }
 0x117   : > { %341 = vrot.lane.b32.xlu1 %v316_v18, %s647_s7  ;;  %367 = vrot.lane.b32.xlu2 %v316_v18, %s648_s8 }
 0x118   : > { %363 = vrot.lane.b32.xlu0 %v702_v16, %s648_s8 }
 0x11f   : > { %354 = vrot.lane.b32.xlu2 %v316_v18, %s649_s9  ;;  %619 = vrot.lane.b32.xlu1 %v618_v19, %s646_s6 }
 0x120   : > { %350 = vrot.lane.b32.xlu0 %v702_v16, %s649_s9 }
 0x127   : > { %337 = vrot.lane.b32.xlu2 %v702_v16, %s647_s7  ;;  %365 = vrot.lane.b32.xlu1 %v704_v17, %s648_s8 }
 0x128   : > { %624 = vrot.lane.b32.xlu0 %v618_v19, %s645_s30 }
 0x12f   : > { %352 = vrot.lane.b32.xlu1 %v704_v17, %s649_s9  ;;  %378 = vrot.lane.b32.xlu2 %v704_v17, %s644_s29 }
 0x130   : > { %339 = vrot.lane.b32.xlu0 %v704_v17, %s647_s7 }
 0x137   : > { %328 = vrot.lane.b32.xlu1 %v316_v18, %s650_s10  ;;  %324 = vrot.lane.b32.xlu2 %v702_v16, %s650_s10 }
 0x138   : > { %326 = vrot.lane.b32.xlu0 %v704_v17, %s650_s10 }
 0x13f   : > { %629 = vrot.lane.b32.xlu2 %v618_v19, %s651_s11 }
 0x140   : > { %393 = vrot.lane.b32.xlu0 %v316_v18, %s651_s11 }
 0x161   : > { %v377_v20 = vpop.permute.xlu2 %376 }
 0x169   : > { %v416_v21 = vpop.permute.xlu2 %415 }
 0x171   : > { %v368_v22 = vpop.permute.xlu2 %367 }
 0x179   : > { %v355_v24 = vpop.permute.xlu2 %354 }
 0x181   : > { %v405_v27 = vpop.permute.xlu1 %404  ;;  %v338_v28 = vpop.permute.xlu2 %337 }
 0x182   : > { %v381_v29 = vpop.permute.xlu0 %380 }
 0x189   : > { %v342_v34 = vpop.permute.xlu1 %341  ;;  %v379_v35 = vpop.permute.xlu2 %378 }
 0x18a   : > { %v364_v36 = vpop.permute.xlu0 %363  ;;  %v383_v37 = vsel %vm382_vm3, %v377_v20, %v379_v35  ;;  %v384_v38 = vsel %vm382_vm3, %v379_v35, %v381_v29 }
 0x18b   : > { %579 = vmatpush.msk.msra.mxu0 %vm718_vm4, %v383_v37  ;;  %586 = vmatpush.msk.msra.mxu1 %vm722_vm5, %v384_v38 }
 0x191   : > { %v620_v39 = vpop.permute.xlu1 %619  ;;  %v325_v51 = vpop.permute.xlu2 %324 }
 0x192   : > { %v351_v40 = vpop.permute.xlu0 %350  ;;  %v622_v41 = vunpack.i.h.bf16 %v620_v39  ;;  %v621_v42 = vunpack.i.l.bf16 %v620_v39 }
 0x194   : > { %v418_v43 = vsel %vm417_vm6, %v621_v42, %v622_v41  ;;  %v419_v44 = vsel %vm417_vm6, %v622_v41, %v416_v21 }
 0x195   : > { %435 = vmatpush.msra.mxu0 %v418_v43  ;;  %455 = vmatpush.msra.mxu1 %v419_v44 }
 0x199   : > { %v366_v47 = vpop.permute.xlu1 %365  ;;  %v630_v60 = vpop.permute.xlu2 %629 }
 0x19a   : > { %v625_v48 = vpop.permute.xlu0 %624  ;;  %v370_v49 = vsel %vm369_vm7, %v364_v36, %v366_v47  ;;  %v371_v50 = vsel %vm369_vm7, %v366_v47, %v368_v22  ;;  %v632_v63 = vunpack.i.h.bf16 %v630_v60  ;;  %v631_v0 = vunpack.i.l.bf16 %v630_v60 }
 0x19b   : > { %580 = vmatpush.msk.msra.mxu0 %vm730_vm8, %v370_v49  ;;  %587 = vmatpush.msk.msra.mxu1 %vm734_vm9, %v371_v50  ;;  %v627_v52 = vunpack.i.h.bf16 %v625_v48  ;;  %v626_v53 = vunpack.i.l.bf16 %v625_v48 }
 0x19c   : > { %v396_v5 = vsel %vm395_vm14, %v631_v0, %v632_v63 }
 0x19d   : > { %v407_v58 = vsel %vm406_vm11, %v626_v53, %v627_v52  ;;  %v408_v59 = vsel %vm406_vm11, %v627_v52, %v405_v27 }
 0x1a1   : > { %v353_v54 = vpop.permute.xlu1 %352 }
 0x1a2   : > { %v340_v55 = vpop.permute.xlu0 %339  ;;  %v357_v56 = vsel %vm356_vm10, %v351_v40, %v353_v54  ;;  %v358_v57 = vsel %vm356_vm10, %v353_v54, %v355_v24 }
 0x1a3   : > { %581 = vmatpush.msk.msra.mxu0 %vm718_vm4, %v357_v56  ;;  %588 = vmatpush.msk.msra.mxu1 %vm722_vm5, %v358_v57  ;;  %v344_v61 = vsel %vm343_vm12, %v338_v28, %v340_v55  ;;  %v345_v62 = vsel %vm343_vm12, %v340_v55, %v342_v34 }
 0x1a5   : > { %438 = vmatpush.msra.mxu0 %v407_v58  ;;  %458 = vmatpush.msra.mxu1 %v408_v59 }
 0x1a7   : > { %582 = vmatpush.msk.msra.mxu0 %vm730_vm8, %v344_v61  ;;  %589 = vmatpush.msk.msra.mxu1 %vm734_vm9, %v345_v62 }
 0x1a9   : > { %v329_v1 = vpop.permute.xlu1 %328 }
 0x1aa   : > { %v327_v2 = vpop.permute.xlu0 %326 }
 0x1ab   : > { %v331_v3 = vsel %vm330_vm13, %v325_v51, %v327_v2  ;;  %v332_v4 = vsel %vm330_vm13, %v327_v2, %v329_v1 }
 0x1ac   : > { %583 = vmatpush.msk.msra.mxu0 %vm718_vm4, %v331_v3  ;;  %590 = vmatpush.msk.msra.mxu1 %vm722_vm5, %v332_v4 }
 0x1ae   : > { %441 = vmatpush.msra.mxu0 %v396_v5 }
 0x1b0   : > { %584 = vmatpush.msk.msra.mxu0 %vm730_vm8, %v702_v16 }
 0x1b1   : > { %585 = vmatmul.msk.f32.vlgmr.msra.gmra.mxu0 %vm423_vm15, %v422_v6 }
 0x1b2   : > { %v394_v7 = vpop.permute.xlu0 %393 }
 0x1b3   : > { %v397_v8 = vsel %vm395_vm14, %v632_v63, %v394_v7 }
 0x1b4   : > { %461 = vmatpush.msra.mxu1 %v397_v8 }
 0x1b6   : > { %591 = vmatpush.msk.msra.mxu1 %vm734_vm9, %v704_v17 }
 0x1b7   : > { %592 = vmatmul.msk.f32.vlgmr.msra.gmra.mxu1 %vm423_vm15, %v422_v6 }
 0x22e   : > { %v444_v9 = vpop.f32.mrf.mxu0 }
 0x22f   : > { %467 = vst [vmem:[%s232_s16] sm:$0xff] %v444_v9  ;;  %v469_v10 = vmul.f32 %v444_v9, %v444_v9 }
 0x234   : > { %v464_v11 = vpop.f32.mrf.mxu1 }
 0x235   : > { %468 = vst [vmem:[%s232_s16 + $0x8] sm:$0xff] %v464_v11  ;;  %v470_v12 = vmul.f32 %v464_v11, %v464_v11  ;;  %v471_v13 = vadd.f32 %v464_v11, %v444_v9 }
 0x237   : > { %472 = vadd.xlane.f32.xlu1 %v471_v13  ;;  %v474_v14 = vadd.f32 %v470_v12, %v469_v10 }
 0x239   : > { %475 = vadd.xlane.f32.xlu2 %v474_v14 }
 0x2aa   : > { %v473_v15 = vpop.xlane.xlu1 %472 }
 0x2ab   : > { %478 = vst.msk [vmem:[%s237_s20] sm:$0xff] %vm477_vm0, %v473_v15 }
 0x2ac   : > { %v476_v16 = vpop.xlane.xlu2 %475 }
 0x2ad   : > { %479 = vst.msk [vmem:[%s237_s20 + $0x8] sm:$0xff] %vm477_vm0, %v476_v16 }
 0x2ae PF: > { %s16_s18 = sadd.s32 1, %s639_s18  }
 0x2af   : > { %p13_p4 = scmp.ge.s32.totalorder %s16_s18, 4  }
 0x2b1   :  { %15 = sbr.rel (!%p13_p4) target bundleno = 1 (0x1), region = 78 }

// kernel: resblock_p_forward.5
= control target key start
LH: loop header
LB: loop body
LE: loop exit
PB: predicated region body
PF: predicated region fallthrough
CT: control target
= control target key end

     0   :  { %s452_s21 = smov 0   ;;  %s484_s0 = inlined_call_operand.vmem [shape: f32[2,8,256], index: 0, kind: input, shape index: {}]   ;;  %s485_s1 = inlined_call_operand.vmem [shape: f32[2,8,256], index: 1, kind: input, shape index: {}]   ;;  %s486_s2 = inlined_call_operand.vmem [shape: f32[8,1], index: 2, kind: input, shape index: {}]   ;;  %s487_s3 = inlined_call_operand.vmem [shape: f32[8,1], index: 3, kind: input, shape index: {}]   ;;  %s488_s4 = inlined_call_operand.vmem [shape: f32[8,1], index: 4, kind: input, shape index: {}]   ;;  %s489_s5 = inlined_call_operand.vmem [shape: f32[8,1], index: 5, kind: input, shape index: {}]   ;;  %s490_s6 = inlined_call_operand.vmem [shape: f32[2,8,256], index: 6, kind: output, shape index: {}]  }
   0x1 LB: > { %s381_s22 = sadd.s32 4294967295, %s414_s21   ;;  %p385_p0 = scmp.ge.s32.totalorder %s414_s21, 1  ;;  %s414_s21 = sphi %s452_s21, %s16_s21  }
   0x2   : > { %p222_p1 = scmp.lt.s32.totalorder %s414_s21, 3 }
   0x4   : > { %p223_p2 = pnand %p385_p0, %p222_p1 }
   0x5   : > { %p257_p3 = scmp.lt.s32.totalorder (!%p223_p2), %s381_s22, 1 }
   0x6   : > { %226 = sbr.rel (%p223_p2) target bundleno = 146 (0x92), region = 44 }
   0xb   : > { %v292_v0 = vld [vmem:[%s488_s4] sm:$0xff]  ;;  %v416_v2 = vmov 0   ;;  %s492_s22 = smov (!%p257_p3, %s381_s22), 1 }
   0xc   : > { %v274_v1 = vld [vmem:[%s486_s2] sm:$0xff]  ;;  %407 = vset.pattern.permute.xlu1 %v416_v2  ;;  %406 = vset.pattern.permute.xlu0 %v416_v2  ;;  %s394_s7 = sshll.u32 %s492_s22, 4 }
   0xd   : > { %295 = vperm.xlu1 %407, %v292_v0   ;;  %277 = vperm.xlu0 %406, %v274_v1   ;;  %v302_v3 = vld [vmem:[%s489_s5] sm:$0xff]  ;;  %s261_s10 = scalar_lea.vmem %s484_s0, %s394_s7  ;;  %s266_s13 = scalar_lea.vmem %s485_s1, %s394_s7 }
   0xe   : > { %v282_v4 = vld [vmem:[%s487_s3] sm:$0xff]  ;;  %v273_v8 = vld [vmem:[%s261_s10 + $0x8] sm:$0xff]  ;;  %s271_s16 = scalar_lea.vmem %s490_s6, %s394_s7 }
   0xf   : > { %v272_v7 = vld [vmem:[%s261_s10] sm:$0xff]  ;;  %v291_v10 = vld [vmem:[%s266_s13 + $0x8] sm:$0xff] }
  0x10   : > { %v290_v9 = vld [vmem:[%s266_s13] sm:$0xff] }
  0x15   : > { %305 = vperm.xlu1 %407, %v302_v3   ;;  %285 = vperm.xlu0 %406, %v282_v4  }
  0x7f   : > { %v278_v5 = vpop.permute.xlu0 %277  ;;  %v296_v6 = vpop.permute.xlu1 %295 }
  0x80   : > { %v280_v11 = vmul.f32 %v278_v5, %v272_v7  ;;  %v281_v12 = vmul.f32 %v278_v5, %v273_v8  ;;  %v298_v14 = vmul.f32 %v296_v6, %v290_v9  ;;  %v299_v15 = vmul.f32 %v296_v6, %v291_v10 }
  0x87   : > { %v286_v13 = vpop.permute.xlu0 %285  ;;  %v306_v20 = vpop.permute.xlu1 %305 }
  0x88   : > { %v288_v16 = vadd.f32 %v286_v13, %v280_v11  ;;  %v289_v17 = vadd.f32 %v286_v13, %v281_v12 }
  0x8a   : > { %v300_v18 = vadd.f32 %v298_v14, %v288_v16  ;;  %v301_v19 = vadd.f32 %v299_v15, %v289_v17 }
  0x8c   : > { %v308_v21 = vadd.f32 %v306_v20, %v300_v18  ;;  %v309_v22 = vadd.f32 %v306_v20, %v301_v19 }
  0x8e   : > { %v310_v23 = vmax.f32 %v308_v21, 0.0  ;;  %v311_v24 = vmax.f32 %v309_v22, 0.0 }
  0x90   : > { %312 = vst [vmem:[%s271_s16] sm:$0xff] %v310_v23 }
  0x91   : > { %313 = vst [vmem:[%s271_s16 + $0x8] sm:$0xff] %v311_v24 }
  0x92 PF: > { %s16_s21 = sadd.s32 1, %s414_s21  }
  0x93   : > { %p13_p4 = scmp.ge.s32.totalorder %s16_s21, 4  }
  0x95   :  { %15 = sbr.rel (!%p13_p4) target bundleno = 1 (0x1), region = 77 }

// kernel: resblock_p_forward.3
= control target key start
LH: loop header
LB: loop body
LE: loop exit
PB: predicated region body
PF: predicated region fallthrough
CT: control target
= control target key end

     0   :  { %s2558_s18 = smov 0   ;;  %s3805_s0 = inlined_call_operand.vmem [shape: f32[2,16,16,4], index: 0, kind: input, shape index: {}]   ;;  %s3806_s1 = inlined_call_operand.vmem [shape: f32[8,36], index: 1, kind: input, shape index: {}]   ;;  %s3807_s2 = inlined_call_operand.vmem [shape: f32[8,4], index: 2, kind: input, shape index: {}]   ;;  %s3808_s3 = inlined_call_operand.vmem [shape: f32[2,8,256], index: 3, kind: output, shape index: {0}]   ;;  %s3809_s4 = inlined_call_operand.vmem [shape: f32[2,8,256], index: 4, kind: output, shape index: {1}]   ;;  %s3810_s5 = inlined_call_operand.vmem [shape: f32[2,32,1], index: 5, kind: output, shape index: {2}]  }
   0x1 LB: > { %s2407_s19 = sadd.s32 4294967295, %s2517_s18   ;;  %p2411_p0 = scmp.ge.s32.totalorder %s2517_s18, 1  ;;  %s2517_s18 = sphi %s2558_s18, %s16_s18  }
   0x2   : > { %p192_p1 = scmp.lt.s32.totalorder %s2517_s18, 3 }
   0x4   : > { %p193_p2 = pnand %p2411_p0, %p192_p1 }
   0x6   : > { %196 = sbr.rel (%p193_p2) target bundleno = 1121 (0x461), region = 32 }
   0xb   : > { %vm250_vm0 = vcmask 31744   ;;  %v2519_v0 = vmov 0.0   ;;  %s2520_s20 = smov 4   ;;  %p230_p3 = scmp.lt.s32.totalorder %s2407_s19, 1  ;;  %vm253_vm1 = vcmask 25600   ;;  %vm595_vm2 = vcmask 64544  }
   0xc   : > { %251 = vst.msk [vmem:[#allocation2] sm:$0xff] %vm250_vm0, %v2519_v0  ;;  %s2521_s25 = smov 8   ;;  %s2522_s26 = smov 12   ;;  %vm788_vm3 = vcmask 97344   ;;  %vm981_vm4 = vcmask 130144   ;;  %vm1174_vm5 = vcmask 162944  }
   0xd   : > { %252 = vst.msk [vmem:[#allocation2 + $0x8] sm:$0xff] %vm250_vm0, %v2519_v0  ;;  %s3904_s19 = smov (!%p230_p3, %s2407_s19), 1  ;;  %s2523_s27 = smov 16   ;;  %vm1367_vm6 = vcmask 195744   ;;  %vm1561_vm7 = vcmask 228544   ;;  %vm1754_vm8 = vcmask 261344  }
   0xe   : > { %255 = vst.msk [vmem:[#allocation2 + $0x18] sm:$0xff] %vm250_vm0, %v2519_v0  ;;  %s2490_s21 = sshll.u32 %s3904_s19, 8  ;;  %s2524_s28 = smov 20   ;;  %vm1947_vm9 = vcmask 294144   ;;  %vm2013_vm10 = vcmask 293888   ;;  %vm2281_vm11 = vcmask 7168  }
   0xf   : > { %256 = vst.msk [vmem:[#allocation2 + $0x20] sm:$0xff] %vm250_vm0, %v2519_v0  ;;  %s2639_s24 = scalar_lea.vmem %s3805_s0, %s2490_s21  ;;  %s2525_s29 = smov 24  }
  0x10   : > { %258 = vst.msk [vmem:[#allocation2 + $0x30] sm:$0xff] %vm250_vm0, %v2519_v0  ;;  %v306_v2 = vld [vmem:[%s2639_s24] sm:$0xff]  ;;  %v307_v5 = vld [vmem:[%s2639_s24 + $0x8] sm:$0xff]  ;;  %v313_v8 = vld [vmem:[%s2639_s24 + $0x38] sm:$0xff]  ;;  %s2526_s30 = smov 28   ;;  %s2527_s6 = smov 32  }
  0x11   : > { %259 = vst.msk [vmem:[#allocation2 + $0x38] sm:$0xff] %vm250_vm0, %v2519_v0  ;;  %v310_v6 = vld [vmem:[%s2639_s24 + $0x20] sm:$0xff]  ;;  %v311_v7 = vld [vmem:[%s2639_s24 + $0x28] sm:$0xff]  ;;  %v316_v10 = vld [vmem:[%s2639_s24 + $0x50] sm:$0xff]  ;;  %s2491_s11 = sshll.u32 %s3904_s19, 4 }
  0x12   : > { %261 = vst.msk [vmem:[#allocation2 + $0x48] sm:$0xff] %vm250_vm0, %v2519_v0  ;;  %v314_v9 = vld [vmem:[%s2639_s24 + $0x40] sm:$0xff]  ;;  %v308_v11 = vld [vmem:[%s2639_s24 + $0x10] sm:$0xff]  ;;  %v317_v12 = vld [vmem:[%s2639_s24 + $0x58] sm:$0xff]  ;;  %s244_s14 = scalar_lea.vmem %s3809_s4, %s2491_s11  ;;  %s239_s17 = scalar_lea.vmem %s3808_s3, %s2491_s11 }
  0x13   : > { %262 = vst.msk [vmem:[#allocation2 + $0x50] sm:$0xff] %vm250_vm0, %v2519_v0  ;;  %v319_v13 = vld [vmem:[%s2639_s24 + $0x68] sm:$0xff]  ;;  %v309_v14 = vld [vmem:[%s2639_s24 + $0x18] sm:$0xff]  ;;  %v320_v16 = vld [vmem:[%s2639_s24 + $0x70] sm:$0xff] }
  0x14   : > { %v435_v1 = vld [vmem:[#allocation2 + $0x1] sm:$0xff]  ;;  %264 = vst.msk [vmem:[#allocation2 + $0x60] sm:$0xff] %vm250_vm0, %v2519_v0  ;;  %v312_v19 = vld [vmem:[%s2639_s24 + $0x30] sm:$0xff]  ;;  %v325_v21 = vld [vmem:[%s2639_s24 + $0x98] sm:$0xff] }
  0x15   : > { %499 = vrot.lane.b32.xlu0 %v435_v1, %s2520_s20  ;;  %265 = vst.msk [vmem:[#allocation2 + $0x68] sm:$0xff] %vm250_vm0, %v2519_v0  ;;  %v322_v18 = vld [vmem:[%s2639_s24 + $0x80] sm:$0xff]  ;;  %v323_v20 = vld [vmem:[%s2639_s24 + $0x88] sm:$0xff]  ;;  %v328_v27 = vld [vmem:[%s2639_s24 + $0xb0] sm:$0xff] }
  0x16   : > { %267 = vst.msk [vmem:[#allocation2 + $0x78] sm:$0xff] %vm250_vm0, %v2519_v0  ;;  %v315_v22 = vld [vmem:[%s2639_s24 + $0x48] sm:$0xff]  ;;  %v326_v26 = vld [vmem:[%s2639_s24 + $0xa0] sm:$0xff]  ;;  %v329_v32 = vld [vmem:[%s2639_s24 + $0xb8] sm:$0xff] }
  0x17   : > { %268 = vst.msk [vmem:[#allocation2 + $0x80] sm:$0xff] %vm250_vm0, %v2519_v0  ;;  %v318_v28 = vld [vmem:[%s2639_s24 + $0x60] sm:$0xff]  ;;  %v331_v33 = vld [vmem:[%s2639_s24 + $0xc8] sm:$0xff]  ;;  %v321_v34 = vld [vmem:[%s2639_s24 + $0x78] sm:$0xff] }
  0x18   : > { %270 = vst.msk [vmem:[#allocation2 + $0x90] sm:$0xff] %vm250_vm0, %v2519_v0  ;;  %v332_v38 = vld [vmem:[%s2639_s24 + $0xd0] sm:$0xff]  ;;  %v334_v39 = vld [vmem:[%s2639_s24 + $0xe0] sm:$0xff]  ;;  %v335_v45 = vld [vmem:[%s2639_s24 + $0xe8] sm:$0xff] }
  0x19   : > { %271 = vst.msk [vmem:[#allocation2 + $0x98] sm:$0xff] %vm250_vm0, %v2519_v0  ;;  %v324_v40 = vld [vmem:[%s2639_s24 + $0x90] sm:$0xff]  ;;  %v327_v46 = vld [vmem:[%s2639_s24 + $0xa8] sm:$0xff]  ;;  %v330_v50 = vld [vmem:[%s2639_s24 + $0xc0] sm:$0xff] }
  0x1a   : > { %273 = vst.msk [vmem:[#allocation2 + $0xa8] sm:$0xff] %vm250_vm0, %v2519_v0  ;;  %v333_v53 = vld [vmem:[%s2639_s24 + $0xd8] sm:$0xff]  ;;  %v371_v61 = vld [vmem:[#allocation2] sm:$0xff] }
  0x1b   : > { %274 = vst.msk [vmem:[#allocation2 + $0xb0] sm:$0xff] %vm250_vm0, %v2519_v0 }
  0x1c   : > { %276 = vst.msk [vmem:[#allocation2 + $0xc0] sm:$0xff] %vm250_vm0, %v2519_v0 }
  0x1d   : > { %277 = vst.msk [vmem:[#allocation2 + $0xc8] sm:$0xff] %vm250_vm0, %v2519_v0 }
  0x1e   : > { %279 = vst.msk [vmem:[#allocation2 + $0xd8] sm:$0xff] %vm250_vm0, %v2519_v0 }
  0x1f   : > { %280 = vst.msk [vmem:[#allocation2 + $0xe0] sm:$0xff] %vm250_vm0, %v2519_v0 }
  0x20   : > { %282 = vst.msk [vmem:[#allocation2 + $0xf0] sm:$0xff] %vm250_vm0, %v2519_v0 }
  0x21   : > { %283 = vst.msk [vmem:[#allocation2 + $0xf8] sm:$0xff] %vm250_vm0, %v2519_v0 }
  0x22   : > { %285 = vst.msk [vmem:[#allocation2 + $0x108] sm:$0xff] %vm250_vm0, %v2519_v0 }
  0x23   : > { %286 = vst.msk [vmem:[#allocation2 + $0x110] sm:$0xff] %vm250_vm0, %v2519_v0 }
  0x24   : > { %288 = vst.msk [vmem:[#allocation2 + $0x120] sm:$0xff] %vm250_vm0, %v2519_v0 }
  0x25   : > { %289 = vst.msk [vmem:[#allocation2 + $0x128] sm:$0xff] %vm250_vm0, %v2519_v0 }
  0x26   : > { %291 = vst.msk [vmem:[#allocation2 + $0x138] sm:$0xff] %vm250_vm0, %v2519_v0 }
  0x27   : > { %292 = vst.msk [vmem:[#allocation2 + $0x140] sm:$0xff] %vm250_vm0, %v2519_v0 }
  0x28   : > { %294 = vst.msk [vmem:[#allocation2 + $0x150] sm:$0xff] %vm250_vm0, %v2519_v0 }
  0x29   : > { %295 = vst.msk [vmem:[#allocation2 + $0x158] sm:$0xff] %vm250_vm0, %v2519_v0 }
  0x2a   : > { %297 = vst.msk [vmem:[#allocation2 + $0x168] sm:$0xff] %vm250_vm0, %v2519_v0 }
  0x2b   : > { %298 = vst.msk [vmem:[#allocation2 + $0x170] sm:$0xff] %vm250_vm0, %v2519_v0 }
  0x2c   : > { %300 = vst.msk [vmem:[#allocation2 + $0x180] sm:$0xff] %vm250_vm0, %v2519_v0 }
  0x2d   : > { %301 = vst.msk [vmem:[#allocation2 + $0x188] sm:$0xff] %vm250_vm0, %v2519_v0 }
  0x2e   : > { %303 = vst.msk [vmem:[#allocation2 + $0x198] sm:$0xff] %vm250_vm0, %v2519_v0 }
  0x2f   : > { %304 = vst.msk [vmem:[#allocation2 + $0x1a0] sm:$0xff] %vm250_vm0, %v2519_v0 }
  0x30   : > { %339 = vst.msk [vmem:[#allocation2 + $0x19] sm:$0xff] %vm250_vm0, %v306_v2  ;;  %v372_v2 = vld [vmem:[#allocation2 + $0x8] sm:$0xff] }
  0x31   : > { %254 = vst.msk [vmem:[#allocation2 + $0x10] sm:$0x3] %vm253_vm1, %v2519_v0 }
  0x32   : > { %257 = vst.msk [vmem:[#allocation2 + $0x28] sm:$0x3] %vm253_vm1, %v2519_v0 }
  0x33   : > { %260 = vst.msk [vmem:[#allocation2 + $0x40] sm:$0x3] %vm253_vm1, %v2519_v0 }
  0x34   : > { %263 = vst.msk [vmem:[#allocation2 + $0x58] sm:$0x3] %vm253_vm1, %v2519_v0 }
  0x35   : > { %266 = vst.msk [vmem:[#allocation2 + $0x70] sm:$0x3] %vm253_vm1, %v2519_v0 }
  0x36   : > { %269 = vst.msk [vmem:[#allocation2 + $0x88] sm:$0x3] %vm253_vm1, %v2519_v0 }
  0x37   : > { %v2665_v3 = vld [vmem:[#allocation2 + $0x19] sm:$0xff]  ;;  %272 = vst.msk [vmem:[#allocation2 + $0xa0] sm:$0x3] %vm253_vm1, %v2519_v0 }
  0x38   : > { %503 = vrot.lane.b32.xlu1 %v2665_v3, %s2520_s20  ;;  %v436_v4 = vld [vmem:[#allocation2 + $0x9] sm:$0xff]  ;;  %275 = vst.msk [vmem:[#allocation2 + $0xb8] sm:$0x3] %vm253_vm1, %v2519_v0  ;;  %v2891_v1 = vld [vmem:[#allocation2 + $0x18] sm:$0xff] }
  0x39   : > { %501 = vrot.lane.b32.xlu0 %v436_v4, %s2520_s20  ;;  %278 = vst.msk [vmem:[#allocation2 + $0xd0] sm:$0x3] %vm253_vm1, %v2519_v0 }
  0x3a   : > { %281 = vst.msk [vmem:[#allocation2 + $0xe8] sm:$0x3] %vm253_vm1, %v2519_v0 }
  0x3b   : > { %284 = vst.msk [vmem:[#allocation2 + $0x100] sm:$0x3] %vm253_vm1, %v2519_v0 }
  0x3c   : > { %287 = vst.msk [vmem:[#allocation2 + $0x118] sm:$0x3] %vm253_vm1, %v2519_v0 }
  0x3d   : > { %290 = vst.msk [vmem:[#allocation2 + $0x130] sm:$0x3] %vm253_vm1, %v2519_v0 }
  0x3e   : > { %293 = vst.msk [vmem:[#allocation2 + $0x148] sm:$0x3] %vm253_vm1, %v2519_v0 }
  0x3f   : > { %296 = vst.msk [vmem:[#allocation2 + $0x160] sm:$0x3] %vm253_vm1, %v2519_v0 }
  0x40   : > { %299 = vst.msk [vmem:[#allocation2 + $0x178] sm:$0x3] %vm253_vm1, %v2519_v0 }
  0x41   : > { %302 = vst.msk [vmem:[#allocation2 + $0x190] sm:$0x3] %vm253_vm1, %v2519_v0 }
  0x42   : > { %305 = vst.msk [vmem:[#allocation2 + $0x1a8] sm:$0x3] %vm253_vm1, %v2519_v0  ;;  %v629_v0 = vld [vmem:[#allocation2 + $0xa] sm:$0xff] }
  0x43   : > { %340 = vst.msk [vmem:[#allocation2 + $0x21] sm:$0xff] %vm250_vm0, %v307_v5 }
  0x44   : > { %343 = vst.msk [vmem:[#allocation2 + $0x49] sm:$0xff] %vm250_vm0, %v310_v6 }
  0x45   : > { %344 = vst.msk [vmem:[#allocation2 + $0x51] sm:$0xff] %vm250_vm0, %v311_v7 }
  0x46   : > { %346 = vst.msk [vmem:[#allocation2 + $0x69] sm:$0xff] %vm250_vm0, %v313_v8 }
  0x47   : > { %347 = vst.msk [vmem:[#allocation2 + $0x79] sm:$0xff] %vm250_vm0, %v314_v9 }
  0x48   : > { %349 = vst.msk [vmem:[#allocation2 + $0x91] sm:$0xff] %vm250_vm0, %v316_v10 }
  0x49   : > { %341 = vst.msk [vmem:[#allocation2 + $0x31] sm:$0xff] %vm250_vm0, %v308_v11  ;;  %v628_v11 = vld [vmem:[#allocation2 + $0x2] sm:$0xff] }
  0x4a   : > { %v2711_v15 = vld [vmem:[#allocation2 + $0x21] sm:$0xff]  ;;  %350 = vst.msk [vmem:[#allocation2 + $0x99] sm:$0xff] %vm250_vm0, %v317_v12 }
  0x4b   : > { %505 = vrot.lane.b32.xlu1 %v2711_v15, %s2520_s20  ;;  %v2717_v17 = vld [vmem:[#allocation2 + $0x49] sm:$0xff]  ;;  %352 = vst.msk [vmem:[#allocation2 + $0xb1] sm:$0xff] %vm250_vm0, %v319_v13  ;;  %v2904_v6 = vld [vmem:[#allocation2 + $0x1a] sm:$0xff] }
  0x4c   : > { %511 = vrot.lane.b32.xlu0 %v2717_v17, %s2520_s20  ;;  %342 = vst.msk [vmem:[#allocation2 + $0x39] sm:$0xff] %vm250_vm0, %v309_v14  ;;  %v2731_v23 = vld [vmem:[#allocation2 + $0x51] sm:$0xff]  ;;  %v2916_v8 = vld [vmem:[#allocation2 + $0x20] sm:$0xff]  ;;  %v2920_v9 = vld [vmem:[#allocation2 + $0x48] sm:$0xff] }
  0x4d   : > { %353 = vst.msk [vmem:[#allocation2 + $0xc1] sm:$0xff] %vm250_vm0, %v320_v16  ;;  %v2736_v25 = vld [vmem:[#allocation2 + $0x69] sm:$0xff]  ;;  %v2932_v13 = vld [vmem:[#allocation2 + $0x52] sm:$0xff] }
  0x4e   : > { %355 = vst.msk [vmem:[#allocation2 + $0xd9] sm:$0xff] %vm250_vm0, %v322_v18  ;;  %v2754_v30 = vld [vmem:[#allocation2 + $0x79] sm:$0xff]  ;;  %v2941_v14 = vld [vmem:[#allocation2 + $0x50] sm:$0xff] }
  0x4f   : > { %345 = vst.msk [vmem:[#allocation2 + $0x61] sm:$0xff] %vm250_vm0, %v312_v19  ;;  %v2756_v31 = vld [vmem:[#allocation2 + $0x91] sm:$0xff]  ;;  %v2949_v19 = vld [vmem:[#allocation2 + $0x22] sm:$0xff] }
  0x50   : > { %v2733_v24 = vld [vmem:[#allocation2 + $0x31] sm:$0xff]  ;;  %356 = vst.msk [vmem:[#allocation2 + $0xe1] sm:$0xff] %vm250_vm0, %v323_v20 }
  0x51   : > { %507 = vrot.lane.b32.xlu2 %v2733_v24, %s2520_s20  ;;  %358 = vst.msk [vmem:[#allocation2 + $0xf9] sm:$0xff] %vm250_vm0, %v325_v21  ;;  %v2772_v36 = vld [vmem:[#allocation2 + $0x99] sm:$0xff]  ;;  %v2893_v4 = vld [vmem:[#allocation2 + $0x30] sm:$0xff] }
  0x52   : > { %348 = vst.msk [vmem:[#allocation2 + $0x81] sm:$0xff] %vm250_vm0, %v315_v22  ;;  %v2774_v37 = vld [vmem:[#allocation2 + $0xb1] sm:$0xff] }
  0x53   : > { %513 = vrot.lane.b32.xlu1 %v2731_v23, %s2520_s20  ;;  %359 = vst.msk [vmem:[#allocation2 + $0x109] sm:$0xff] %vm250_vm0, %v326_v26  ;;  %v2752_v29 = vld [vmem:[#allocation2 + $0x39] sm:$0xff] }
  0x54   : > { %517 = vrot.lane.b32.xlu0 %v2736_v25, %s2520_s20  ;;  %361 = vst.msk [vmem:[#allocation2 + $0x121] sm:$0xff] %vm250_vm0, %v328_v27  ;;  %v2794_v43 = vld [vmem:[#allocation2 + $0xc1] sm:$0xff]  ;;  %v2906_v7 = vld [vmem:[#allocation2 + $0x32] sm:$0xff] }
  0x55   : > { %351 = vst.msk [vmem:[#allocation2 + $0xa9] sm:$0xff] %vm250_vm0, %v318_v28  ;;  %v2796_v44 = vld [vmem:[#allocation2 + $0xd9] sm:$0xff] }
  0x56   : > { %362 = vst.msk [vmem:[#allocation2 + $0x129] sm:$0xff] %vm250_vm0, %v329_v32  ;;  %v2770_v35 = vld [vmem:[#allocation2 + $0x61] sm:$0xff]  ;;  %v2922_v10 = vld [vmem:[#allocation2 + $0x38] sm:$0xff]  ;;  %v2970_v32 = vld [vmem:[#allocation2 + $0x90] sm:$0xff] }
  0x57   : > { %364 = vst.msk [vmem:[#allocation2 + $0x141] sm:$0xff] %vm250_vm0, %v331_v33  ;;  %v2814_v48 = vld [vmem:[#allocation2 + $0xe1] sm:$0xff]  ;;  %v2967_v28 = vld [vmem:[#allocation2 + $0x78] sm:$0xff] }
  0x58   : > { %354 = vst.msk [vmem:[#allocation2 + $0xc9] sm:$0xff] %vm250_vm0, %v321_v34  ;;  %v2816_v49 = vld [vmem:[#allocation2 + $0xf9] sm:$0xff]  ;;  %v2945_v16 = vld [vmem:[#allocation2 + $0x68] sm:$0xff] }
  0x59   : > { %509 = vrot.lane.b32.xlu2 %v2752_v29, %s2520_s20  ;;  %365 = vst.msk [vmem:[#allocation2 + $0x151] sm:$0xff] %vm250_vm0, %v332_v38  ;;  %v2792_v42 = vld [vmem:[#allocation2 + $0x81] sm:$0xff]  ;;  %v2974_v34 = vld [vmem:[#allocation2 + $0x4a] sm:$0xff] }
  0x5a   : > { %367 = vst.msk [vmem:[#allocation2 + $0x169] sm:$0xff] %vm250_vm0, %v334_v39  ;;  %v2830_v51 = vld [vmem:[#allocation2 + $0x109] sm:$0xff]  ;;  %v2930_v12 = vld [vmem:[#allocation2 + $0x3a] sm:$0xff] }
  0x5b   : > { %519 = vrot.lane.b32.xlu1 %v2754_v30, %s2520_s20  ;;  %357 = vst.msk [vmem:[#allocation2 + $0xf1] sm:$0xff] %vm250_vm0, %v324_v40  ;;  %v2832_v52 = vld [vmem:[#allocation2 + $0x121] sm:$0xff] }
  0x5c   : > { %523 = vrot.lane.b32.xlu0 %v2756_v31, %s2520_s20  ;;  %368 = vst.msk [vmem:[#allocation2 + $0x171] sm:$0xff] %vm250_vm0, %v335_v45  ;;  %v2812_v47 = vld [vmem:[#allocation2 + $0xa9] sm:$0xff]  ;;  %v2947_v18 = vld [vmem:[#allocation2 + $0x60] sm:$0xff]  ;;  %v2993_v45 = vld [vmem:[#allocation2 + $0x98] sm:$0xff] }
  0x5d   : > { %360 = vst.msk [vmem:[#allocation2 + $0x111] sm:$0xff] %vm250_vm0, %v327_v46  ;;  %v2848_v55 = vld [vmem:[#allocation2 + $0x129] sm:$0xff]  ;;  %v2957_v21 = vld [vmem:[#allocation2 + $0x7a] sm:$0xff] }
  0x5e   : > { %363 = vst.msk [vmem:[#allocation2 + $0x139] sm:$0xff] %vm250_vm0, %v330_v50  ;;  %v2850_v56 = vld [vmem:[#allocation2 + $0x141] sm:$0xff]  ;;  %v2997_v46 = vld [vmem:[#allocation2 + $0xb0] sm:$0xff] }
  0x5f   : > { %v2786_v41 = vld [vmem:[#allocation2 + $0xc9] sm:$0xff]  ;;  %366 = vst.msk [vmem:[#allocation2 + $0x159] sm:$0xff] %vm250_vm0, %v333_v53  ;;  %v2972_v33 = vld [vmem:[#allocation2 + $0x80] sm:$0xff] }
  0x60   : > { %2454 = vmatpush.xpose.msk.msra.mxu2 %vm250_vm0, %v2786_v41  ;;  %3843 = vst [vmem:[#allocation4_spill] sm:$0xff] %v2848_v55  ;;  %v2864_v58 = vld [vmem:[#allocation2 + $0x151] sm:$0xff]  ;;  %v2955_v20 = vld [vmem:[#allocation2 + $0x62] sm:$0xff]  ;;  %v2984_v39 = vld [vmem:[#allocation2 + $0x9a] sm:$0xff] }
  0x61   : > { %515 = vrot.lane.b32.xlu2 %v2770_v35, %s2520_s20  ;;  %3844 = vst [vmem:[#allocation5_spill] sm:$0xff] %v2864_v58  ;;  %v2866_v59 = vld [vmem:[#allocation2 + $0x169] sm:$0xff] }
  0x62   : > { %v2846_v54 = vld [vmem:[#allocation2 + $0xf1] sm:$0xff]  ;;  %403 = vst.msk [vmem:[#allocation3] sm:$0xff] %vm250_vm0, %v371_v61  ;;  %v2980_v38 = vld [vmem:[#allocation2 + $0x82] sm:$0xff] }
  0x63   : > { %525 = vrot.lane.b32.xlu1 %v2772_v36, %s2520_s20  ;;  %v2882_v63 = vld [vmem:[#allocation2 + $0x171] sm:$0xff]  ;;  %405 = vst.msk [vmem:[#allocation3 + $0x10] sm:$0xff] %vm250_vm0, %v2891_v1  ;;  %v2999_v50 = vld [vmem:[#allocation2 + $0xa8] sm:$0xff] }
  0x64   : > { %529 = vrot.lane.b32.xlu0 %v2774_v37, %s2520_s20  ;;  %2455 = vmatpush.xpose.msk.msra.mxu2 %vm250_vm0, %v2794_v43  ;;  %v2862_v57 = vld [vmem:[#allocation2 + $0x111] sm:$0xff]  ;;  %404 = vst.msk [vmem:[#allocation3 + $0x8] sm:$0xff] %vm250_vm0, %v372_v2  ;;  %v3009_v61 = vld [vmem:[#allocation2 + $0xc2] sm:$0xff] }
  0x65   : > { %v2879_v62 = vld [vmem:[#allocation2 + $0x139] sm:$0xff]  ;;  %407 = vst.msk [vmem:[#allocation3 + $0x20] sm:$0xff] %vm250_vm0, %v2893_v4  ;;  %v3001_v53 = vld [vmem:[#allocation2 + $0x6a] sm:$0xff] }
  0x66   : > { %v2899_v5 = vld [vmem:[#allocation2 + $0x159] sm:$0xff]  ;;  %3845 = vst [vmem:[#allocation6_spill] sm:$0xff] %v2904_v6 }
  0x67   : > { %3846 = vst [vmem:[#allocation7_spill] sm:$0xff] %v2906_v7  ;;  %v3018_v2 = vld [vmem:[#allocation2 + $0xc0] sm:$0xff] }
  0x68   : > { %2456 = vmatpush.xpose.msk.msra.mxu2 %vm250_vm0, %v2774_v37  ;;  %406 = vst.msk [vmem:[#allocation3 + $0x18] sm:$0xff] %vm250_vm0, %v2916_v8 }
  0x69   : > { %521 = vrot.lane.b32.xlu2 %v2792_v42, %s2520_s20  ;;  %409 = vst.msk [vmem:[#allocation3 + $0x30] sm:$0xff] %vm250_vm0, %v2920_v9 }
  0x6a   : > { %408 = vst.msk [vmem:[#allocation3 + $0x28] sm:$0xff] %vm250_vm0, %v2922_v10 }
  0x6b   : > { %531 = vrot.lane.b32.xlu1 %v2794_v43, %s2520_s20  ;;  %3847 = vst [vmem:[#allocation8_spill] sm:$0xff] %v2930_v12 }
  0x6c   : > { %535 = vrot.lane.b32.xlu0 %v2796_v44, %s2520_s20  ;;  %2457 = vmatpush.xpose.msk.msra.mxu2 %vm250_vm0, %v2812_v47  ;;  %3848 = vst [vmem:[#allocation9_spill] sm:$0xff] %v2932_v13 }
  0x6d   : > { %410 = vst.msk [vmem:[#allocation3 + $0x38] sm:$0xff] %vm250_vm0, %v2941_v14 }
  0x6e   : > { %3849 = vst [vmem:[#allocation10_spill] sm:$0xff] %v2949_v19 }
  0x6f   : > { %412 = vst.msk [vmem:[#allocation3 + $0x48] sm:$0xff] %vm250_vm0, %v2945_v16 }
  0x70   : > { %2458 = vmatpush.xpose.msk.msra.mxu2 %vm250_vm0, %v2772_v36  ;;  %411 = vst.msk [vmem:[#allocation3 + $0x40] sm:$0xff] %vm250_vm0, %v2947_v18 }
  0x71   : > { %527 = vrot.lane.b32.xlu2 %v2812_v47, %s2520_s20  ;;  %3850 = vst [vmem:[#allocation11_spill] sm:$0xff] %v2955_v20 }
  0x72   : > { %3851 = vst [vmem:[#allocation12_spill] sm:$0xff] %v2957_v21 }
  0x73   : > { %537 = vrot.lane.b32.xlu1 %v2814_v48, %s2520_s20  ;;  %3852 = vst [vmem:[#allocation13_spill] sm:$0xff] %v2974_v34 }
  0x74   : > { %541 = vrot.lane.b32.xlu0 %v2816_v49, %s2520_s20  ;;  %2459 = vmatpush.xpose.msk.msra.mxu2 %vm250_vm0, %v2756_v31  ;;  %413 = vst.msk [vmem:[#allocation3 + $0x50] sm:$0xff] %vm250_vm0, %v2967_v28 }
  0x75   : > { %415 = vst.msk [vmem:[#allocation3 + $0x60] sm:$0xff] %vm250_vm0, %v2970_v32 }
  0x76   : > { %3853 = vst [vmem:[#allocation14_spill] sm:$0xff] %v2980_v38 }
  0x77   : > { %414 = vst.msk [vmem:[#allocation3 + $0x58] sm:$0xff] %vm250_vm0, %v2972_v33 }
  0x78   : > { %2460 = vmatpush.xpose.msk.msra.mxu2 %vm250_vm0, %v2792_v42  ;;  %3854 = vst [vmem:[#allocation15_spill] sm:$0xff] %v2984_v39 }
  0x79   : > { %533 = vrot.lane.b32.xlu2 %v2786_v41, %s2520_s20  ;;  %416 = vst.msk [vmem:[#allocation3 + $0x68] sm:$0xff] %vm250_vm0, %v2993_v45 }
  0x7a   : > { %3855 = vst [vmem:[#allocation16_spill] sm:$0xff] %v3001_v53 }
  0x7b   : > { %543 = vrot.lane.b32.xlu1 %v2830_v51, %s2520_s20  ;;  %418 = vst.msk [vmem:[#allocation3 + $0x78] sm:$0xff] %vm250_vm0, %v2997_v46 }
  0x7c   : > { %547 = vrot.lane.b32.xlu0 %v2832_v52, %s2520_s20  ;;  %2461 = vmatpush.xpose.msk.msra.mxu2 %vm250_vm0, %v2754_v30  ;;  %417 = vst.msk [vmem:[#allocation3 + $0x70] sm:$0xff] %vm250_vm0, %v2999_v50 }
  0x7d   : > { %3857 = vst [vmem:[#allocation18_spill] sm:$0xff] %v3009_v61 }
  0x7e   : > { %419 = vst.msk [vmem:[#allocation3 + $0x80] sm:$0xff] %vm250_vm0, %v3018_v2 }
  0x80   : > { %2462 = vmatpush.xpose.msk.msra.mxu2 %vm250_vm0, %v2736_v25 }
  0x81   : > { %539 = vrot.lane.b32.xlu2 %v2846_v54, %s2520_s20 }
  0x83   : > { %549 = vrot.lane.b32.xlu1 %v2848_v55, %s2520_s20 }
  0x84   : > { %553 = vrot.lane.b32.xlu0 %v2850_v56, %s2520_s20  ;;  %2463 = vmatpush.xpose.msk.msra.mxu2 %vm250_vm0, %v2770_v35 }
  0x87   : > { %v500_v60 = vpop.permute.xlu0 %499 }
  0x88   : > { %2464 = vmatpush.xpose.msk.msra.mxu2 %vm250_vm0, %v2731_v23  ;;  %596 = vst.msk [vmem:[#allocation3] sm:$0xff] %vm595_vm2, %v500_v60  ;;  %v3007_v60 = vld [vmem:[#allocation2 + $0xaa] sm:$0xff] }
  0x89   : > { %545 = vrot.lane.b32.xlu2 %v2862_v57, %s2520_s20  ;;  %3856 = vst [vmem:[#allocation17_spill] sm:$0xff] %v3007_v60 }
  0x8b   : > { %555 = vrot.lane.b32.xlu1 %v2864_v58, %s2520_s20  ;;  %v3158_v58 = vld [vmem:[#allocation2 + $0x142] sm:$0xff] }
  0x8c   : > { %559 = vrot.lane.b32.xlu0 %v2866_v59, %s2520_s20  ;;  %2465 = vmatpush.xpose.msk.msra.mxu2 %vm250_vm0, %v2717_v17 }
  0x90   : > { %2466 = vmatpush.xpose.msk.msra.mxu2 %vm250_vm0, %v2752_v29 }
  0x91   : > { %551 = vrot.lane.b32.xlu2 %v2879_v62, %s2520_s20 }
  0x93   : > { %561 = vrot.lane.b32.xlu1 %v2882_v63, %s2520_s20 }
  0x94   : > { %694 = vrot.lane.b32.xlu0 %v629_v0, %s2521_s25  ;;  %2467 = vmatpush.xpose.msk.msra.mxu2 %vm250_vm0, %v2733_v24 }
  0x98   : > { %2468 = vmatpush.xpose.msk.msra.mxu2 %vm250_vm0, %v2711_v15 }
  0x99   : > { %557 = vrot.lane.b32.xlu2 %v2899_v5, %s2520_s20  ;;  %s2493_s20 = sshll.u32 %s3904_s19, 5 }
  0x9a   : > { %s249_s23 = scalar_lea.vmem %s3810_s5, %s2493_s20 }
  0x9b   : > { %696 = vrot.lane.b32.xlu1 %v2904_v6, %s2521_s25  ;;  %v3106_v6 = vld [vmem:[#allocation2 + $0xfa] sm:$0xff] }
  0x9c   : > { %700 = vrot.lane.b32.xlu0 %v2906_v7, %s2521_s25  ;;  %2469 = vmatpush.xpose.msk.msra.mxu2 %vm250_vm0, %v2665_v3  ;;  %3867 = vst [vmem:[#allocation28_spill] sm:$0xff] %v3106_v6  ;;  %v3130_v7 = vld [vmem:[#allocation2 + $0x168] sm:$0xff] }
  0x9d   : > { %433 = vst.msk [vmem:[#allocation3 + $0xf0] sm:$0xff] %vm250_vm0, %v3130_v7 }
  0xa1   : > { %692 = vrot.lane.b32.xlu2 %v628_v11, %s2521_s25 }
  0xa3   : > { %702 = vrot.lane.b32.xlu1 %v2930_v12, %s2521_s25  ;;  %v3079_v12 = vld [vmem:[#allocation2 + $0xda] sm:$0xff] }
  0xa4   : > { %706 = vrot.lane.b32.xlu0 %v2932_v13, %s2521_s25  ;;  %3864 = vst [vmem:[#allocation25_spill] sm:$0xff] %v3079_v12  ;;  %v3103_v13 = vld [vmem:[#allocation2 + $0x140] sm:$0xff] }
  0xa5   : > { %430 = vst.msk [vmem:[#allocation3 + $0xd8] sm:$0xff] %vm250_vm0, %v3103_v13 }
  0xa9   : > { %698 = vrot.lane.b32.xlu2 %v2949_v19, %s2521_s25  ;;  %v3133_v19 = vld [vmem:[#allocation2 + $0x122] sm:$0xff] }
  0xaa   : > { %v504_v22 = vpop.permute.xlu1 %503  ;;  %3870 = vst [vmem:[#allocation31_spill] sm:$0xff] %v3133_v19 }
  0xab   : > { %708 = vrot.lane.b32.xlu1 %v2955_v20, %s2521_s25  ;;  %598 = vst.msk [vmem:[#allocation3 + $0x10] sm:$0xff] %vm595_vm2, %v504_v22  ;;  %v502_v26 = vpop.permute.xlu0 %501  ;;  %v508_v27 = vpop.permute.xlu2 %507  ;;  %v3022_v22 = vld [vmem:[#allocation2 + $0xd8] sm:$0xff] }
  0xac   : > { %712 = vrot.lane.b32.xlu0 %v2957_v21, %s2521_s25  ;;  %597 = vst.msk [vmem:[#allocation3 + $0x8] sm:$0xff] %vm595_vm2, %v502_v26  ;;  %v3052_v20 = vld [vmem:[#allocation2 + $0xb2] sm:$0xff]  ;;  %v3076_v21 = vld [vmem:[#allocation2 + $0x120] sm:$0xff] }
  0xad   : > { %600 = vst.msk [vmem:[#allocation3 + $0x20] sm:$0xff] %vm595_vm2, %v508_v27  ;;  %v3025_v27 = vld [vmem:[#allocation2 + $0x92] sm:$0xff] }
  0xae   : > { %3858 = vst [vmem:[#allocation19_spill] sm:$0xff] %v3025_v27 }
  0xaf   : > { %421 = vst.msk [vmem:[#allocation3 + $0x90] sm:$0xff] %vm250_vm0, %v3022_v22 }
  0xb0   : > { %3861 = vst [vmem:[#allocation22_spill] sm:$0xff] %v3052_v20 }
  0xb1   : > { %704 = vrot.lane.b32.xlu2 %v2974_v34, %s2521_s25  ;;  %427 = vst.msk [vmem:[#allocation3 + $0xc0] sm:$0xff] %vm250_vm0, %v3076_v21 }
  0xb3   : > { %714 = vrot.lane.b32.xlu1 %v2980_v38, %s2521_s25  ;;  %v510_v40 = vpop.permute.xlu2 %509  ;;  %v3049_v38 = vld [vmem:[#allocation2 + $0xf8] sm:$0xff] }
  0xb4   : > { %718 = vrot.lane.b32.xlu0 %v2984_v39, %s2521_s25  ;;  %601 = vst.msk [vmem:[#allocation3 + $0x28] sm:$0xff] %vm595_vm2, %v510_v40  ;;  %v3027_v40 = vld [vmem:[#allocation2 + $0xc8] sm:$0xff] }
  0xb5   : > { %420 = vst.msk [vmem:[#allocation3 + $0x88] sm:$0xff] %vm250_vm0, %v3027_v40 }
  0xb6   : > { %424 = vst.msk [vmem:[#allocation3 + $0xa8] sm:$0xff] %vm250_vm0, %v3049_v38 }
  0xb9   : > { %710 = vrot.lane.b32.xlu2 %v3001_v53, %s2521_s25 }
  0xbb   : > { %720 = vrot.lane.b32.xlu1 %v3007_v60, %s2521_s25  ;;  %v516_v0 = vpop.permute.xlu2 %515  ;;  %v3030_v60 = vld [vmem:[#allocation2 + $0xca] sm:$0xff] }
  0xbc   : > { %724 = vrot.lane.b32.xlu0 %v3009_v61, %s2521_s25  ;;  %604 = vst.msk [vmem:[#allocation3 + $0x40] sm:$0xff] %vm595_vm2, %v516_v0  ;;  %v3034_v0 = vld [vmem:[#allocation2 + $0xe2] sm:$0xff] }
  0xbd   : > { %v506_v11 = vpop.permute.xlu1 %505  ;;  %3859 = vst [vmem:[#allocation20_spill] sm:$0xff] %v3030_v60 }
  0xbe   : > { %599 = vst.msk [vmem:[#allocation3 + $0x18] sm:$0xff] %vm595_vm2, %v506_v11  ;;  %v512_v26 = vpop.permute.xlu0 %511 }
  0xbf   : > { %602 = vst.msk [vmem:[#allocation3 + $0x30] sm:$0xff] %vm595_vm2, %v512_v26  ;;  %v3045_v26 = vld [vmem:[#allocation2 + $0xe0] sm:$0xff] }
  0xc0   : > { %3860 = vst [vmem:[#allocation21_spill] sm:$0xff] %v3034_v0 }
  0xc1   : > { %716 = vrot.lane.b32.xlu2 %v3025_v27, %s2521_s25  ;;  %422 = vst.msk [vmem:[#allocation3 + $0x98] sm:$0xff] %vm250_vm0, %v3045_v26 }
  0xc3   : > { %726 = vrot.lane.b32.xlu1 %v3030_v60, %s2521_s25  ;;  %v522_v11 = vpop.permute.xlu2 %521  ;;  %v3054_v60 = vld [vmem:[#allocation2 + $0xf0] sm:$0xff] }
  0xc4   : > { %730 = vrot.lane.b32.xlu0 %v3034_v0, %s2521_s25  ;;  %607 = vst.msk [vmem:[#allocation3 + $0x58] sm:$0xff] %vm595_vm2, %v522_v11  ;;  %v3057_v0 = vld [vmem:[#allocation2 + $0xf2] sm:$0xff]  ;;  %v3061_v11 = vld [vmem:[#allocation2 + $0x10a] sm:$0xff] }
  0xc5   : > { %v514_v61 = vpop.permute.xlu1 %513  ;;  %3862 = vst [vmem:[#allocation23_spill] sm:$0xff] %v3057_v0 }
  0xc6   : > { %603 = vst.msk [vmem:[#allocation3 + $0x38] sm:$0xff] %vm595_vm2, %v514_v61  ;;  %v518_v39 = vpop.permute.xlu0 %517 }
  0xc7   : > { %605 = vst.msk [vmem:[#allocation3 + $0x48] sm:$0xff] %vm595_vm2, %v518_v39  ;;  %v3072_v39 = vld [vmem:[#allocation2 + $0x108] sm:$0xff] }
  0xc8   : > { %3863 = vst [vmem:[#allocation24_spill] sm:$0xff] %v3061_v11 }
  0xc9   : > { %722 = vrot.lane.b32.xlu2 %v3052_v20, %s2521_s25  ;;  %423 = vst.msk [vmem:[#allocation3 + $0xa0] sm:$0xff] %vm250_vm0, %v3054_v60 }
  0xca   : > { %425 = vst.msk [vmem:[#allocation3 + $0xb0] sm:$0xff] %vm250_vm0, %v3072_v39 }
  0xcb   : > { %732 = vrot.lane.b32.xlu1 %v3057_v0, %s2521_s25  ;;  %v528_v61 = vpop.permute.xlu2 %527  ;;  %v3081_v0 = vld [vmem:[#allocation2 + $0x110] sm:$0xff] }
  0xcc   : > { %736 = vrot.lane.b32.xlu0 %v3061_v11, %s2521_s25  ;;  %610 = vst.msk [vmem:[#allocation3 + $0x70] sm:$0xff] %vm595_vm2, %v528_v61  ;;  %v3084_v11 = vld [vmem:[#allocation2 + $0x112] sm:$0xff]  ;;  %v3088_v61 = vld [vmem:[#allocation2 + $0x12a] sm:$0xff] }
  0xcd   : > { %v520_v27 = vpop.permute.xlu1 %519  ;;  %3865 = vst [vmem:[#allocation26_spill] sm:$0xff] %v3084_v11 }
  0xce   : > { %606 = vst.msk [vmem:[#allocation3 + $0x50] sm:$0xff] %vm595_vm2, %v520_v27  ;;  %v524_v20 = vpop.permute.xlu0 %523 }
  0xcf   : > { %608 = vst.msk [vmem:[#allocation3 + $0x60] sm:$0xff] %vm595_vm2, %v524_v20  ;;  %v3099_v20 = vld [vmem:[#allocation2 + $0x128] sm:$0xff] }
  0xd0   : > { %3866 = vst [vmem:[#allocation27_spill] sm:$0xff] %v3088_v61 }
  0xd1   : > { %728 = vrot.lane.b32.xlu2 %v3079_v12, %s2521_s25  ;;  %426 = vst.msk [vmem:[#allocation3 + $0xb8] sm:$0xff] %vm250_vm0, %v3081_v0 }
  0xd2   : > { %428 = vst.msk [vmem:[#allocation3 + $0xc8] sm:$0xff] %vm250_vm0, %v3099_v20 }
  0xd3   : > { %738 = vrot.lane.b32.xlu1 %v3084_v11, %s2521_s25  ;;  %v534_v27 = vpop.permute.xlu2 %533  ;;  %v3108_v11 = vld [vmem:[#allocation2 + $0x138] sm:$0xff] }
  0xd4   : > { %742 = vrot.lane.b32.xlu0 %v3088_v61, %s2521_s25  ;;  %613 = vst.msk [vmem:[#allocation3 + $0x88] sm:$0xff] %vm595_vm2, %v534_v27  ;;  %v3111_v61 = vld [vmem:[#allocation2 + $0x13a] sm:$0xff]  ;;  %v3115_v27 = vld [vmem:[#allocation2 + $0x152] sm:$0xff] }
  0xd5   : > { %v526_v53 = vpop.permute.xlu1 %525  ;;  %3868 = vst [vmem:[#allocation29_spill] sm:$0xff] %v3111_v61 }
  0xd6   : > { %609 = vst.msk [vmem:[#allocation3 + $0x68] sm:$0xff] %vm595_vm2, %v526_v53  ;;  %v530_v12 = vpop.permute.xlu0 %529 }
  0xd7   : > { %611 = vst.msk [vmem:[#allocation3 + $0x78] sm:$0xff] %vm595_vm2, %v530_v12  ;;  %v3126_v12 = vld [vmem:[#allocation2 + $0x150] sm:$0xff] }
  0xd8   : > { %3869 = vst [vmem:[#allocation30_spill] sm:$0xff] %v3115_v27 }
  0xd9   : > { %734 = vrot.lane.b32.xlu2 %v3106_v6, %s2521_s25  ;;  %429 = vst.msk [vmem:[#allocation3 + $0xd0] sm:$0xff] %vm250_vm0, %v3108_v11 }
  0xda   : > { %431 = vst.msk [vmem:[#allocation3 + $0xe0] sm:$0xff] %vm250_vm0, %v3126_v12 }
  0xdb   : > { %744 = vrot.lane.b32.xlu1 %v3111_v61, %s2521_s25  ;;  %v540_v53 = vpop.permute.xlu2 %539  ;;  %v3135_v61 = vld [vmem:[#allocation2 + $0x158] sm:$0xff] }
  0xdc   : > { %748 = vrot.lane.b32.xlu0 %v3115_v27, %s2521_s25  ;;  %616 = vst.msk [vmem:[#allocation3 + $0xa0] sm:$0xff] %vm595_vm2, %v540_v53  ;;  %v3138_v27 = vld [vmem:[#allocation2 + $0x15a] sm:$0xff]  ;;  %v3142_v53 = vld [vmem:[#allocation2 + $0x172] sm:$0xff] }
  0xdd   : > { %v532_v34 = vpop.permute.xlu1 %531  ;;  %3871 = vst [vmem:[#allocation32_spill] sm:$0xff] %v3138_v27 }
  0xde   : > { %612 = vst.msk [vmem:[#allocation3 + $0x80] sm:$0xff] %vm595_vm2, %v532_v34  ;;  %v536_v6 = vpop.permute.xlu0 %535 }
  0xdf   : > { %614 = vst.msk [vmem:[#allocation3 + $0x90] sm:$0xff] %vm595_vm2, %v536_v6  ;;  %v3153_v6 = vld [vmem:[#allocation2 + $0x170] sm:$0xff] }
  0xe0   : > { %3872 = vst [vmem:[#allocation33_spill] sm:$0xff] %v3142_v53 }
  0xe1   : > { %740 = vrot.lane.b32.xlu2 %v3133_v19, %s2521_s25  ;;  %432 = vst.msk [vmem:[#allocation3 + $0xe8] sm:$0xff] %vm250_vm0, %v3135_v61 }
  0xe2   : > { %434 = vst.msk [vmem:[#allocation3 + $0xf8] sm:$0xff] %vm250_vm0, %v3153_v6 }
  0xe3   : > { %750 = vrot.lane.b32.xlu1 %v3138_v27, %s2521_s25  ;;  %v546_v34 = vpop.permute.xlu2 %545 }
  0xe4   : > { %754 = vrot.lane.b32.xlu0 %v3142_v53, %s2521_s25  ;;  %619 = vst.msk [vmem:[#allocation3 + $0xb8] sm:$0xff] %vm595_vm2, %v546_v34  ;;  %v3169_v53 = vld [vmem:[#allocation2 + $0x16a] sm:$0xff] }
  0xe5   : > { %v538_v55 = vpop.permute.xlu1 %537 }
  0xe6   : > { %615 = vst.msk [vmem:[#allocation3 + $0x98] sm:$0xff] %vm595_vm2, %v538_v55  ;;  %v542_v19 = vpop.permute.xlu0 %541 }
  0xe7   : > { %617 = vst.msk [vmem:[#allocation3 + $0xa8] sm:$0xff] %vm595_vm2, %v542_v19 }
  0xe9   : > { %746 = vrot.lane.b32.xlu2 %v3158_v58, %s2521_s25 }
  0xeb   : > { %885 = vrot.lane.b32.xlu1 %v2891_v1, %s2522_s26  ;;  %v552_v34 = vpop.permute.xlu2 %551 }
  0xec   : > { %889 = vrot.lane.b32.xlu0 %v2893_v4, %s2522_s26  ;;  %622 = vst.msk [vmem:[#allocation3 + $0xd0] sm:$0xff] %vm595_vm2, %v552_v34 }
  0xed   : > { %v544_v27 = vpop.permute.xlu1 %543 }
  0xee   : > { %618 = vst.msk [vmem:[#allocation3 + $0xb0] sm:$0xff] %vm595_vm2, %v544_v27  ;;  %v548_v55 = vpop.permute.xlu0 %547 }
  0xef   : > { %620 = vst.msk [vmem:[#allocation3 + $0xc0] sm:$0xff] %vm595_vm2, %v548_v55 }
  0xf1   : > { %752 = vrot.lane.b32.xlu2 %v3169_v53, %s2521_s25 }
  0xf3   : > { %891 = vrot.lane.b32.xlu1 %v2922_v10, %s2522_s26  ;;  %v558_v1 = vpop.permute.xlu2 %557 }
  0xf4   : > { %895 = vrot.lane.b32.xlu0 %v2941_v14, %s2522_s26  ;;  %625 = vst.msk [vmem:[#allocation3 + $0xe8] sm:$0xff] %vm595_vm2, %v558_v1 }
  0xf5   : > { %v550_v4 = vpop.permute.xlu1 %549 }
  0xf6   : > { %621 = vst.msk [vmem:[#allocation3 + $0xc8] sm:$0xff] %vm595_vm2, %v550_v4  ;;  %v554_v19 = vpop.permute.xlu0 %553  ;;  %v336_v4 = vld [vmem:[%s2639_s24 + $0xf0] sm:$0xff] }
  0xf7   : > { %623 = vst.msk [vmem:[#allocation3 + $0xd8] sm:$0xff] %vm595_vm2, %v554_v19 }
  0xf8   : > { %369 = vst.msk [vmem:[#allocation2 + $0x181] sm:$0xff] %vm250_vm0, %v336_v4 }
  0xf9   : > { %887 = vrot.lane.b32.xlu2 %v2916_v8, %s2522_s26 }
  0xfb   : > { %897 = vrot.lane.b32.xlu1 %v2947_v18, %s2522_s26  ;;  %v693_v10 = vpop.permute.xlu2 %692 }
  0xfc   : > { %901 = vrot.lane.b32.xlu0 %v2967_v28, %s2522_s26  ;;  %789 = vst.msk [vmem:[#allocation3] sm:$0xff] %vm788_vm3, %v693_v10 }
  0xfd   : > { %v556_v27 = vpop.permute.xlu1 %555 }
  0xfe   : > { %624 = vst.msk [vmem:[#allocation3 + $0xe0] sm:$0xff] %vm595_vm2, %v556_v27  ;;  %v560_v34 = vpop.permute.xlu0 %559 }
  0xff   : > { %626 = vst.msk [vmem:[#allocation3 + $0xf0] sm:$0xff] %vm595_vm2, %v560_v34  ;;  %v3332_v4 = vld [vmem:[#allocation2 + $0x181] sm:$0xff] }
 0x101   : > { %893 = vrot.lane.b32.xlu2 %v2920_v9, %s2522_s26 }
 0x103   : > { %903 = vrot.lane.b32.xlu1 %v2972_v33, %s2522_s26  ;;  %v699_v8 = vpop.permute.xlu2 %698 }
 0x104   : > { %907 = vrot.lane.b32.xlu0 %v2993_v45, %s2522_s26  ;;  %792 = vst.msk [vmem:[#allocation3 + $0x18] sm:$0xff] %vm788_vm3, %v699_v8  ;;  %v3257_v8 = vld [vmem:[#allocation2 + $0x180] sm:$0xff] }
 0x105   : > { %v562_v18 = vpop.permute.xlu1 %561 }
 0x106   : > { %627 = vst.msk [vmem:[#allocation3 + $0xf8] sm:$0xff] %vm595_vm2, %v562_v18  ;;  %v695_v55 = vpop.permute.xlu0 %694 }
 0x107   : > { %790 = vst.msk [vmem:[#allocation3 + $0x8] sm:$0xff] %vm788_vm3, %v695_v55 }
 0x109   : > { %899 = vrot.lane.b32.xlu2 %v2945_v16, %s2522_s26 }
 0x10b   : > { %909 = vrot.lane.b32.xlu1 %v2999_v50, %s2522_s26  ;;  %v705_v9 = vpop.permute.xlu2 %704 }
 0x10c   : > { %913 = vrot.lane.b32.xlu0 %v3018_v2, %s2522_s26  ;;  %795 = vst.msk [vmem:[#allocation3 + $0x30] sm:$0xff] %vm788_vm3, %v705_v9 }
 0x10d   : > { %v697_v33 = vpop.permute.xlu1 %696 }
 0x10e   : > { %791 = vst.msk [vmem:[#allocation3 + $0x10] sm:$0xff] %vm788_vm3, %v697_v33  ;;  %v701_v1 = vpop.permute.xlu0 %700 }
 0x10f   : > { %793 = vst.msk [vmem:[#allocation3 + $0x20] sm:$0xff] %vm788_vm3, %v701_v1 }
 0x111   : > { %905 = vrot.lane.b32.xlu2 %v2970_v32, %s2522_s26 }
 0x113   : > { %915 = vrot.lane.b32.xlu1 %v3027_v40, %s2522_s26  ;;  %v711_v50 = vpop.permute.xlu2 %710 }
 0x114   : > { %919 = vrot.lane.b32.xlu0 %v3045_v26, %s2522_s26  ;;  %798 = vst.msk [vmem:[#allocation3 + $0x48] sm:$0xff] %vm788_vm3, %v711_v50 }
 0x115   : > { %v703_v2 = vpop.permute.xlu1 %702 }
 0x116   : > { %794 = vst.msk [vmem:[#allocation3 + $0x28] sm:$0xff] %vm788_vm3, %v703_v2  ;;  %v707_v19 = vpop.permute.xlu0 %706 }
 0x117   : > { %796 = vst.msk [vmem:[#allocation3 + $0x38] sm:$0xff] %vm788_vm3, %v707_v19 }
 0x119   : > { %911 = vrot.lane.b32.xlu2 %v2997_v46, %s2522_s26 }
 0x11b   : > { %921 = vrot.lane.b32.xlu1 %v3054_v60, %s2522_s26  ;;  %v717_v40 = vpop.permute.xlu2 %716 }
 0x11c   : > { %925 = vrot.lane.b32.xlu0 %v3072_v39, %s2522_s26  ;;  %801 = vst.msk [vmem:[#allocation3 + $0x60] sm:$0xff] %vm788_vm3, %v717_v40 }
 0x11d   : > { %v709_v10 = vpop.permute.xlu1 %708 }
 0x11e   : > { %797 = vst.msk [vmem:[#allocation3 + $0x40] sm:$0xff] %vm788_vm3, %v709_v10  ;;  %v713_v27 = vpop.permute.xlu0 %712 }
 0x11f   : > { %799 = vst.msk [vmem:[#allocation3 + $0x50] sm:$0xff] %vm788_vm3, %v713_v27  ;;  %v3873_v27 = vld [vmem:[#allocation5_spill] sm:$0xff] }
 0x121   : > { %917 = vrot.lane.b32.xlu2 %v3022_v22, %s2522_s26 }
 0x123   : > { %927 = vrot.lane.b32.xlu1 %v3081_v0, %s2522_s26  ;;  %v723_v46 = vpop.permute.xlu2 %722  ;;  %v337_v0 = vld [vmem:[%s2639_s24 + $0xf8] sm:$0xff] }
 0x124   : > { %931 = vrot.lane.b32.xlu0 %v3099_v20, %s2522_s26  ;;  %804 = vst.msk [vmem:[#allocation3 + $0x78] sm:$0xff] %vm788_vm3, %v723_v46 }
 0x125   : > { %v715_v60 = vpop.permute.xlu1 %714  ;;  %370 = vst.msk [vmem:[#allocation2 + $0x189] sm:$0xff] %vm250_vm0, %v337_v0 }
 0x126   : > { %800 = vst.msk [vmem:[#allocation3 + $0x58] sm:$0xff] %vm788_vm3, %v715_v60  ;;  %v719_v39 = vpop.permute.xlu0 %718 }
 0x127   : > { %802 = vst.msk [vmem:[#allocation3 + $0x68] sm:$0xff] %vm788_vm3, %v719_v39  ;;  %v3874_v39 = vld [vmem:[#allocation4_spill] sm:$0xff] }
 0x129   : > { %923 = vrot.lane.b32.xlu2 %v3049_v38, %s2522_s26 }
 0x12b   : > { %933 = vrot.lane.b32.xlu1 %v3108_v11, %s2522_s26  ;;  %v729_v22 = vpop.permute.xlu2 %728 }
 0x12c   : > { %937 = vrot.lane.b32.xlu0 %v3126_v12, %s2522_s26  ;;  %807 = vst.msk [vmem:[#allocation3 + $0x90] sm:$0xff] %vm788_vm3, %v729_v22  ;;  %v3276_v9 = vld [vmem:[#allocation2 + $0x188] sm:$0xff] }
 0x12d   : > { %v721_v20 = vpop.permute.xlu1 %720  ;;  %v3324_v1 = vld [vmem:[#allocation2 + $0x189] sm:$0xff] }
 0x12e   : > { %803 = vst.msk [vmem:[#allocation3 + $0x70] sm:$0xff] %vm788_vm3, %v721_v20  ;;  %v725_v34 = vpop.permute.xlu0 %724  ;;  %2471 = vmatpush.xpose.msk.msra.mxu3 %vm250_vm0, %v3324_v1 }
 0x12f   : > { %805 = vst.msk [vmem:[#allocation3 + $0x80] sm:$0xff] %vm788_vm3, %v725_v34  ;;  %v3876_v34 = vld [vmem:[#allocation7_spill] sm:$0xff] }
 0x131   : > { %929 = vrot.lane.b32.xlu2 %v3076_v21, %s2522_s26 }
 0x132   : > { %2472 = vmatpush.xpose.msk.msra.mxu3 %vm250_vm0, %v3332_v4 }
 0x133   : > { %939 = vrot.lane.b32.xlu1 %v3135_v61, %s2522_s26  ;;  %v735_v38 = vpop.permute.xlu2 %734 }
 0x134   : > { %943 = vrot.lane.b32.xlu0 %v3153_v6, %s2522_s26  ;;  %810 = vst.msk [vmem:[#allocation3 + $0xa8] sm:$0xff] %vm788_vm3, %v735_v38 }
 0x135   : > { %v727_v11 = vpop.permute.xlu1 %726 }
 0x136   : > { %806 = vst.msk [vmem:[#allocation3 + $0x88] sm:$0xff] %vm788_vm3, %v727_v11  ;;  %v731_v12 = vpop.permute.xlu0 %730  ;;  %2473 = vmatpush.xpose.msk.msra.mxu3 %vm250_vm0, %v2882_v63  ;;  %v3877_v11 = vld [vmem:[#allocation13_spill] sm:$0xff] }
 0x137   : > { %808 = vst.msk [vmem:[#allocation3 + $0x98] sm:$0xff] %vm788_vm3, %v731_v12 }
 0x139   : > { %935 = vrot.lane.b32.xlu2 %v3103_v13, %s2522_s26 }
 0x13a   : > { %2474 = vmatpush.xpose.msk.msra.mxu3 %vm250_vm0, %v2866_v59 }
 0x13b   : > { %945 = vrot.lane.b32.xlu1 %v3257_v8, %s2522_s26  ;;  %v741_v21 = vpop.permute.xlu2 %740 }
 0x13c   : > { %1078 = vrot.lane.b32.xlu0 %v2665_v3, %s2523_s27  ;;  %813 = vst.msk [vmem:[#allocation3 + $0xc0] sm:$0xff] %vm788_vm3, %v741_v21 }
 0x13d   : > { %v733_v61 = vpop.permute.xlu1 %732 }
 0x13e   : > { %809 = vst.msk [vmem:[#allocation3 + $0xa0] sm:$0xff] %vm788_vm3, %v733_v61  ;;  %v737_v18 = vpop.permute.xlu0 %736  ;;  %2475 = vmatpush.xpose.msk.msra.mxu3 %vm250_vm0, %v2899_v5  ;;  %v3880_v61 = vld [vmem:[#allocation16_spill] sm:$0xff] }
 0x13f   : > { %811 = vst.msk [vmem:[#allocation3 + $0xb0] sm:$0xff] %vm788_vm3, %v737_v18 }
 0x141   : > { %941 = vrot.lane.b32.xlu2 %v3130_v7, %s2522_s26 }
 0x142   : > { %2476 = vmatpush.xpose.msk.msra.mxu3 %vm250_vm0, %v3873_v27 }
 0x143   : > { %1080 = vrot.lane.b32.xlu1 %v2711_v15, %s2523_s27  ;;  %v747_v13 = vpop.permute.xlu2 %746 }
 0x144   : > { %1084 = vrot.lane.b32.xlu0 %v2752_v29, %s2523_s27  ;;  %816 = vst.msk [vmem:[#allocation3 + $0xd8] sm:$0xff] %vm788_vm3, %v747_v13  ;;  %v3882_v13 = vld [vmem:[#allocation12_spill] sm:$0xff] }
 0x145   : > { %v739_v3 = vpop.permute.xlu1 %738 }
 0x146   : > { %812 = vst.msk [vmem:[#allocation3 + $0xb8] sm:$0xff] %vm788_vm3, %v739_v3  ;;  %v743_v55 = vpop.permute.xlu0 %742  ;;  %2477 = vmatpush.xpose.msk.msra.mxu3 %vm250_vm0, %v2850_v56 }
 0x147   : > { %814 = vst.msk [vmem:[#allocation3 + $0xc8] sm:$0xff] %vm788_vm3, %v743_v55  ;;  %v3883_v55 = vld [vmem:[#allocation19_spill] sm:$0xff] }
 0x149   : > { %947 = vrot.lane.b32.xlu2 %v3276_v9, %s2522_s26 }
 0x14a   : > { %2478 = vmatpush.xpose.msk.msra.mxu3 %vm250_vm0, %v2879_v62 }
 0x14b   : > { %1086 = vrot.lane.b32.xlu1 %v2717_v17, %s2523_s27  ;;  %v753_v15 = vpop.permute.xlu2 %752 }
 0x14c   : > { %1090 = vrot.lane.b32.xlu0 %v2770_v35, %s2523_s27  ;;  %819 = vst.msk [vmem:[#allocation3 + $0xf0] sm:$0xff] %vm788_vm3, %v753_v15  ;;  %v3884_v15 = vld [vmem:[#allocation11_spill] sm:$0xff] }
 0x14d   : > { %v745_v29 = vpop.permute.xlu1 %744 }
 0x14e   : > { %815 = vst.msk [vmem:[#allocation3 + $0xd0] sm:$0xff] %vm788_vm3, %v745_v29  ;;  %v749_v7 = vpop.permute.xlu0 %748  ;;  %2479 = vmatpush.xpose.msk.msra.mxu3 %vm250_vm0, %v3874_v39  ;;  %v3885_v29 = vld [vmem:[#allocation15_spill] sm:$0xff] }
 0x14f   : > { %817 = vst.msk [vmem:[#allocation3 + $0xe0] sm:$0xff] %vm788_vm3, %v749_v7 }
 0x151   : > { %1082 = vrot.lane.b32.xlu2 %v2733_v24, %s2523_s27 }
 0x152   : > { %2480 = vmatpush.xpose.msk.msra.mxu3 %vm250_vm0, %v2832_v52 }
 0x153   : > { %1092 = vrot.lane.b32.xlu1 %v2736_v25, %s2523_s27  ;;  %v888_v17 = vpop.permute.xlu2 %887 }
 0x154   : > { %1096 = vrot.lane.b32.xlu0 %v2792_v42, %s2523_s27  ;;  %983 = vst.msk [vmem:[#allocation3 + $0x8] sm:$0xff] %vm981_vm4, %v888_v17  ;;  %v3886_v17 = vld [vmem:[#allocation22_spill] sm:$0xff] }
 0x155   : > { %v751_v35 = vpop.permute.xlu1 %750 }
 0x156   : > { %818 = vst.msk [vmem:[#allocation3 + $0xe8] sm:$0xff] %vm788_vm3, %v751_v35  ;;  %v755_v33 = vpop.permute.xlu0 %754  ;;  %2481 = vmatpush.xpose.msk.msra.mxu3 %vm250_vm0, %v2862_v57 }
 0x157   : > { %820 = vst.msk [vmem:[#allocation3 + $0xf8] sm:$0xff] %vm788_vm3, %v755_v33  ;;  %v3887_v33 = vld [vmem:[#allocation14_spill] sm:$0xff] }
 0x159   : > { %1088 = vrot.lane.b32.xlu2 %v2731_v23, %s2523_s27 }
 0x15a   : > { %2482 = vmatpush.xpose.msk.msra.mxu3 %vm250_vm0, %v2830_v51 }
 0x15b   : > { %1098 = vrot.lane.b32.xlu1 %v2756_v31, %s2523_s27  ;;  %v894_v24 = vpop.permute.xlu2 %893 }
 0x15c   : > { %1102 = vrot.lane.b32.xlu0 %v2812_v47, %s2523_s27  ;;  %986 = vst.msk [vmem:[#allocation3 + $0x20] sm:$0xff] %vm981_vm4, %v894_v24  ;;  %v3888_v24 = vld [vmem:[#allocation18_spill] sm:$0xff] }
 0x15d   : > { %v886_v25 = vpop.permute.xlu1 %885 }
 0x15e   : > { %982 = vst.msk [vmem:[#allocation3] sm:$0xff] %vm981_vm4, %v886_v25  ;;  %v890_v42 = vpop.permute.xlu0 %889  ;;  %2483 = vmatpush.xpose.msk.msra.mxu3 %vm250_vm0, %v2816_v49 }
 0x15f   : > { %984 = vst.msk [vmem:[#allocation3 + $0x10] sm:$0xff] %vm981_vm4, %v890_v42  ;;  %v3889_v42 = vld [vmem:[#allocation25_spill] sm:$0xff] }
 0x161   : > { %1094 = vrot.lane.b32.xlu2 %v2754_v30, %s2523_s27 }
 0x162   : > { %2484 = vmatpush.xpose.msk.msra.mxu3 %vm250_vm0, %v2846_v54 }
 0x163   : > { %1104 = vrot.lane.b32.xlu1 %v2774_v37, %s2523_s27  ;;  %v900_v23 = vpop.permute.xlu2 %899 }
 0x164   : > { %1108 = vrot.lane.b32.xlu0 %v2786_v41, %s2523_s27  ;;  %989 = vst.msk [vmem:[#allocation3 + $0x38] sm:$0xff] %vm981_vm4, %v900_v23 }
 0x165   : > { %v892_v31 = vpop.permute.xlu1 %891 }
 0x166   : > { %985 = vst.msk [vmem:[#allocation3 + $0x18] sm:$0xff] %vm981_vm4, %v892_v31  ;;  %v896_v47 = vpop.permute.xlu0 %895  ;;  %2485 = vmatpush.xpose.msk.msra.mxu3 %vm250_vm0, %v2814_v48 }
 0x167   : > { %987 = vst.msk [vmem:[#allocation3 + $0x28] sm:$0xff] %vm981_vm4, %v896_v47  ;;  %v3890_v47 = vld [vmem:[#allocation17_spill] sm:$0xff] }
 0x169   : > { %1100 = vrot.lane.b32.xlu2 %v2772_v36, %s2523_s27 }
 0x16a   : > { %2486 = vmatpush.xpose.msk.msra.mxu3 %vm250_vm0, %v2796_v44 }
 0x16b   : > { %1110 = vrot.lane.b32.xlu1 %v2796_v44, %s2523_s27  ;;  %v906_v30 = vpop.permute.xlu2 %905 }
 0x16c   : > { %1114 = vrot.lane.b32.xlu0 %v2846_v54, %s2523_s27  ;;  %992 = vst.msk [vmem:[#allocation3 + $0x50] sm:$0xff] %vm981_vm4, %v906_v30  ;;  %v3891_v30 = vld [vmem:[#allocation21_spill] sm:$0xff] }
 0x16d   : > { %v898_v37 = vpop.permute.xlu1 %897 }
 0x16e   : > { %988 = vst.msk [vmem:[#allocation3 + $0x30] sm:$0xff] %vm981_vm4, %v898_v37  ;;  %v902_v41 = vpop.permute.xlu0 %901 }
 0x16f   : > { %990 = vst.msk [vmem:[#allocation3 + $0x40] sm:$0xff] %vm981_vm4, %v902_v41  ;;  %v3892_v41 = vld [vmem:[#allocation28_spill] sm:$0xff] }
 0x171   : > { %1106 = vrot.lane.b32.xlu2 %v2794_v43, %s2523_s27 }
 0x173   : > { %1116 = vrot.lane.b32.xlu1 %v2816_v49, %s2523_s27  ;;  %v912_v36 = vpop.permute.xlu2 %911  ;;  %v3881_v49 = vld [vmem:[#allocation8_spill] sm:$0xff] }
 0x174   : > { %1120 = vrot.lane.b32.xlu0 %v2862_v57, %s2523_s27  ;;  %995 = vst.msk [vmem:[#allocation3 + $0x68] sm:$0xff] %vm981_vm4, %v912_v36  ;;  %v3878_v57 = vld [vmem:[#allocation6_spill] sm:$0xff] }
 0x175   : > { %v904_v50 = vpop.permute.xlu1 %903 }
 0x176   : > { %991 = vst.msk [vmem:[#allocation3 + $0x48] sm:$0xff] %vm981_vm4, %v904_v50  ;;  %v908_v2 = vpop.permute.xlu0 %907 }
 0x177   : > { %993 = vst.msk [vmem:[#allocation3 + $0x58] sm:$0xff] %vm981_vm4, %v908_v2  ;;  %v3893_v2 = vld [vmem:[#allocation20_spill] sm:$0xff] }
 0x179   : > { %1112 = vrot.lane.b32.xlu2 %v2814_v48, %s2523_s27 }
 0x17b   : > { %1122 = vrot.lane.b32.xlu1 %v2832_v52, %s2523_s27  ;;  %v918_v43 = vpop.permute.xlu2 %917 }
 0x17c   : > { %1126 = vrot.lane.b32.xlu0 %v2879_v62, %s2523_s27  ;;  %998 = vst.msk [vmem:[#allocation3 + $0x80] sm:$0xff] %vm981_vm4, %v918_v43  ;;  %v3894_v43 = vld [vmem:[#allocation24_spill] sm:$0xff] }
 0x17d   : > { %v910_v19 = vpop.permute.xlu1 %909 }
 0x17e   : > { %994 = vst.msk [vmem:[#allocation3 + $0x60] sm:$0xff] %vm981_vm4, %v910_v19  ;;  %v914_v40 = vpop.permute.xlu0 %913 }
 0x17f   : > { %996 = vst.msk [vmem:[#allocation3 + $0x70] sm:$0xff] %vm981_vm4, %v914_v40  ;;  %v3895_v40 = vld [vmem:[#allocation31_spill] sm:$0xff] }
 0x181   : > { %1118 = vrot.lane.b32.xlu2 %v2830_v51, %s2523_s27 }
 0x183   : > { %1128 = vrot.lane.b32.xlu1 %v2850_v56, %s2523_s27  ;;  %v924_v10 = vpop.permute.xlu2 %923 }
 0x184   : > { %1132 = vrot.lane.b32.xlu0 %v2899_v5, %s2523_s27  ;;  %1001 = vst.msk [vmem:[#allocation3 + $0x98] sm:$0xff] %vm981_vm4, %v924_v10 }
 0x185   : > { %v916_v46 = vpop.permute.xlu1 %915 }
 0x186   : > { %997 = vst.msk [vmem:[#allocation3 + $0x78] sm:$0xff] %vm981_vm4, %v916_v46  ;;  %v920_v60 = vpop.permute.xlu0 %919  ;;  %v3896_v46 = vld [vmem:[#allocation23_spill] sm:$0xff] }
 0x187   : > { %999 = vst.msk [vmem:[#allocation3 + $0x88] sm:$0xff] %vm981_vm4, %v920_v60  ;;  %v3897_v60 = vld [vmem:[#allocation27_spill] sm:$0xff] }
 0x189   : > { %1124 = vrot.lane.b32.xlu2 %v3874_v39, %s2523_s27 }
 0x18b   : > { %1134 = vrot.lane.b32.xlu1 %v2866_v59, %s2523_s27  ;;  %v930_v5 = vpop.permute.xlu2 %929  ;;  %v3875_v59 = vld [vmem:[#allocation10_spill] sm:$0xff] }
 0x18c   : > { %1138 = vrot.lane.b32.xlu0 %v3332_v4, %s2523_s27  ;;  %1004 = vst.msk [vmem:[#allocation3 + $0xb0] sm:$0xff] %vm981_vm4, %v930_v5 }
 0x18d   : > { %v922_v22 = vpop.permute.xlu1 %921 }
 0x18e   : > { %1000 = vst.msk [vmem:[#allocation3 + $0x90] sm:$0xff] %vm981_vm4, %v922_v22  ;;  %v926_v0 = vpop.permute.xlu0 %925 }
 0x18f   : > { %1002 = vst.msk [vmem:[#allocation3 + $0xa0] sm:$0xff] %vm981_vm4, %v926_v0  ;;  %v3898_v0 = vld [vmem:[#allocation26_spill] sm:$0xff] }
 0x191   : > { %1130 = vrot.lane.b32.xlu2 %v3873_v27, %s2523_s27 }
 0x193   : > { %1140 = vrot.lane.b32.xlu1 %v3324_v1, %s2523_s27  ;;  %v936_v56 = vpop.permute.xlu2 %935 }
 0x194   : > { %1273 = vrot.lane.b32.xlu0 %v3875_v59, %s2524_s28  ;;  %1007 = vst.msk [vmem:[#allocation3 + $0xc8] sm:$0xff] %vm981_vm4, %v936_v56  ;;  %v3899_v56 = vld [vmem:[#allocation30_spill] sm:$0xff] }
 0x195   : > { %v928_v62 = vpop.permute.xlu1 %927 }
 0x196   : > { %1003 = vst.msk [vmem:[#allocation3 + $0xa8] sm:$0xff] %vm981_vm4, %v928_v62  ;;  %v932_v20 = vpop.permute.xlu0 %931 }
 0x197   : > { %1005 = vst.msk [vmem:[#allocation3 + $0xb8] sm:$0xff] %vm981_vm4, %v932_v20  ;;  %v3486_v20 = vld [vmem:[#allocation2 + $0x18a] sm:$0xff] }
 0x199   : > { %1136 = vrot.lane.b32.xlu2 %v2882_v63, %s2523_s27  ;;  %v3879_v63 = vld [vmem:[#allocation9_spill] sm:$0xff] }
 0x19b   : > { %1275 = vrot.lane.b32.xlu1 %v3876_v34, %s2524_s28  ;;  %v942_v38 = vpop.permute.xlu2 %941  ;;  %v3900_v34 = vld [vmem:[#allocation29_spill] sm:$0xff] }
 0x19c   : > { %1279 = vrot.lane.b32.xlu0 %v3877_v11, %s2524_s28  ;;  %1010 = vst.msk [vmem:[#allocation3 + $0xe0] sm:$0xff] %vm981_vm4, %v942_v38  ;;  %v3901_v38 = vld [vmem:[#allocation33_spill] sm:$0xff] }
 0x19d   : > { %v934_v52 = vpop.permute.xlu1 %933 }
 0x19e   : > { %1006 = vst.msk [vmem:[#allocation3 + $0xc0] sm:$0xff] %vm981_vm4, %v934_v52  ;;  %v938_v12 = vpop.permute.xlu0 %937 }
 0x19f   : > { %1008 = vst.msk [vmem:[#allocation3 + $0xd0] sm:$0xff] %vm981_vm4, %v938_v12  ;;  %v1401_v12 = vld [vmem:[#allocation2 + $0x30] sm:$0xff] }
 0x1a1   : > { %1271 = vrot.lane.b32.xlu2 %v3878_v57, %s2524_s28  ;;  %v1403_v57 = vld [vmem:[#allocation2 + $0x48] sm:$0xff] }
 0x1a3   : > { %1281 = vrot.lane.b32.xlu1 %v3879_v63, %s2524_s28  ;;  %v948_v21 = vpop.permute.xlu2 %947  ;;  %v3902_v63 = vld [vmem:[#allocation32_spill] sm:$0xff] }
 0x1a4   : > { %1285 = vrot.lane.b32.xlu0 %v3880_v61, %s2524_s28  ;;  %1013 = vst.msk [vmem:[#allocation3 + $0xf8] sm:$0xff] %vm981_vm4, %v948_v21 }
 0x1a5   : > { %v940_v51 = vpop.permute.xlu1 %939 }
 0x1a6   : > { %1009 = vst.msk [vmem:[#allocation3 + $0xd8] sm:$0xff] %vm981_vm4, %v940_v51  ;;  %v944_v18 = vpop.permute.xlu0 %943 }
 0x1a7   : > { %1011 = vst.msk [vmem:[#allocation3 + $0xe8] sm:$0xff] %vm981_vm4, %v944_v18  ;;  %v3503_v18 = vld [vmem:[#allocation2 + $0x182] sm:$0xff] }
 0x1a9   : > { %1277 = vrot.lane.b32.xlu2 %v3881_v49, %s2524_s28 }
 0x1ab   : > { %1287 = vrot.lane.b32.xlu1 %v3882_v13, %s2524_s28  ;;  %v1083_v3 = vpop.permute.xlu2 %1082 }
 0x1ac   : > { %1291 = vrot.lane.b32.xlu0 %v3883_v55, %s2524_s28  ;;  %1177 = vst.msk [vmem:[#allocation3 + $0x10] sm:$0xff] %vm1174_vm5, %v1083_v3  ;;  %v1402_v55 = vld [vmem:[#allocation2 + $0x38] sm:$0xff] }
 0x1ad   : > { %v946_v54 = vpop.permute.xlu1 %945 }
 0x1ae   : > { %1012 = vst.msk [vmem:[#allocation3 + $0xf0] sm:$0xff] %vm981_vm4, %v946_v54  ;;  %v1079_v48 = vpop.permute.xlu0 %1078 }
 0x1af   : > { %1175 = vst.msk [vmem:[#allocation3] sm:$0xff] %vm1174_vm5, %v1079_v48  ;;  %v1405_v48 = vld [vmem:[#allocation2 + $0x60] sm:$0xff] }
 0x1b1   : > { %1283 = vrot.lane.b32.xlu2 %v3884_v15, %s2524_s28  ;;  %v1432_v15 = vld [vmem:[#allocation2 + $0x1a0] sm:$0xff] }
 0x1b3   : > { %1293 = vrot.lane.b32.xlu1 %v3885_v29, %s2524_s28  ;;  %v1089_v7 = vpop.permute.xlu2 %1088 }
 0x1b4   : > { %1297 = vrot.lane.b32.xlu0 %v3886_v17, %s2524_s28  ;;  %1180 = vst.msk [vmem:[#allocation3 + $0x28] sm:$0xff] %vm1174_vm5, %v1089_v7  ;;  %v1408_v7 = vld [vmem:[#allocation2 + $0x80] sm:$0xff] }
 0x1b5   : > { %v1081_v35 = vpop.permute.xlu1 %1080  ;;  %v1609_v17 = vld [vmem:[#allocation2 + $0xe1] sm:$0xff] }
 0x1b6   : > { %1176 = vst.msk [vmem:[#allocation3 + $0x8] sm:$0xff] %vm1174_vm5, %v1081_v35  ;;  %v1085_v44 = vpop.permute.xlu0 %1084  ;;  %v1802_v35 = vld [vmem:[#allocation2 + $0xe2] sm:$0xff] }
 0x1b7   : > { %1178 = vst.msk [vmem:[#allocation3 + $0x18] sm:$0xff] %vm1174_vm5, %v1085_v44 }
 0x1b9   : > { %1289 = vrot.lane.b32.xlu2 %v3887_v33, %s2524_s28 }
 0x1bb   : > { %1299 = vrot.lane.b32.xlu1 %v3888_v24, %s2524_s28  ;;  %v1095_v25 = vpop.permute.xlu2 %1094  ;;  %v1818_v24 = vld [vmem:[#allocation2 + $0x1a2] sm:$0xff] }
 0x1bc   : > { %1303 = vrot.lane.b32.xlu0 %v3889_v42, %s2524_s28  ;;  %1183 = vst.msk [vmem:[#allocation3 + $0x40] sm:$0xff] %vm1174_vm5, %v1095_v25  ;;  %v1431_v25 = vld [vmem:[#allocation2 + $0x198] sm:$0xff] }
 0x1bd   : > { %v1087_v23 = vpop.permute.xlu1 %1086 }
 0x1be   : > { %1179 = vst.msk [vmem:[#allocation3 + $0x20] sm:$0xff] %vm1174_vm5, %v1087_v23  ;;  %v1091_v31 = vpop.permute.xlu0 %1090 }
 0x1bf   : > { %1181 = vst.msk [vmem:[#allocation3 + $0x30] sm:$0xff] %vm1174_vm5, %v1091_v31 }
 0x1c1   : > { %1295 = vrot.lane.b32.xlu2 %v3890_v47, %s2524_s28  ;;  %v1625_v47 = vld [vmem:[#allocation2 + $0x1a1] sm:$0xff] }
 0x1c3   : > { %1305 = vrot.lane.b32.xlu1 %v3891_v30, %s2524_s28  ;;  %v1101_v37 = vpop.permute.xlu2 %1100  ;;  %v1608_v30 = vld [vmem:[#allocation2 + $0xd9] sm:$0xff] }
 0x1c4   : > { %1309 = vrot.lane.b32.xlu0 %v3892_v41, %s2524_s28  ;;  %1186 = vst.msk [vmem:[#allocation3 + $0x58] sm:$0xff] %vm1174_vm5, %v1101_v37  ;;  %v1801_v37 = vld [vmem:[#allocation2 + $0xda] sm:$0xff] }
 0x1c5   : > { %v1093_v36 = vpop.permute.xlu1 %1092 }
 0x1c6   : > { %1182 = vst.msk [vmem:[#allocation3 + $0x38] sm:$0xff] %vm1174_vm5, %v1093_v36  ;;  %v1097_v50 = vpop.permute.xlu0 %1096 }
 0x1c7   : > { %1184 = vst.msk [vmem:[#allocation3 + $0x48] sm:$0xff] %vm1174_vm5, %v1097_v50  ;;  %v1415_v50 = vld [vmem:[#allocation2 + $0xd8] sm:$0xff] }
 0x1c9   : > { %1301 = vrot.lane.b32.xlu2 %v3893_v2, %s2524_s28  ;;  %v1817_v2 = vld [vmem:[#allocation2 + $0x19a] sm:$0xff] }
 0x1cb   : > { %1311 = vrot.lane.b32.xlu1 %v3894_v43, %s2524_s28  ;;  %v1107_v19 = vpop.permute.xlu2 %1106 }
 0x1cc   : > { %1315 = vrot.lane.b32.xlu0 %v3895_v40, %s2524_s28  ;;  %1189 = vst.msk [vmem:[#allocation3 + $0x70] sm:$0xff] %vm1174_vm5, %v1107_v19 }
 0x1cd   : > { %v1099_v10 = vpop.permute.xlu1 %1098 }
 0x1ce   : > { %1185 = vst.msk [vmem:[#allocation3 + $0x50] sm:$0xff] %vm1174_vm5, %v1099_v10  ;;  %v1103_v27 = vpop.permute.xlu0 %1102  ;;  %v1624_v10 = vld [vmem:[#allocation2 + $0x199] sm:$0xff] }
 0x1cf   : > { %1187 = vst.msk [vmem:[#allocation3 + $0x60] sm:$0xff] %vm1174_vm5, %v1103_v27  ;;  %v1607_v27 = vld [vmem:[#allocation2 + $0xc9] sm:$0xff] }
 0x1d1   : > { %1307 = vrot.lane.b32.xlu2 %v3896_v46, %s2524_s28  ;;  %v1800_v46 = vld [vmem:[#allocation2 + $0xca] sm:$0xff] }
 0x1d3   : > { %1317 = vrot.lane.b32.xlu1 %v3897_v60, %s2524_s28  ;;  %v1113_v39 = vpop.permute.xlu2 %1112 }
 0x1d4   : > { %1321 = vrot.lane.b32.xlu0 %v3158_v58, %s2524_s28  ;;  %1192 = vst.msk [vmem:[#allocation3 + $0x88] sm:$0xff] %vm1174_vm5, %v1113_v39 }
 0x1d5   : > { %v1105_v5 = vpop.permute.xlu1 %1104 }
 0x1d6   : > { %1188 = vst.msk [vmem:[#allocation3 + $0x68] sm:$0xff] %vm1174_vm5, %v1105_v5  ;;  %v1109_v22 = vpop.permute.xlu0 %1108  ;;  %v1414_v5 = vld [vmem:[#allocation2 + $0xc8] sm:$0xff] }
 0x1d7   : > { %1190 = vst.msk [vmem:[#allocation3 + $0x78] sm:$0xff] %vm1174_vm5, %v1109_v22 }
 0x1d9   : > { %1313 = vrot.lane.b32.xlu2 %v3898_v0, %s2524_s28 }
 0x1db   : > { %1323 = vrot.lane.b32.xlu1 %v3899_v56, %s2524_s28  ;;  %v1119_v59 = vpop.permute.xlu2 %1118 }
 0x1dc   : > { %1327 = vrot.lane.b32.xlu0 %v3169_v53, %s2524_s28  ;;  %1195 = vst.msk [vmem:[#allocation3 + $0xa0] sm:$0xff] %vm1174_vm5, %v1119_v59  ;;  %v1606_v59 = vld [vmem:[#allocation2 + $0xc1] sm:$0xff] }
 0x1dd   : > { %v1111_v58 = vpop.permute.xlu1 %1110 }
 0x1de   : > { %1191 = vst.msk [vmem:[#allocation3 + $0x80] sm:$0xff] %vm1174_vm5, %v1111_v58  ;;  %v1115_v62 = vpop.permute.xlu0 %1114  ;;  %v1799_v58 = vld [vmem:[#allocation2 + $0xc2] sm:$0xff] }
 0x1df   : > { %1193 = vst.msk [vmem:[#allocation3 + $0x90] sm:$0xff] %vm1174_vm5, %v1115_v62 }
 0x1e1   : > { %1319 = vrot.lane.b32.xlu2 %v3900_v34, %s2524_s28  ;;  %v1413_v34 = vld [vmem:[#allocation2 + $0xc0] sm:$0xff] }
 0x1e3   : > { %1329 = vrot.lane.b32.xlu1 %v3901_v38, %s2524_s28  ;;  %v1125_v11 = vpop.permute.xlu2 %1124 }
 0x1e4   : > { %1333 = vrot.lane.b32.xlu0 %v3486_v20, %s2524_s28  ;;  %1198 = vst.msk [vmem:[#allocation3 + $0xb8] sm:$0xff] %vm1174_vm5, %v1125_v11 }
 0x1e5   : > { %v1117_v53 = vpop.permute.xlu1 %1116 }
 0x1e6   : > { %1194 = vst.msk [vmem:[#allocation3 + $0x98] sm:$0xff] %vm1174_vm5, %v1117_v53  ;;  %v1121_v52 = vpop.permute.xlu0 %1120  ;;  %v1605_v53 = vld [vmem:[#allocation2 + $0xb1] sm:$0xff] }
 0x1e7   : > { %1196 = vst.msk [vmem:[#allocation3 + $0xa8] sm:$0xff] %vm1174_vm5, %v1121_v52  ;;  %v1798_v52 = vld [vmem:[#allocation2 + $0xb2] sm:$0xff] }
 0x1e9   : > { %1325 = vrot.lane.b32.xlu2 %v3902_v63, %s2524_s28  ;;  %v1412_v63 = vld [vmem:[#allocation2 + $0xb0] sm:$0xff] }
 0x1eb   : > { %1465 = vrot.lane.b32.xlu1 %v1401_v12, %s2525_s29  ;;  %v1131_v21 = vpop.permute.xlu2 %1130 }
 0x1ec   : > { %1469 = vrot.lane.b32.xlu0 %v1403_v57, %s2525_s29  ;;  %1201 = vst.msk [vmem:[#allocation3 + $0xd0] sm:$0xff] %vm1174_vm5, %v1131_v21  ;;  %v1814_v21 = vld [vmem:[#allocation2 + $0x172] sm:$0xff] }
 0x1ed   : > { %v1123_v61 = vpop.permute.xlu1 %1122 }
 0x1ee   : > { %1197 = vst.msk [vmem:[#allocation3 + $0xb0] sm:$0xff] %vm1174_vm5, %v1123_v61  ;;  %v1127_v51 = vpop.permute.xlu0 %1126  ;;  %v1427_v61 = vld [vmem:[#allocation2 + $0x168] sm:$0xff] }
 0x1ef   : > { %1199 = vst.msk [vmem:[#allocation3 + $0xc0] sm:$0xff] %vm1174_vm5, %v1127_v51 }
 0x1f1   : > { %1331 = vrot.lane.b32.xlu2 %v3503_v18, %s2524_s28 }
 0x1f3   : > { %1471 = vrot.lane.b32.xlu1 %v2941_v14, %s2525_s29  ;;  %v1137_v49 = vpop.permute.xlu2 %1136 }
 0x1f4   : > { %1475 = vrot.lane.b32.xlu0 %v2945_v16, %s2525_s29  ;;  %1204 = vst.msk [vmem:[#allocation3 + $0xe8] sm:$0xff] %vm1174_vm5, %v1137_v49  ;;  %v1621_v49 = vld [vmem:[#allocation2 + $0x171] sm:$0xff] }
 0x1f5   : > { %v1129_v13 = vpop.permute.xlu1 %1128 }
 0x1f6   : > { %1200 = vst.msk [vmem:[#allocation3 + $0xc8] sm:$0xff] %vm1174_vm5, %v1129_v13  ;;  %v1133_v3 = vpop.permute.xlu0 %1132  ;;  %v1604_v13 = vld [vmem:[#allocation2 + $0xa9] sm:$0xff] }
 0x1f7   : > { %1202 = vst.msk [vmem:[#allocation3 + $0xd8] sm:$0xff] %vm1174_vm5, %v1133_v3  ;;  %v1797_v3 = vld [vmem:[#allocation2 + $0xaa] sm:$0xff] }
 0x1f9   : > { %1467 = vrot.lane.b32.xlu2 %v1402_v55, %s2525_s29 }
 0x1fb   : > { %1477 = vrot.lane.b32.xlu1 %v2967_v28, %s2525_s29  ;;  %v1272_v14 = vpop.permute.xlu2 %1271 }
 0x1fc   : > { %1481 = vrot.lane.b32.xlu0 %v2970_v32, %s2525_s29  ;;  %1368 = vst.msk [vmem:[#allocation3] sm:$0xff] %vm1367_vm6, %v1272_v14 }
 0x1fd   : > { %v1135_v16 = vpop.permute.xlu1 %1134 }
 0x1fe   : > { %1203 = vst.msk [vmem:[#allocation3 + $0xe0] sm:$0xff] %vm1174_vm5, %v1135_v16  ;;  %v1139_v54 = vpop.permute.xlu0 %1138 }
 0x1ff   : > { %1205 = vst.msk [vmem:[#allocation3 + $0xf0] sm:$0xff] %vm1174_vm5, %v1139_v54  ;;  %v1411_v54 = vld [vmem:[#allocation2 + $0xa8] sm:$0xff] }
 0x201   : > { %1473 = vrot.lane.b32.xlu2 %v1405_v48, %s2525_s29  ;;  %v1813_v48 = vld [vmem:[#allocation2 + $0x16a] sm:$0xff] }
 0x203   : > { %1483 = vrot.lane.b32.xlu1 %v2993_v45, %s2525_s29  ;;  %v1278_v28 = vpop.permute.xlu2 %1277 }
 0x204   : > { %1527 = vrot.lane.b32.xlu0 %v1432_v15, %s2525_s29  ;;  %1371 = vst.msk [vmem:[#allocation3 + $0x18] sm:$0xff] %vm1367_vm6, %v1278_v28  ;;  %v1603_v15 = vld [vmem:[#allocation2 + $0x99] sm:$0xff] }
 0x205   : > { %v1141_v32 = vpop.permute.xlu1 %1140 }
 0x206   : > { %1206 = vst.msk [vmem:[#allocation3 + $0xf8] sm:$0xff] %vm1174_vm5, %v1141_v32  ;;  %v1274_v29 = vpop.permute.xlu0 %1273 }
 0x207   : > { %1369 = vst.msk [vmem:[#allocation3 + $0x8] sm:$0xff] %vm1367_vm6, %v1274_v29 }
 0x209   : > { %1479 = vrot.lane.b32.xlu2 %v1408_v7, %s2525_s29  ;;  %v1620_v7 = vld [vmem:[#allocation2 + $0x169] sm:$0xff] }
 0x20b   : > { %1688 = vrot.lane.b32.xlu1 %v1609_v17, %s2526_s30  ;;  %v1284_v45 = vpop.permute.xlu2 %1283  ;;  %v1619_v17 = vld [vmem:[#allocation2 + $0x159] sm:$0xff] }
 0x20c   : > { %1881 = vrot.lane.b32.xlu0 %v1802_v35, %s2527_s6  ;;  %1374 = vst.msk [vmem:[#allocation3 + $0x30] sm:$0xff] %vm1367_vm6, %v1284_v45  ;;  %v1812_v35 = vld [vmem:[#allocation2 + $0x15a] sm:$0xff] }
 0x20d   : > { %v1276_v44 = vpop.permute.xlu1 %1275 }
 0x20e   : > { %1370 = vst.msk [vmem:[#allocation3 + $0x10] sm:$0xff] %vm1367_vm6, %v1276_v44  ;;  %v1280_v33 = vpop.permute.xlu0 %1279 }
 0x20f   : > { %1372 = vst.msk [vmem:[#allocation3 + $0x20] sm:$0xff] %vm1367_vm6, %v1280_v33 }
 0x211   : > { %1495 = vrot.lane.b32.xlu2 %v3045_v26, %s2525_s29 }
 0x213   : > { %1913 = vrot.lane.b32.xlu1 %v1818_v24, %s2527_s6  ;;  %v1290_v42 = vpop.permute.xlu2 %1289  ;;  %v1426_v24 = vld [vmem:[#allocation2 + $0x158] sm:$0xff] }
 0x214   : > { %1525 = vrot.lane.b32.xlu0 %v1431_v25, %s2525_s29  ;;  %1377 = vst.msk [vmem:[#allocation3 + $0x48] sm:$0xff] %vm1367_vm6, %v1290_v42  ;;  %v1425_v25 = vld [vmem:[#allocation2 + $0x150] sm:$0xff] }
 0x215   : > { %v1282_v23 = vpop.permute.xlu1 %1281  ;;  %v1618_v42 = vld [vmem:[#allocation2 + $0x151] sm:$0xff] }
 0x216   : > { %1373 = vst.msk [vmem:[#allocation3 + $0x28] sm:$0xff] %vm1367_vm6, %v1282_v23  ;;  %v1286_v31 = vpop.permute.xlu0 %1285 }
 0x217   : > { %1375 = vst.msk [vmem:[#allocation3 + $0x38] sm:$0xff] %vm1367_vm6, %v1286_v31 }
 0x219   : > { %1720 = vrot.lane.b32.xlu2 %v1625_v47, %s2526_s30 }
 0x21b   : > { %1686 = vrot.lane.b32.xlu1 %v1608_v30, %s2526_s30  ;;  %v1296_v26 = vpop.permute.xlu2 %1295  ;;  %v1796_v30 = vld [vmem:[#allocation2 + $0x9a] sm:$0xff] }
 0x21c   : > { %1879 = vrot.lane.b32.xlu0 %v1801_v37, %s2527_s6  ;;  %1380 = vst.msk [vmem:[#allocation3 + $0x60] sm:$0xff] %vm1367_vm6, %v1296_v26  ;;  %v1795_v37 = vld [vmem:[#allocation2 + $0x92] sm:$0xff]  ;;  %v1424_v26 = vld [vmem:[#allocation2 + $0x140] sm:$0xff] }
 0x21d   : > { %v1288_v41 = vpop.permute.xlu1 %1287 }
 0x21e   : > { %1376 = vst.msk [vmem:[#allocation3 + $0x40] sm:$0xff] %vm1367_vm6, %v1288_v41  ;;  %v1292_v36 = vpop.permute.xlu0 %1291 }
 0x21f   : > { %1378 = vst.msk [vmem:[#allocation3 + $0x50] sm:$0xff] %vm1367_vm6, %v1292_v36 }
 0x221   : > { %1493 = vrot.lane.b32.xlu2 %v1415_v50, %s2525_s29 }
 0x223   : > { %1911 = vrot.lane.b32.xlu1 %v1817_v2, %s2527_s6  ;;  %v1302_v43 = vpop.permute.xlu2 %1301  ;;  %v1602_v2 = vld [vmem:[#allocation2 + $0x91] sm:$0xff] }
 0x224   : > { %1523 = vrot.lane.b32.xlu0 %v3276_v9, %s2525_s29  ;;  %1383 = vst.msk [vmem:[#allocation3 + $0x78] sm:$0xff] %vm1367_vm6, %v1302_v43  ;;  %v1601_v43 = vld [vmem:[#allocation2 + $0x81] sm:$0xff] }
 0x225   : > { %v1294_v19 = vpop.permute.xlu1 %1293 }
 0x226   : > { %1379 = vst.msk [vmem:[#allocation3 + $0x58] sm:$0xff] %vm1367_vm6, %v1294_v19  ;;  %v1298_v40 = vpop.permute.xlu0 %1297  ;;  %v1794_v19 = vld [vmem:[#allocation2 + $0x82] sm:$0xff] }
 0x227   : > { %1381 = vst.msk [vmem:[#allocation3 + $0x68] sm:$0xff] %vm1367_vm6, %v1298_v40 }
 0x229   : > { %1718 = vrot.lane.b32.xlu2 %v1624_v10, %s2526_s30 }
 0x22b   : > { %1684 = vrot.lane.b32.xlu1 %v1607_v27, %s2526_s30  ;;  %v1308_v60 = vpop.permute.xlu2 %1307 }
 0x22c   : > { %1877 = vrot.lane.b32.xlu0 %v1800_v46, %s2527_s6  ;;  %1386 = vst.msk [vmem:[#allocation3 + $0x90] sm:$0xff] %vm1367_vm6, %v1308_v60  ;;  %v1811_v60 = vld [vmem:[#allocation2 + $0x152] sm:$0xff] }
 0x22d   : > { %v1300_v9 = vpop.permute.xlu1 %1299 }
 0x22e   : > { %1382 = vst.msk [vmem:[#allocation3 + $0x70] sm:$0xff] %vm1367_vm6, %v1300_v9  ;;  %v1304_v39 = vpop.permute.xlu0 %1303  ;;  %v1810_v9 = vld [vmem:[#allocation2 + $0x142] sm:$0xff] }
 0x22f   : > { %1384 = vst.msk [vmem:[#allocation3 + $0x80] sm:$0xff] %vm1367_vm6, %v1304_v39  ;;  %v1600_v39 = vld [vmem:[#allocation2 + $0x79] sm:$0xff] }
 0x231   : > { %1491 = vrot.lane.b32.xlu2 %v1414_v5, %s2525_s29 }
 0x233   : > { %1909 = vrot.lane.b32.xlu1 %v3486_v20, %s2527_s6  ;;  %v1314_v22 = vpop.permute.xlu2 %1313 }
 0x234   : > { %1521 = vrot.lane.b32.xlu0 %v3257_v8, %s2525_s29  ;;  %1389 = vst.msk [vmem:[#allocation3 + $0xa8] sm:$0xff] %vm1367_vm6, %v1314_v22 }
 0x235   : > { %v1306_v0 = vpop.permute.xlu1 %1305 }
 0x236   : > { %1385 = vst.msk [vmem:[#allocation3 + $0x88] sm:$0xff] %vm1367_vm6, %v1306_v0  ;;  %v1310_v56 = vpop.permute.xlu0 %1309 }
 0x237   : > { %1387 = vst.msk [vmem:[#allocation3 + $0x98] sm:$0xff] %vm1367_vm6, %v1310_v56 }
 0x239   : > { %1716 = vrot.lane.b32.xlu2 %v3324_v1, %s2526_s30 }
 0x23b   : > { %1682 = vrot.lane.b32.xlu1 %v1606_v59, %s2526_s30  ;;  %v1320_v62 = vpop.permute.xlu2 %1319  ;;  %v1617_v59 = vld [vmem:[#allocation2 + $0x141] sm:$0xff] }
 0x23c   : > { %1875 = vrot.lane.b32.xlu0 %v1799_v58, %s2527_s6  ;;  %1392 = vst.msk [vmem:[#allocation3 + $0xc0] sm:$0xff] %vm1367_vm6, %v1320_v62  ;;  %v1616_v58 = vld [vmem:[#allocation2 + $0x139] sm:$0xff] }
 0x23d   : > { %v1312_v8 = vpop.permute.xlu1 %1311  ;;  %v1809_v62 = vld [vmem:[#allocation2 + $0x13a] sm:$0xff] }
 0x23e   : > { %1388 = vst.msk [vmem:[#allocation3 + $0xa0] sm:$0xff] %vm1367_vm6, %v1312_v8  ;;  %v1316_v20 = vpop.permute.xlu0 %1315 }
 0x23f   : > { %1390 = vst.msk [vmem:[#allocation3 + $0xb0] sm:$0xff] %vm1367_vm6, %v1316_v20 }
 0x241   : > { %1489 = vrot.lane.b32.xlu2 %v1413_v34, %s2525_s29 }
 0x243   : > { %1907 = vrot.lane.b32.xlu1 %v3503_v18, %s2527_s6  ;;  %v1326_v1 = vpop.permute.xlu2 %1325 }
 0x244   : > { %1519 = vrot.lane.b32.xlu0 %v3153_v6, %s2525_s29  ;;  %1395 = vst.msk [vmem:[#allocation3 + $0xd8] sm:$0xff] %vm1367_vm6, %v1326_v1 }
 0x245   : > { %v1318_v38 = vpop.permute.xlu1 %1317 }
 0x246   : > { %1391 = vst.msk [vmem:[#allocation3 + $0xb8] sm:$0xff] %vm1367_vm6, %v1318_v38  ;;  %v1322_v11 = vpop.permute.xlu0 %1321  ;;  %v1423_v38 = vld [vmem:[#allocation2 + $0x138] sm:$0xff] }
 0x247   : > { %1393 = vst.msk [vmem:[#allocation3 + $0xc8] sm:$0xff] %vm1367_vm6, %v1322_v11  ;;  %v1422_v11 = vld [vmem:[#allocation2 + $0x128] sm:$0xff] }
 0x249   : > { %1714 = vrot.lane.b32.xlu2 %v3332_v4, %s2526_s30 }
 0x24b   : > { %1680 = vrot.lane.b32.xlu1 %v1605_v53, %s2526_s30  ;;  %v1332_v12 = vpop.permute.xlu2 %1331  ;;  %v1615_v53 = vld [vmem:[#allocation2 + $0x129] sm:$0xff] }
 0x24c   : > { %1873 = vrot.lane.b32.xlu0 %v1798_v52, %s2527_s6  ;;  %1398 = vst.msk [vmem:[#allocation3 + $0xf0] sm:$0xff] %vm1367_vm6, %v1332_v12 }
 0x24d   : > { %v1324_v6 = vpop.permute.xlu1 %1323 }
 0x24e   : > { %1394 = vst.msk [vmem:[#allocation3 + $0xd0] sm:$0xff] %vm1367_vm6, %v1324_v6  ;;  %v1328_v57 = vpop.permute.xlu0 %1327 }
 0x24f   : > { %1396 = vst.msk [vmem:[#allocation3 + $0xe0] sm:$0xff] %vm1367_vm6, %v1328_v57 }
 0x251   : > { %1487 = vrot.lane.b32.xlu2 %v1412_v63, %s2525_s29  ;;  %v1793_v63 = vld [vmem:[#allocation2 + $0x7a] sm:$0xff] }
 0x253   : > { %1905 = vrot.lane.b32.xlu1 %v1814_v21, %s2527_s6  ;;  %v1468_v4 = vpop.permute.xlu2 %1467  ;;  %v1792_v21 = vld [vmem:[#allocation2 + $0x6a] sm:$0xff] }
 0x254   : > { %1517 = vrot.lane.b32.xlu0 %v1427_v61, %s2525_s29  ;;  %1563 = vst.msk [vmem:[#allocation3 + $0x8] sm:$0xff] %vm1561_vm7, %v1468_v4  ;;  %v1421_v61 = vld [vmem:[#allocation2 + $0x120] sm:$0xff] }
 0x255   : > { %v1330_v51 = vpop.permute.xlu1 %1329 }
 0x256   : > { %1397 = vst.msk [vmem:[#allocation3 + $0xe8] sm:$0xff] %vm1367_vm6, %v1330_v51  ;;  %v1334_v18 = vpop.permute.xlu0 %1333 }
 0x257   : > { %1399 = vst.msk [vmem:[#allocation3 + $0xf8] sm:$0xff] %vm1367_vm6, %v1334_v18 }
 0x259   : > { %1712 = vrot.lane.b32.xlu2 %v1621_v49, %s2526_s30 }
 0x25b   : > { %1678 = vrot.lane.b32.xlu1 %v1604_v13, %s2526_s30  ;;  %v1474_v55 = vpop.permute.xlu2 %1473  ;;  %v1599_v13 = vld [vmem:[#allocation2 + $0x69] sm:$0xff] }
 0x25c   : > { %1871 = vrot.lane.b32.xlu0 %v1797_v3, %s2527_s6  ;;  %1566 = vst.msk [vmem:[#allocation3 + $0x20] sm:$0xff] %vm1561_vm7, %v1474_v55  ;;  %v1598_v3 = vld [vmem:[#allocation2 + $0x61] sm:$0xff] }
 0x25d   : > { %v1466_v14 = vpop.permute.xlu1 %1465  ;;  %v1791_v55 = vld [vmem:[#allocation2 + $0x62] sm:$0xff] }
 0x25e   : > { %1562 = vst.msk [vmem:[#allocation3] sm:$0xff] %vm1561_vm7, %v1466_v14  ;;  %v1470_v16 = vpop.permute.xlu0 %1469 }
 0x25f   : > { %1564 = vst.msk [vmem:[#allocation3 + $0x10] sm:$0xff] %vm1561_vm7, %v1470_v16 }
 0x261   : > { %1485 = vrot.lane.b32.xlu2 %v1411_v54, %s2525_s29 }
 0x263   : > { %1903 = vrot.lane.b32.xlu1 %v1813_v48, %s2527_s6  ;;  %v1480_v28 = vpop.permute.xlu2 %1479 }
 0x264   : > { %1676 = vrot.lane.b32.xlu0 %v1603_v15, %s2526_s30  ;;  %1569 = vst.msk [vmem:[#allocation3 + $0x38] sm:$0xff] %vm1561_vm7, %v1480_v28  ;;  %v1808_v15 = vld [vmem:[#allocation2 + $0x12a] sm:$0xff]  ;;  %v1807_v28 = vld [vmem:[#allocation2 + $0x122] sm:$0xff] }
 0x265   : > { %v1472_v32 = vpop.permute.xlu1 %1471 }
 0x266   : > { %1565 = vst.msk [vmem:[#allocation3 + $0x18] sm:$0xff] %vm1561_vm7, %v1472_v32  ;;  %v1476_v29 = vpop.permute.xlu0 %1475  ;;  %v1597_v32 = vld [vmem:[#allocation2 + $0x51] sm:$0xff] }
 0x267   : > { %1567 = vst.msk [vmem:[#allocation3 + $0x28] sm:$0xff] %vm1561_vm7, %v1476_v29 }
 0x269   : > { %1710 = vrot.lane.b32.xlu2 %v1620_v7, %s2526_s30 }
 0x26b   : > { %1708 = vrot.lane.b32.xlu1 %v1619_v17, %s2526_s30  ;;  %v1496_v45 = vpop.permute.xlu2 %1495 }
 0x26c   : > { %1901 = vrot.lane.b32.xlu0 %v1812_v35, %s2527_s6  ;;  %1577 = vst.msk [vmem:[#allocation3 + $0x78] sm:$0xff] %vm1561_vm7, %v1496_v45  ;;  %v1614_v45 = vld [vmem:[#allocation2 + $0x121] sm:$0xff] }
 0x26d   : > { %v1478_v44 = vpop.permute.xlu1 %1477 }
 0x26e   : > { %1568 = vst.msk [vmem:[#allocation3 + $0x30] sm:$0xff] %vm1561_vm7, %v1478_v44  ;;  %v1482_v33 = vpop.permute.xlu0 %1481  ;;  %v1613_v44 = vld [vmem:[#allocation2 + $0x111] sm:$0xff] }
 0x26f   : > { %1570 = vst.msk [vmem:[#allocation3 + $0x40] sm:$0xff] %vm1561_vm7, %v1482_v33  ;;  %v1806_v33 = vld [vmem:[#allocation2 + $0x112] sm:$0xff] }
 0x271   : > { %1515 = vrot.lane.b32.xlu2 %v1426_v24, %s2525_s29 }
 0x273   : > { %1513 = vrot.lane.b32.xlu1 %v1425_v25, %s2525_s29  ;;  %v1721_v23 = vpop.permute.xlu2 %1720 }
 0x274   : > { %1706 = vrot.lane.b32.xlu0 %v1618_v42, %s2526_s30 }
 0x275   : > { %v1484_v31 = vpop.permute.xlu1 %1483 }
 0x276   : > { %1571 = vst.msk [vmem:[#allocation3 + $0x48] sm:$0xff] %vm1561_vm7, %v1484_v31  ;;  %v1528_v47 = vpop.permute.xlu0 %1527  ;;  %v1420_v31 = vld [vmem:[#allocation2 + $0x110] sm:$0xff] }
 0x277   : > { %1593 = vst.msk [vmem:[#allocation3 + $0xf8] sm:$0xff] %vm1561_vm7, %v1528_v47  ;;  %v1419_v47 = vld [vmem:[#allocation2 + $0x108] sm:$0xff] }
 0x278   : > { %1786 = vst.msk [vmem:[#allocation3 + $0xf8] sm:$0xff] %vm1754_vm8, %v1721_v23 }
 0x279   : > { %1869 = vrot.lane.b32.xlu2 %v1796_v30, %s2527_s6  ;;  %v1612_v30 = vld [vmem:[#allocation2 + $0x109] sm:$0xff] }
 0x27b   : > { %1867 = vrot.lane.b32.xlu1 %v1795_v37, %s2527_s6  ;;  %v1494_v41 = vpop.permute.xlu2 %1493 }
 0x27c   : > { %1511 = vrot.lane.b32.xlu0 %v1424_v26, %s2525_s29  ;;  %1576 = vst.msk [vmem:[#allocation3 + $0x70] sm:$0xff] %vm1561_vm7, %v1494_v41 }
 0x27d   : > { %v1689_v36 = vpop.permute.xlu1 %1688 }
 0x27e   : > { %1770 = vst.msk [vmem:[#allocation3 + $0x78] sm:$0xff] %vm1754_vm8, %v1689_v36  ;;  %v1882_v50 = vpop.permute.xlu0 %1881 }
 0x27f   : > { %1963 = vst.msk [vmem:[#allocation3 + $0x78] sm:$0xff] %vm1947_vm9, %v1882_v50  ;;  %v1790_v50 = vld [vmem:[#allocation2 + $0x52] sm:$0xff] }
 0x281   : > { %1674 = vrot.lane.b32.xlu2 %v1602_v2, %s2526_s30  ;;  %v1789_v2 = vld [vmem:[#allocation2 + $0x4a] sm:$0xff] }
 0x283   : > { %1672 = vrot.lane.b32.xlu1 %v1601_v43, %s2526_s30  ;;  %v1719_v40 = vpop.permute.xlu2 %1718  ;;  %v1418_v43 = vld [vmem:[#allocation2 + $0xf8] sm:$0xff] }
 0x284   : > { %1865 = vrot.lane.b32.xlu0 %v1794_v19, %s2527_s6 }
 0x285   : > { %v1914_v10 = vpop.permute.xlu1 %1913 }
 0x286   : > { %1979 = vst.msk [vmem:[#allocation3 + $0xf8] sm:$0xff] %vm1947_vm9, %v1914_v10  ;;  %v1526_v27 = vpop.permute.xlu0 %1525  ;;  %v1996_v46 = vld [vmem:[#allocation3 + $0x78] sm:$0xff] }
 0x287   : > { %1592 = vst.msk [vmem:[#allocation3 + $0xf0] sm:$0xff] %vm1561_vm7, %v1526_v27  ;;  %2420 = vmatpush.xpose.msk.msra.mxu0 %vm2013_vm10, %v1996_v46  ;;  %v1596_v46 = vld [vmem:[#allocation2 + $0x49] sm:$0xff] }
 0x288   : > { %1785 = vst.msk [vmem:[#allocation3 + $0xf0] sm:$0xff] %vm1754_vm8, %v1719_v40 }
 0x289   : > { %1899 = vrot.lane.b32.xlu2 %v1811_v60, %s2527_s6  ;;  %v1595_v60 = vld [vmem:[#allocation2 + $0x39] sm:$0xff] }
 0x28b   : > { %1897 = vrot.lane.b32.xlu1 %v1810_v9, %s2527_s6  ;;  %v1492_v5 = vpop.permute.xlu2 %1491  ;;  %v1788_v9 = vld [vmem:[#allocation2 + $0x3a] sm:$0xff] }
 0x28c   : > { %1670 = vrot.lane.b32.xlu0 %v1600_v39, %s2526_s30  ;;  %1575 = vst.msk [vmem:[#allocation3 + $0x68] sm:$0xff] %vm1561_vm7, %v1492_v5 }
 0x28d   : > { %v1687_v22 = vpop.permute.xlu1 %1686  ;;  %v2012_v0 = vld [vmem:[#allocation3 + $0xf8] sm:$0xff] }
 0x28e   : > { %1769 = vst.msk [vmem:[#allocation3 + $0x70] sm:$0xff] %vm1754_vm8, %v1687_v22  ;;  %v1880_v56 = vpop.permute.xlu0 %1879  ;;  %2437 = vmatpush.xpose.msk.msra.mxu1 %vm2013_vm10, %v2012_v0 }
 0x28f   : > { %1962 = vst.msk [vmem:[#allocation3 + $0x70] sm:$0xff] %vm1947_vm9, %v1880_v56  ;;  %v1805_v56 = vld [vmem:[#allocation2 + $0x10a] sm:$0xff] }
 0x291   : > { %1704 = vrot.lane.b32.xlu2 %v1617_v59, %s2526_s30  ;;  %v1804_v59 = vld [vmem:[#allocation2 + $0xfa] sm:$0xff] }
 0x293   : > { %1702 = vrot.lane.b32.xlu1 %v1616_v58, %s2526_s30  ;;  %v1717_v8 = vpop.permute.xlu2 %1716  ;;  %v1594_v58 = vld [vmem:[#allocation2 + $0x31] sm:$0xff] }
 0x294   : > { %1895 = vrot.lane.b32.xlu0 %v1809_v62, %s2527_s6 }
 0x295   : > { %v1912_v20 = vpop.permute.xlu1 %1911 }
 0x296   : > { %1978 = vst.msk [vmem:[#allocation3 + $0xf0] sm:$0xff] %vm1947_vm9, %v1912_v20  ;;  %v1524_v34 = vpop.permute.xlu0 %1523  ;;  %v1995_v1 = vld [vmem:[#allocation3 + $0x70] sm:$0xff] }
 0x297   : > { %1591 = vst.msk [vmem:[#allocation3 + $0xe8] sm:$0xff] %vm1561_vm7, %v1524_v34  ;;  %2421 = vmatpush.xpose.msk.msra.mxu0 %vm2013_vm10, %v1995_v1  ;;  %v1611_v1 = vld [vmem:[#allocation2 + $0xf9] sm:$0xff] }
 0x298   : > { %1784 = vst.msk [vmem:[#allocation3 + $0xe8] sm:$0xff] %vm1754_vm8, %v1717_v8 }
 0x299   : > { %1509 = vrot.lane.b32.xlu2 %v1423_v38, %s2525_s29 }
 0x29b   : > { %1507 = vrot.lane.b32.xlu1 %v1422_v11, %s2525_s29  ;;  %v1490_v52 = vpop.permute.xlu2 %1489  ;;  %v1610_v11 = vld [vmem:[#allocation2 + $0xf1] sm:$0xff] }
 0x29c   : > { %1700 = vrot.lane.b32.xlu0 %v1615_v53, %s2526_s30  ;;  %1574 = vst.msk [vmem:[#allocation3 + $0x60] sm:$0xff] %vm1561_vm7, %v1490_v52  ;;  %v1803_v53 = vld [vmem:[#allocation2 + $0xf2] sm:$0xff] }
 0x29d   : > { %v1685_v12 = vpop.permute.xlu1 %1684  ;;  %v2011_v6 = vld [vmem:[#allocation3 + $0xf0] sm:$0xff] }
 0x29e   : > { %1768 = vst.msk [vmem:[#allocation3 + $0x68] sm:$0xff] %vm1754_vm8, %v1685_v12  ;;  %v1878_v57 = vpop.permute.xlu0 %1877  ;;  %2438 = vmatpush.xpose.msk.msra.mxu1 %vm2013_vm10, %v2011_v6 }
 0x29f   : > { %1961 = vst.msk [vmem:[#allocation3 + $0x68] sm:$0xff] %vm1947_vm9, %v1878_v57 }
 0x2a1   : > { %1863 = vrot.lane.b32.xlu2 %v1793_v63, %s2527_s6  ;;  %v1417_v63 = vld [vmem:[#allocation2 + $0xf0] sm:$0xff] }
 0x2a3   : > { %1861 = vrot.lane.b32.xlu1 %v1792_v21, %s2527_s6  ;;  %v1715_v4 = vpop.permute.xlu2 %1714 }
 0x2a4   : > { %1505 = vrot.lane.b32.xlu0 %v1421_v61, %s2525_s29 }
 0x2a5   : > { %v1910_v51 = vpop.permute.xlu1 %1909 }
 0x2a6   : > { %1977 = vst.msk [vmem:[#allocation3 + $0xe8] sm:$0xff] %vm1947_vm9, %v1910_v51  ;;  %v1522_v18 = vpop.permute.xlu0 %1521  ;;  %v1994_v49 = vld [vmem:[#allocation3 + $0x68] sm:$0xff] }
 0x2a7   : > { %1590 = vst.msk [vmem:[#allocation3 + $0xe0] sm:$0xff] %vm1561_vm7, %v1522_v18  ;;  %2422 = vmatpush.xpose.msk.msra.mxu0 %vm2013_vm10, %v1994_v49  ;;  %v1787_v51 = vld [vmem:[#allocation2 + $0x32] sm:$0xff] }
 0x2a8   : > { %1783 = vst.msk [vmem:[#allocation3 + $0xe0] sm:$0xff] %vm1754_vm8, %v1715_v4 }
 0x2a9   : > { %1668 = vrot.lane.b32.xlu2 %v1599_v13, %s2526_s30 }
 0x2ab   : > { %1666 = vrot.lane.b32.xlu1 %v1598_v3, %s2526_s30  ;;  %v1488_v14 = vpop.permute.xlu2 %1487 }
 0x2ac   : > { %1859 = vrot.lane.b32.xlu0 %v1791_v55, %s2527_s6  ;;  %1573 = vst.msk [vmem:[#allocation3 + $0x58] sm:$0xff] %vm1561_vm7, %v1488_v14 }
 0x2ad   : > { %v1683_v16 = vpop.permute.xlu1 %1682  ;;  %v2010_v54 = vld [vmem:[#allocation3 + $0xe8] sm:$0xff] }
 0x2ae   : > { %1767 = vst.msk [vmem:[#allocation3 + $0x60] sm:$0xff] %vm1754_vm8, %v1683_v16  ;;  %v1876_v48 = vpop.permute.xlu0 %1875  ;;  %2439 = vmatpush.xpose.msk.msra.mxu1 %vm2013_vm10, %v2010_v54 }
 0x2af   : > { %1960 = vst.msk [vmem:[#allocation3 + $0x60] sm:$0xff] %vm1947_vm9, %v1876_v48 }
 0x2b1   : > { %1893 = vrot.lane.b32.xlu2 %v1808_v15, %s2527_s6 }
 0x2b3   : > { %1891 = vrot.lane.b32.xlu1 %v1807_v28, %s2527_s6  ;;  %v1713_v29 = vpop.permute.xlu2 %1712 }
 0x2b4   : > { %1664 = vrot.lane.b32.xlu0 %v1597_v32, %s2526_s30 }
 0x2b5   : > { %v1908_v7 = vpop.permute.xlu1 %1907 }
 0x2b6   : > { %1976 = vst.msk [vmem:[#allocation3 + $0xe0] sm:$0xff] %vm1947_vm9, %v1908_v7  ;;  %v1520_v17 = vpop.permute.xlu0 %1519  ;;  %v1993_v35 = vld [vmem:[#allocation3 + $0x60] sm:$0xff] }
 0x2b7   : > { %1589 = vst.msk [vmem:[#allocation3 + $0xd8] sm:$0xff] %vm1561_vm7, %v1520_v17  ;;  %2423 = vmatpush.xpose.msk.msra.mxu0 %vm2013_vm10, %v1993_v35 }
 0x2b8   : > { %1782 = vst.msk [vmem:[#allocation3 + $0xd8] sm:$0xff] %vm1754_vm8, %v1713_v29 }
 0x2b9   : > { %1698 = vrot.lane.b32.xlu2 %v1614_v45, %s2526_s30 }
 0x2bb   : > { %1696 = vrot.lane.b32.xlu1 %v1613_v44, %s2526_s30  ;;  %v1486_v24 = vpop.permute.xlu2 %1485 }
 0x2bc   : > { %1889 = vrot.lane.b32.xlu0 %v1806_v33, %s2527_s6  ;;  %1572 = vst.msk [vmem:[#allocation3 + $0x50] sm:$0xff] %vm1561_vm7, %v1486_v24 }
 0x2bd   : > { %v1681_v25 = vpop.permute.xlu1 %1680  ;;  %v2009_v42 = vld [vmem:[#allocation3 + $0xe0] sm:$0xff] }
 0x2be   : > { %1766 = vst.msk [vmem:[#allocation3 + $0x58] sm:$0xff] %vm1754_vm8, %v1681_v25  ;;  %v1874_v23 = vpop.permute.xlu0 %1873  ;;  %2440 = vmatpush.xpose.msk.msra.mxu1 %vm2013_vm10, %v2009_v42 }
 0x2bf   : > { %1959 = vst.msk [vmem:[#allocation3 + $0x58] sm:$0xff] %vm1947_vm9, %v1874_v23 }
 0x2c1   : > { %1503 = vrot.lane.b32.xlu2 %v1420_v31, %s2525_s29 }
 0x2c3   : > { %1501 = vrot.lane.b32.xlu1 %v1419_v47, %s2525_s29  ;;  %v1711_v37 = vpop.permute.xlu2 %1710 }
 0x2c4   : > { %1694 = vrot.lane.b32.xlu0 %v1612_v30, %s2526_s30 }
 0x2c5   : > { %v1906_v26 = vpop.permute.xlu1 %1905 }
 0x2c6   : > { %1975 = vst.msk [vmem:[#allocation3 + $0xd8] sm:$0xff] %vm1947_vm9, %v1906_v26  ;;  %v1518_v41 = vpop.permute.xlu0 %1517  ;;  %v1992_v36 = vld [vmem:[#allocation3 + $0x58] sm:$0xff] }
 0x2c7   : > { %1588 = vst.msk [vmem:[#allocation3 + $0xd0] sm:$0xff] %vm1561_vm7, %v1518_v41  ;;  %2424 = vmatpush.xpose.msk.msra.mxu0 %vm2013_vm10, %v1992_v36 }
 0x2c8   : > { %1781 = vst.msk [vmem:[#allocation3 + $0xd0] sm:$0xff] %vm1754_vm8, %v1711_v37 }
 0x2c9   : > { %1857 = vrot.lane.b32.xlu2 %v1790_v50, %s2527_s6 }
 0x2cb   : > { %1855 = vrot.lane.b32.xlu1 %v1789_v2, %s2527_s6  ;;  %v1516_v19 = vpop.permute.xlu2 %1515 }
 0x2cc   : > { %1499 = vrot.lane.b32.xlu0 %v1418_v43, %s2525_s29  ;;  %1587 = vst.msk [vmem:[#allocation3 + $0xc8] sm:$0xff] %vm1561_vm7, %v1516_v19 }
 0x2cd   : > { %v1679_v40 = vpop.permute.xlu1 %1678  ;;  %v2008_v10 = vld [vmem:[#allocation3 + $0xd8] sm:$0xff] }
 0x2ce   : > { %1765 = vst.msk [vmem:[#allocation3 + $0x50] sm:$0xff] %vm1754_vm8, %v1679_v40  ;;  %v1872_v27 = vpop.permute.xlu0 %1871  ;;  %2441 = vmatpush.xpose.msk.msra.mxu1 %vm2013_vm10, %v2008_v10 }
 0x2cf   : > { %1958 = vst.msk [vmem:[#allocation3 + $0x50] sm:$0xff] %vm1947_vm9, %v1872_v27 }
 0x2d1   : > { %1662 = vrot.lane.b32.xlu2 %v1596_v46, %s2526_s30 }
 0x2d3   : > { %1660 = vrot.lane.b32.xlu1 %v1595_v60, %s2526_s30  ;;  %v1870_v39 = vpop.permute.xlu2 %1869 }
 0x2d4   : > { %1853 = vrot.lane.b32.xlu0 %v1788_v9, %s2527_s6 }
 0x2d5   : > { %v1904_v5 = vpop.permute.xlu1 %1903 }
 0x2d6   : > { %1974 = vst.msk [vmem:[#allocation3 + $0xd0] sm:$0xff] %vm1947_vm9, %v1904_v5  ;;  %v1677_v22 = vpop.permute.xlu0 %1676  ;;  %v1991_v0 = vld [vmem:[#allocation3 + $0x50] sm:$0xff] }
 0x2d7   : > { %1764 = vst.msk [vmem:[#allocation3 + $0x48] sm:$0xff] %vm1754_vm8, %v1677_v22  ;;  %2425 = vmatpush.xpose.msk.msra.mxu0 %vm2013_vm10, %v1991_v0  ;;  %v2153_v0 = vld [vmem:[%s3807_s2] sm:$0xff] }
 0x2d8   : > { %1957 = vst.msk [vmem:[#allocation3 + $0x48] sm:$0xff] %vm1947_vm9, %v1870_v39  ;;  %2470 = vmatmul.msk.f32.vlgmr.msra.gmra.mxu2 %vm250_vm0, %v2153_v0  ;;  %2487 = vmatmul.msk.f32.vlgmr.msra.gmra.mxu3 %vm250_vm0, %v2153_v0 }
 0x2d9   : > { %1887 = vrot.lane.b32.xlu2 %v1805_v56, %s2527_s6 }
 0x2db   : > { %1885 = vrot.lane.b32.xlu1 %v1804_v59, %s2527_s6  ;;  %v1675_v62 = vpop.permute.xlu2 %1674 }
 0x2dc   : > { %1658 = vrot.lane.b32.xlu0 %v1594_v58, %s2526_s30  ;;  %1763 = vst.msk [vmem:[#allocation3 + $0x40] sm:$0xff] %vm1754_vm8, %v1675_v62 }
 0x2dd   : > { %v1709_v8 = vpop.permute.xlu1 %1708  ;;  %v2007_v20 = vld [vmem:[#allocation3 + $0xd0] sm:$0xff] }
 0x2de   : > { %1780 = vst.msk [vmem:[#allocation3 + $0xc8] sm:$0xff] %vm1754_vm8, %v1709_v8  ;;  %v1902_v34 = vpop.permute.xlu0 %1901  ;;  %2442 = vmatpush.xpose.msk.msra.mxu1 %vm2013_vm10, %v2007_v20 }
 0x2df   : > { %1973 = vst.msk [vmem:[#allocation3 + $0xc8] sm:$0xff] %vm1947_vm9, %v1902_v34  ;;  %v1990_v38 = vld [vmem:[#allocation3 + $0x48] sm:$0xff] }
 0x2e0   : > { %2426 = vmatpush.xpose.msk.msra.mxu0 %vm2013_vm10, %v1990_v38 }
 0x2e1   : > { %1692 = vrot.lane.b32.xlu2 %v1611_v1, %s2526_s30 }
 0x2e3   : > { %1690 = vrot.lane.b32.xlu1 %v1610_v11, %s2526_s30  ;;  %v1900_v52 = vpop.permute.xlu2 %1899 }
 0x2e4   : > { %1883 = vrot.lane.b32.xlu0 %v1803_v53, %s2527_s6 }
 0x2e5   : > { %v1514_v12 = vpop.permute.xlu1 %1513 }
 0x2e6   : > { %1586 = vst.msk [vmem:[#allocation3 + $0xc0] sm:$0xff] %vm1561_vm7, %v1514_v12  ;;  %v1707_v6 = vpop.permute.xlu0 %1706  ;;  %v2006_v57 = vld [vmem:[#allocation3 + $0xc8] sm:$0xff]  ;;  %v1980_v12 = vld [vmem:[%s3806_s1] sm:$0xff] }
 0x2e7   : > { %1779 = vst.msk [vmem:[#allocation3 + $0xc0] sm:$0xff] %vm1754_vm8, %v1707_v6  ;;  %2443 = vmatpush.xpose.msk.msra.mxu1 %vm2013_vm10, %v2006_v57 }
 0x2e8   : > { %1972 = vst.msk [vmem:[#allocation3 + $0xc0] sm:$0xff] %vm1947_vm9, %v1900_v52 }
 0x2e9   : > { %1497 = vrot.lane.b32.xlu2 %v1417_v63, %s2525_s29 }
 0x2eb   : > { %v1705_v21 = vpop.permute.xlu2 %1704 }
 0x2ed   : > { %v1868_v61 = vpop.permute.xlu1 %1867 }
 0x2ee   : > { %1956 = vst.msk [vmem:[#allocation3 + $0x40] sm:$0xff] %vm1947_vm9, %v1868_v61  ;;  %v1512_v4 = vpop.permute.xlu0 %1511 }
 0x2ef   : > { %1585 = vst.msk [vmem:[#allocation3 + $0xb8] sm:$0xff] %vm1561_vm7, %v1512_v4  ;;  %v2005_v18 = vld [vmem:[#allocation3 + $0xc0] sm:$0xff] }
 0x2f0   : > { %1778 = vst.msk [vmem:[#allocation3 + $0xb8] sm:$0xff] %vm1754_vm8, %v1705_v21  ;;  %2444 = vmatpush.xpose.msk.msra.mxu1 %vm2013_vm10, %v2005_v18 }
 0x2f1   : > { %1851 = vrot.lane.b32.xlu2 %v1787_v51, %s2527_s6 }
 0x2f3   : > { %v1510_v49 = vpop.permute.xlu2 %1509 }
 0x2f4   : > { %1584 = vst.msk [vmem:[#allocation3 + $0xb0] sm:$0xff] %vm1561_vm7, %v1510_v49 }
 0x2f5   : > { %v1673_v13 = vpop.permute.xlu1 %1672  ;;  %v1989_v3 = vld [vmem:[#allocation3 + $0x40] sm:$0xff] }
 0x2f6   : > { %1762 = vst.msk [vmem:[#allocation3 + $0x38] sm:$0xff] %vm1754_vm8, %v1673_v13  ;;  %v1866_v55 = vpop.permute.xlu0 %1865  ;;  %2427 = vmatpush.xpose.msk.msra.mxu0 %vm2013_vm10, %v1989_v3 }
 0x2f7   : > { %1955 = vst.msk [vmem:[#allocation3 + $0x38] sm:$0xff] %vm1947_vm9, %v1866_v55 }
 0x2fb   : > { %v1864_v14 = vpop.permute.xlu2 %1863 }
 0x2fd   : > { %v1898_v16 = vpop.permute.xlu1 %1897 }
 0x2fe   : > { %1971 = vst.msk [vmem:[#allocation3 + $0xb8] sm:$0xff] %vm1947_vm9, %v1898_v16  ;;  %v1671_v54 = vpop.permute.xlu0 %1670  ;;  %v1988_v48 = vld [vmem:[#allocation3 + $0x38] sm:$0xff] }
 0x2ff   : > { %1761 = vst.msk [vmem:[#allocation3 + $0x30] sm:$0xff] %vm1754_vm8, %v1671_v54  ;;  %2428 = vmatpush.xpose.msk.msra.mxu0 %vm2013_vm10, %v1988_v48 }
 0x300   : > { %1954 = vst.msk [vmem:[#allocation3 + $0x30] sm:$0xff] %vm1947_vm9, %v1864_v14 }
 0x303   : > { %v1669_v15 = vpop.permute.xlu2 %1668 }
 0x304   : > { %1760 = vst.msk [vmem:[#allocation3 + $0x28] sm:$0xff] %vm1754_vm8, %v1669_v15 }
 0x305   : > { %v1703_v28 = vpop.permute.xlu1 %1702  ;;  %v2004_v32 = vld [vmem:[#allocation3 + $0xb8] sm:$0xff] }
 0x306   : > { %1777 = vst.msk [vmem:[#allocation3 + $0xb0] sm:$0xff] %vm1754_vm8, %v1703_v28  ;;  %v1896_v29 = vpop.permute.xlu0 %1895  ;;  %2445 = vmatpush.xpose.msk.msra.mxu1 %vm2013_vm10, %v2004_v32 }
 0x307   : > { %1970 = vst.msk [vmem:[#allocation3 + $0xb0] sm:$0xff] %vm1947_vm9, %v1896_v29  ;;  %v1987_v7 = vld [vmem:[#allocation3 + $0x30] sm:$0xff] }
 0x308   : > { %2429 = vmatpush.xpose.msk.msra.mxu0 %vm2013_vm10, %v1987_v7 }
 0x30b   : > { %v1894_v17 = vpop.permute.xlu2 %1893 }
 0x30d   : > { %v1508_v35 = vpop.permute.xlu1 %1507 }
 0x30e   : > { %1583 = vst.msk [vmem:[#allocation3 + $0xa8] sm:$0xff] %vm1561_vm7, %v1508_v35  ;;  %v1701_v45 = vpop.permute.xlu0 %1700  ;;  %v2003_v44 = vld [vmem:[#allocation3 + $0xb0] sm:$0xff] }
 0x30f   : > { %1776 = vst.msk [vmem:[#allocation3 + $0xa8] sm:$0xff] %vm1754_vm8, %v1701_v45  ;;  %2446 = vmatpush.xpose.msk.msra.mxu1 %vm2013_vm10, %v2003_v44 }
 0x310   : > { %1969 = vst.msk [vmem:[#allocation3 + $0xa8] sm:$0xff] %vm1947_vm9, %v1894_v17 }
 0x313   : > { %v1699_v33 = vpop.permute.xlu2 %1698 }
 0x315   : > { %v1862_v24 = vpop.permute.xlu1 %1861 }
 0x316   : > { %1953 = vst.msk [vmem:[#allocation3 + $0x28] sm:$0xff] %vm1947_vm9, %v1862_v24  ;;  %v1506_v25 = vpop.permute.xlu0 %1505 }
 0x317   : > { %1582 = vst.msk [vmem:[#allocation3 + $0xa0] sm:$0xff] %vm1561_vm7, %v1506_v25  ;;  %v2002_v42 = vld [vmem:[#allocation3 + $0xa8] sm:$0xff] }
 0x318   : > { %1775 = vst.msk [vmem:[#allocation3 + $0xa0] sm:$0xff] %vm1754_vm8, %v1699_v33  ;;  %2447 = vmatpush.xpose.msk.msra.mxu1 %vm2013_vm10, %v2002_v42 }
 0x31b   : > { %v1504_v23 = vpop.permute.xlu2 %1503 }
 0x31c   : > { %1581 = vst.msk [vmem:[#allocation3 + $0x98] sm:$0xff] %vm1561_vm7, %v1504_v23 }
 0x31d   : > { %v1667_v31 = vpop.permute.xlu1 %1666  ;;  %v1986_v47 = vld [vmem:[#allocation3 + $0x28] sm:$0xff] }
 0x31e   : > { %1759 = vst.msk [vmem:[#allocation3 + $0x20] sm:$0xff] %vm1754_vm8, %v1667_v31  ;;  %v1860_v30 = vpop.permute.xlu0 %1859  ;;  %2430 = vmatpush.xpose.msk.msra.mxu0 %vm2013_vm10, %v1986_v47 }
 0x31f   : > { %1952 = vst.msk [vmem:[#allocation3 + $0x20] sm:$0xff] %vm1947_vm9, %v1860_v30 }
 0x323   : > { %v1858_v37 = vpop.permute.xlu2 %1857 }
 0x325   : > { %v1892_v26 = vpop.permute.xlu1 %1891 }
 0x326   : > { %1968 = vst.msk [vmem:[#allocation3 + $0xa0] sm:$0xff] %vm1947_vm9, %v1892_v26  ;;  %v1665_v41 = vpop.permute.xlu0 %1664  ;;  %v1985_v36 = vld [vmem:[#allocation3 + $0x20] sm:$0xff] }
 0x327   : > { %1758 = vst.msk [vmem:[#allocation3 + $0x18] sm:$0xff] %vm1754_vm8, %v1665_v41  ;;  %2431 = vmatpush.xpose.msk.msra.mxu0 %vm2013_vm10, %v1985_v36 }
 0x328   : > { %1951 = vst.msk [vmem:[#allocation3 + $0x18] sm:$0xff] %vm1947_vm9, %v1858_v37 }
 0x32b   : > { %v1663_v50 = vpop.permute.xlu2 %1662 }
 0x32c   : > { %1757 = vst.msk [vmem:[#allocation3 + $0x10] sm:$0xff] %vm1754_vm8, %v1663_v50 }
 0x32d   : > { %v1697_v2 = vpop.permute.xlu1 %1696  ;;  %v2001_v43 = vld [vmem:[#allocation3 + $0xa0] sm:$0xff] }
 0x32e   : > { %1774 = vst.msk [vmem:[#allocation3 + $0x98] sm:$0xff] %vm1754_vm8, %v1697_v2  ;;  %v1890_v19 = vpop.permute.xlu0 %1889  ;;  %2448 = vmatpush.xpose.msk.msra.mxu1 %vm2013_vm10, %v2001_v43 }
 0x32f   : > { %1967 = vst.msk [vmem:[#allocation3 + $0x98] sm:$0xff] %vm1947_vm9, %v1890_v19  ;;  %v1984_v40 = vld [vmem:[#allocation3 + $0x18] sm:$0xff] }
 0x330   : > { %2432 = vmatpush.xpose.msk.msra.mxu0 %vm2013_vm10, %v1984_v40 }
 0x333   : > { %v1888_v10 = vpop.permute.xlu2 %1887 }
 0x335   : > { %v1502_v27 = vpop.permute.xlu1 %1501 }
 0x336   : > { %1580 = vst.msk [vmem:[#allocation3 + $0x90] sm:$0xff] %vm1561_vm7, %v1502_v27  ;;  %v1695_v46 = vpop.permute.xlu0 %1694  ;;  %v2000_v60 = vld [vmem:[#allocation3 + $0x98] sm:$0xff] }
 0x337   : > { %1773 = vst.msk [vmem:[#allocation3 + $0x90] sm:$0xff] %vm1754_vm8, %v1695_v46  ;;  %2449 = vmatpush.xpose.msk.msra.mxu1 %vm2013_vm10, %v2000_v60 }
 0x338   : > { %1966 = vst.msk [vmem:[#allocation3 + $0x90] sm:$0xff] %vm1947_vm9, %v1888_v10 }
 0x33b   : > { %v1693_v9 = vpop.permute.xlu2 %1692 }
 0x33d   : > { %v1856_v39 = vpop.permute.xlu1 %1855 }
 0x33e   : > { %1950 = vst.msk [vmem:[#allocation3 + $0x10] sm:$0xff] %vm1947_vm9, %v1856_v39  ;;  %v1500_v5 = vpop.permute.xlu0 %1499 }
 0x33f   : > { %1579 = vst.msk [vmem:[#allocation3 + $0x88] sm:$0xff] %vm1561_vm7, %v1500_v5  ;;  %v1999_v22 = vld [vmem:[#allocation3 + $0x90] sm:$0xff] }
 0x340   : > { %1772 = vst.msk [vmem:[#allocation3 + $0x88] sm:$0xff] %vm1754_vm8, %v1693_v9  ;;  %2450 = vmatpush.xpose.msk.msra.mxu1 %vm2013_vm10, %v1999_v22 }
 0x343   : > { %v1498_v56 = vpop.permute.xlu2 %1497 }
 0x344   : > { %1578 = vst.msk [vmem:[#allocation3 + $0x80] sm:$0xff] %vm1561_vm7, %v1498_v56 }
 0x345   : > { %v1661_v59 = vpop.permute.xlu1 %1660  ;;  %v1983_v58 = vld [vmem:[#allocation3 + $0x10] sm:$0xff] }
 0x346   : > { %1756 = vst.msk [vmem:[#allocation3 + $0x8] sm:$0xff] %vm1754_vm8, %v1661_v59  ;;  %v1854_v62 = vpop.permute.xlu0 %1853  ;;  %2433 = vmatpush.xpose.msk.msra.mxu0 %vm2013_vm10, %v1983_v58 }
 0x347   : > { %1949 = vst.msk [vmem:[#allocation3 + $0x8] sm:$0xff] %vm1947_vm9, %v1854_v62 }
 0x34b   : > { %v1852_v20 = vpop.permute.xlu2 %1851 }
 0x34d   : > { %v1886_v8 = vpop.permute.xlu1 %1885 }
 0x34e   : > { %1965 = vst.msk [vmem:[#allocation3 + $0x88] sm:$0xff] %vm1947_vm9, %v1886_v8  ;;  %v1659_v34 = vpop.permute.xlu0 %1658  ;;  %v1982_v1 = vld [vmem:[#allocation3 + $0x8] sm:$0xff] }
 0x34f   : > { %1755 = vst.msk [vmem:[#allocation3] sm:$0xff] %vm1754_vm8, %v1659_v34  ;;  %2434 = vmatpush.xpose.msk.msra.mxu0 %vm2013_vm10, %v1982_v1 }
 0x350   : > { %1948 = vst.msk [vmem:[#allocation3] sm:$0xff] %vm1947_vm9, %v1852_v20 }
 0x355   : > { %v1691_v38 = vpop.permute.xlu1 %1690  ;;  %v1998_v11 = vld [vmem:[#allocation3 + $0x88] sm:$0xff] }
 0x356   : > { %1771 = vst.msk [vmem:[#allocation3 + $0x80] sm:$0xff] %vm1754_vm8, %v1691_v38  ;;  %v1884_v53 = vpop.permute.xlu0 %1883  ;;  %2451 = vmatpush.xpose.msk.msra.mxu1 %vm2013_vm10, %v1998_v11 }
 0x357   : > { %1964 = vst.msk [vmem:[#allocation3 + $0x80] sm:$0xff] %vm1947_vm9, %v1884_v53  ;;  %v1981_v52 = vld [vmem:[#allocation3] sm:$0xff] }
 0x358   : > { %2435 = vmatpush.xpose.msk.msra.mxu0 %vm2013_vm10, %v1981_v52 }
 0x35b   : > { %2436 = vmatmul.msk.f32.vlgmr.msra.gmra.mxu0 %vm2013_vm10, %v1980_v12  ;;  %v2238_v57 = vpop.f32.mrf.mxu2  ;;  %v2258_v63 = vpop.f32.mrf.mxu3 }
 0x35c   : > { %2263 = vst [vmem:[%s244_s14] sm:$0xff] %v2238_v57  ;;  %v2275_v21 = vadd.f32 %v2258_v63, %v2238_v57  ;;  %v2267_v3 = vmul.f32 %v2238_v57, %v2238_v57  ;;  %v2268_v55 = vmul.f32 %v2258_v63, %v2258_v63 }
 0x35d   : > { %2264 = vst [vmem:[%s244_s14 + $0x8] sm:$0xff] %v2258_v63 }
 0x35e   : > { %v1997_v6 = vld [vmem:[#allocation3 + $0x80] sm:$0xff]  ;;  %2276 = vadd.xlane.f32.xlu0 %v2275_v21  ;;  %v2278_v14 = vadd.f32 %v2268_v55, %v2267_v3 }
 0x35f   : > { %2452 = vmatpush.xpose.msk.msra.mxu1 %vm2013_vm10, %v1997_v6 }
 0x362   : > { %2453 = vmatmul.msk.f32.vlgmr.msra.gmra.mxu1 %vm2013_vm10, %v1980_v12 }
 0x3d1   : > { %v2277_v16 = vpop.xlane.xlu0 %2276 }
 0x3d2   : > { %2284 = vst.msk [vmem:[%s249_s23 + $0x10] sm:$0xff] %vm2281_vm11, %v2277_v16 }
 0x3d8   : > { %v2130_v61 = vpop.f32.mrf.mxu0 }
 0x3d9   : > { %2261 = vst [vmem:[%s239_s17] sm:$0xff] %v2130_v61  ;;  %v2265_v4 = vmul.f32 %v2130_v61, %v2130_v61 }
 0x3df   : > { %v2150_v51 = vpop.f32.mrf.mxu1 }
 0x3e0   : > { %2262 = vst [vmem:[%s239_s17 + $0x8] sm:$0xff] %v2150_v51  ;;  %v2266_v18 = vmul.f32 %v2150_v51, %v2150_v51  ;;  %v2269_v49 = vadd.f32 %v2150_v51, %v2130_v61 }
 0x3e2   : > { %v2272_v13 = vadd.f32 %v2266_v18, %v2265_v4  ;;  %2270 = vadd.xlane.f32.xlu1 %v2269_v49 }
 0x3e4   : > { %2273 = vadd.xlane.f32.xlu2 %v2272_v13 }
 0x3ec   : > { %2279 = vadd.xlane.f32.xlu2 %v2278_v14 }
 0x455   : > { %v2271_v54 = vpop.xlane.xlu1 %2270 }
 0x456   : > { %2282 = vst.msk [vmem:[%s249_s23] sm:$0xff] %vm2281_vm11, %v2271_v54 }
 0x457   : > { %v2274_v48 = vpop.xlane.xlu2 %2273 }
 0x458   : > { %2283 = vst.msk [vmem:[%s249_s23 + $0x8] sm:$0xff] %vm2281_vm11, %v2274_v48 }
 0x45f   : > { %v2280_v15 = vpop.xlane.xlu2 %2279 }
 0x460   : > { %2285 = vst.msk [vmem:[%s249_s23 + $0x18] sm:$0xff] %vm2281_vm11, %v2280_v15 }
 0x461 PF: > { %s16_s18 = sadd.s32 1, %s2517_s18  }
 0x462   : > { %p13_p4 = scmp.ge.s32.totalorder %s16_s18, 4  }
 0x464   :  { %15 = sbr.rel (!%p13_p4) target bundleno = 1 (0x1), region = 88 }

</bundles_post_ra>
